<compile_context>
chip_gen: v6e
topology: v6e:2x2x1
jax: 0.10.0
libtpu: 0.0.40
codegen_flags: <defaults>
</compile_context>

<pallas_src>
import functools

import jax
import jax.numpy as jnp
from jax.experimental import pallas as pl
from jax.experimental.pallas import tpu as pltpu


_VMEM = pl.BlockSpec(memory_space=pltpu.MemorySpace.VMEM)
_FC_PAD = 128                 # logits padded to a full 128-lane block
_SUBLANES = 8                 # batch padded to full sublane occupancy
_MXU_DTYPE = jnp.bfloat16     # MXU operand dtype; accumulation stays f32


# -----------------------------------------------------------------------------
# Fused kernel: embedding + 2x bidirectional LSTM layers + FC
# -----------------------------------------------------------------------------
def _make_fused_kernel(*, vocab, seq_len, batch_p, hidden_dim, n_layers,
                       emoji_dim, mxu_dtype):
    T, Bp, H, V = seq_len, batch_p, hidden_dim, vocab
    N = T * Bp
    G4, G8 = 4 * H, 8 * H

    def cell(gates, c):
        # gates: (Bp, 4H) pre-activations; the g-gate columns were pre-scaled
        # by 2 so tanh(g) == 2*sigmoid(2g) - 1 comes out of ONE sigmoid pass.
        s = jax.nn.sigmoid(gates)
        i = s[:, 0 * H:1 * H]
        f = s[:, 1 * H:2 * H]
        g = 2.0 * s[:, 2 * H:3 * H] - 1.0
        o = s[:, 3 * H:4 * H]
        c_new = f * c + i * g
        return o * jnp.tanh(c_new), c_new

    def kernel(tok_ref, emb_ref, *refs):
        layer_refs = [refs[3 * l:3 * l + 3] for l in range(n_layers)]
        emoji_ref, fcw_ref, fce_ref, fcb_ref, logits_ref = refs[3 * n_layers:]

        # ---- embedding: one-hot row-select matmul, table resident in VMEM ---
        onehot = (tok_ref[...] == jax.lax.broadcasted_iota(
            jnp.int32, (N, V), 1)).astype(jnp.float32)
        x = jnp.dot(onehot, emb_ref[...],
                    preferred_element_type=jnp.float32)          # (N, E)

        h_cat = None
        for l in range(n_layers):
            w_x_ref, w_hh_ref, b_ref = layer_refs[l]
            last_layer = l == n_layers - 1

            # Hoisted input projection: one (N, D) x (D, 8H) MXU matmul,
            # bias fused.  Columns: [fwd i,f,g,o | bwd i,f,g,o].
            xp = jnp.dot(x.astype(mxu_dtype), w_x_ref[...],
                         preferred_element_type=jnp.float32) + b_ref[...]
            w_hh = w_hh_ref[...]                                  # (2H, 8H)

            cf = jnp.zeros((Bp, H), jnp.float32)
            cb = jnp.zeros((Bp, H), jnp.float32)
            if not last_layer:
                hf_seq = [None] * T
                hb_seq = [None] * T

            # Serial recurrence, fully unrolled (T small & static): one merged
            # fwd+bwd recurrent matmul per step + gate math.
            for s in range(T):
                tb = T - 1 - s
                g_f = xp[s * Bp:(s + 1) * Bp, 0:G4]
                g_b = xp[tb * Bp:(tb + 1) * Bp, G4:G8]
                if s > 0:
                    rec = jnp.dot(h_cat.astype(mxu_dtype), w_hh,
                                  preferred_element_type=jnp.float32)
                    g_f = g_f + rec[:, 0:G4]
                    g_b = g_b + rec[:, G4:G8]
                hf, cf = cell(g_f, cf)
                hb, cb = cell(g_b, cb)
                h_cat = jnp.concatenate([hf, hb], axis=1)         # (Bp, 2H)
                if not last_layer:
                    hf_seq[s] = hf
                    hb_seq[tb] = hb

            if not last_layer:
                # Next layer's input [y_f[t] | y_b[t]] stays as VMEM values —
                # no HBM round trip between layers.
                x = jnp.concatenate(
                    [jnp.concatenate([hf_seq[t], hb_seq[t]], axis=1)
                     for t in range(T)], axis=0)                  # (N, 2H)

        # Final hidden of last layer: h_cat == [h_f(T-1) | h_b(0)] already.
        # Fused FC: one MXU matmul + 3 VPU broadcast-FMAs for the emoji part,
        # into a 128-lane padded (lane-dense) logits block.
        acc = jnp.dot(h_cat.astype(mxu_dtype), fcw_ref[...],
                      preferred_element_type=jnp.float32) + fcb_ref[...]
        em = emoji_ref[...]                                       # (Bp, 3)
        fce = fce_ref[...]                                        # (3, 128)
        for k in range(emoji_dim):
            acc = acc + em[:, k:k + 1] * fce[k:k + 1, :]
        logits_ref[...] = acc

    return kernel


# -----------------------------------------------------------------------------
# Forward pass wrapper
# -----------------------------------------------------------------------------
def bilstm_sentiment_forward(params, text, emoji_feature, *, output_dim):
    # text: (B, T) int32 ; emoji_feature: (B, 3) f32 -> (B, output_dim) f32
    batch, seq_len = text.shape
    vocab = params["embedding"].shape[0]
    hidden_dim = params["lstm"][0]["w_hh"].shape[0] // 2
    n_layers = len(params["lstm"])
    emoji_dim = params["fc"]["w_e"].shape[0]

    # Pad batch to full sublane occupancy; padding rows use token id 0
    # (padding_idx -> zero embedding) and are sliced off below.
    batch_p = ((batch + _SUBLANES - 1) // _SUBLANES) * _SUBLANES
    text_p = jnp.zeros((batch_p, seq_len), jnp.int32).at[:batch].set(
        text.astype(jnp.int32))
    emoji_p = jnp.zeros((batch_p, emoji_dim), jnp.float32).at[:batch].set(
        emoji_feature.astype(jnp.float32))
    tokens = text_p.T.reshape(seq_len * batch_p, 1)   # time-major flat ids

    kernel = _make_fused_kernel(
        vocab=vocab, seq_len=seq_len, batch_p=batch_p, hidden_dim=hidden_dim,
        n_layers=n_layers, emoji_dim=emoji_dim, mxu_dtype=_MXU_DTYPE)

    inputs = [tokens, params["embedding"]]
    for lp in params["lstm"]:
        inputs += [lp["w_x"], lp["w_hh"], lp["b"]]
    inputs += [emoji_p, params["fc"]["w_h"], params["fc"]["w_e"],
               params["fc"]["b"]]

    logits_pad = pl.pallas_call(
        kernel,
        out_shape=jax.ShapeDtypeStruct((batch_p, _FC_PAD), jnp.float32),
        in_specs=[_VMEM] * len(inputs),
        out_specs=_VMEM,
        compiler_params=pltpu.CompilerParams(
            vmem_limit_bytes=32 * 1024 * 1024),
    )(*inputs)
    return logits_pad[:batch, :output_dim]


# -----------------------------------------------------------------------------
# Deterministic synthetic weights (PyTorch layout) + one-time kernel prep
# -----------------------------------------------------------------------------
def init_params_torch_layout(key, vocab_size, embedding_dim, hidden_dim,
                             output_dim, n_layers=2, emoji_dim=3):
    keys = iter(jax.random.split(key, 8 * n_layers + 4))

    def unif(shape, scale):
        return jax.random.uniform(next(keys), shape, jnp.float32,
                                  minval=-scale, maxval=scale)

    emb = jax.random.normal(next(keys), (vocab_size, embedding_dim),
                            jnp.float32)
    emb = emb.at[0].set(0.0)                              # padding_idx=0

    k = float(1.0 / (hidden_dim ** 0.5))
    layers = []
    for l in range(n_layers):
        in_dim = embedding_dim if l == 0 else 2 * hidden_dim
        layers.append({
            "w_ih_f": unif((4 * hidden_dim, in_dim), k),
            "w_hh_f": unif((4 * hidden_dim, hidden_dim), k),
            "b_ih_f": unif((4 * hidden_dim,), k),
            "b_hh_f": unif((4 * hidden_dim,), k),
            "w_ih_b": unif((4 * hidden_dim, in_dim), k),
            "w_hh_b": unif((4 * hidden_dim, hidden_dim), k),
            "b_ih_b": unif((4 * hidden_dim,), k),
            "b_hh_b": unif((4 * hidden_dim,), k),
        })

    fc_in = 2 * hidden_dim + emoji_dim
    kf = float(1.0 / (fc_in ** 0.5))
    return {"embedding": emb, "lstm": layers,
            "fc_w": unif((output_dim, fc_in), kf),
            "fc_b": unif((output_dim,), kf)}


def prepare_params(raw, hidden_dim, *, fc_pad=_FC_PAD, mxu_dtype=_MXU_DTYPE):
    """One-time conversion into kernel layout: transposed fwd|bwd-concatenated
    input weights, block-diagonal recurrent weights, fused biases, g-gate rows
    pre-scaled by 2 (tanh-via-sigmoid), FC weights split (hidden / emoji) and
    padded to 128 output lanes, MXU operands pre-cast to bf16."""
    H = hidden_dim

    def scale_g(a):   # scales the cell-gate block [2H:3H) (PyTorch i,f,g,o)
        return a.at[2 * H:3 * H].multiply(2.0)

    layers = []
    for p in raw["lstm"]:
        w_x = jnp.concatenate([scale_g(p["w_ih_f"]).T,
                               scale_g(p["w_ih_b"]).T], axis=1)       # (D, 8H)
        zeros = jnp.zeros((H, 4 * H), jnp.float32)
        w_hh = jnp.concatenate(                                       # (2H, 8H)
            [jnp.concatenate([scale_g(p["w_hh_f"]).T, zeros], axis=1),
             jnp.concatenate([zeros, scale_g(p["w_hh_b"]).T], axis=1)],
            axis=0)
        b = jnp.concatenate([scale_g(p["b_ih_f"] + p["b_hh_f"]),
                             scale_g(p["b_ih_b"] + p["b_hh_b"])]
                            ).reshape(1, 8 * H)
        layers.append({"w_x": w_x.astype(mxu_dtype),
                       "w_hh": w_hh.astype(mxu_dtype),
                       "b": b})                                       # f32 bias

    out_dim, fc_in = raw["fc_w"].shape
    w_pad = jnp.zeros((fc_pad, fc_in), jnp.float32).at[:out_dim].set(
        raw["fc_w"])
    b_pad = jnp.zeros((fc_pad,), jnp.float32).at[:out_dim].set(raw["fc_b"])
    fc = {"w_h": w_pad[:, :2 * H].T.astype(mxu_dtype),    # (2H, 128) MXU
          "w_e": w_pad[:, 2 * H:].T,                      # (3, 128)  VPU, f32
          "b": b_pad.reshape(1, fc_pad)}

    return {"embedding": raw["embedding"], "lstm": layers, "fc": fc}


# -----------------------------------------------------------------------------
# Main
# -----------------------------------------------------------------------------
if __name__ == "__main__":
    VOCAB, EMB, HID, OUT, NLAYERS = 50, 32, 32, 3, 2
    B, T = 2, 8

    key = jax.random.PRNGKey(0)
    k_param, k_text, k_emoji = jax.random.split(key, 3)

    raw_params = init_params_torch_layout(k_param, VOCAB, EMB, HID, OUT,
                                          n_layers=NLAYERS)
    params = prepare_params(raw_params, HID)

    text = jax.random.randint(k_text, (B, T), 0, VOCAB, dtype=jnp.int32)
    emoji_feature = jax.random.normal(k_emoji, (B, 3), jnp.float32)

    fwd = jax.jit(functools.partial(bilstm_sentiment_forward, output_dim=OUT))
    logits = jax.block_until_ready(fwd(params, text, emoji_feature))

    assert logits.shape == (B, OUT) and logits.dtype == jnp.float32
    assert bool(jnp.all(jnp.isfinite(logits)))
    print("KERNEL_OK")
</pallas_src>

<mosaic_0001>
module attributes {stable_mosaic.version = 11 : i64} {
  func.func @kernel(%arg0: memref<64x1xi32, #tpu.memory_space<vmem>>, %arg1: memref<50x32xf32, #tpu.memory_space<vmem>>, %arg2: memref<32x256xbf16, #tpu.memory_space<vmem>>, %arg3: memref<64x256xbf16, #tpu.memory_space<vmem>>, %arg4: memref<1x256xf32, #tpu.memory_space<vmem>>, %arg5: memref<64x256xbf16, #tpu.memory_space<vmem>>, %arg6: memref<64x256xbf16, #tpu.memory_space<vmem>>, %arg7: memref<1x256xf32, #tpu.memory_space<vmem>>, %arg8: memref<8x3xf32, #tpu.memory_space<vmem>>, %arg9: memref<64x128xbf16, #tpu.memory_space<vmem>>, %arg10: memref<3x128xf32, #tpu.memory_space<vmem>>, %arg11: memref<1x128xf32, #tpu.memory_space<vmem>>, %arg12: memref<8x128xf32, #tpu.memory_space<vmem>>) attributes {dimension_semantics = [], scalar_prefetch = 0 : i64, scratch_operands = 0 : i64, tpu.core_type = #tpu.core_type<tc>} {
    %c0 = arith.constant 0 : index
    %c0_0 = arith.constant 0 : index
    %0 = vector.load %arg0[%c0, %c0_0] : memref<64x1xi32, #tpu.memory_space<vmem>>, vector<64x1xi32>
    %1 = tpu.iota {dimensions = array<i32: 1>} : vector<64x50xi32>
    %2 = vector.broadcast %0 : vector<64x1xi32> to vector<64x50xi32>
    %3 = arith.cmpi eq, %2, %1 : vector<64x50xi32>
    %4 = arith.extui %3 : vector<64x50xi1> to vector<64x50xi32>
    %5 = arith.sitofp %4 : vector<64x50xi32> to vector<64x50xf32>
    %c0_1 = arith.constant 0 : index
    %c0_2 = arith.constant 0 : index
    %6 = vector.load %arg1[%c0_1, %c0_2] : memref<50x32xf32, #tpu.memory_space<vmem>>, vector<50x32xf32>
    %cst = arith.constant dense<0.000000e+00> : vector<64x32xf32>
    %7 = tpu.matmul %5, %6, %cst {dimension_numbers = #tpu.dot_dimension_numbers<[1], [0], [0], [1], [0, 0, 1, 1], [], []>} : vector<64x50xf32>, vector<50x32xf32>, vector<64x32xf32> -> vector<64x32xf32>
    %8 = arith.truncf %7 : vector<64x32xf32> to vector<64x32xbf16>
    %c0_3 = arith.constant 0 : index
    %c0_4 = arith.constant 0 : index
    %9 = vector.load %arg2[%c0_3, %c0_4] : memref<32x256xbf16, #tpu.memory_space<vmem>>, vector<32x256xbf16>
    %cst_5 = arith.constant dense<0.000000e+00> : vector<64x256xf32>
    %10 = tpu.matmul %8, %9, %cst_5 {dimension_numbers = #tpu.dot_dimension_numbers<[1], [0], [0], [1], [0, 0, 1, 1], [], []>} : vector<64x32xbf16>, vector<32x256xbf16>, vector<64x256xf32> -> vector<64x256xf32>
    %c0_6 = arith.constant 0 : index
    %c0_7 = arith.constant 0 : index
    %11 = vector.load %arg4[%c0_6, %c0_7] : memref<1x256xf32, #tpu.memory_space<vmem>>, vector<1x256xf32>
    %12 = vector.broadcast %11 : vector<1x256xf32> to vector<64x256xf32>
    %13 = arith.addf %10, %12 : vector<64x256xf32>
    %c0_8 = arith.constant 0 : index
    %c0_9 = arith.constant 0 : index
    %14 = vector.load %arg3[%c0_8, %c0_9] : memref<64x256xbf16, #tpu.memory_space<vmem>>, vector<64x256xbf16>
    %cst_10 = arith.constant 0.000000e+00 : f32
    %15 = vector.broadcast %cst_10 : f32 to vector<8x32xf32>
    %cst_11 = arith.constant 0.000000e+00 : f32
    %16 = vector.broadcast %cst_11 : f32 to vector<8x32xf32>
    %17 = vector.extract_strided_slice %13 {offsets = [0, 0], sizes = [8, 128], strides = [1, 1]} : vector<64x256xf32> to vector<8x128xf32>
    %18 = vector.extract_strided_slice %13 {offsets = [56, 128], sizes = [8, 128], strides = [1, 1]} : vector<64x256xf32> to vector<8x128xf32>
    %19 = arith.negf %17 : vector<8x128xf32>
    %20 = math.exp %19 : vector<8x128xf32>
    %cst_12 = arith.constant 1.000000e+00 : f32
    %21 = vector.broadcast %cst_12 : f32 to vector<8x128xf32>
    %22 = arith.addf %21, %20 : vector<8x128xf32>
    %23 = arith.divf %21, %22 : vector<8x128xf32>
    %24 = vector.extract_strided_slice %23 {offsets = [0, 0], sizes = [8, 32], strides = [1, 1]} : vector<8x128xf32> to vector<8x32xf32>
    %25 = vector.extract_strided_slice %23 {offsets = [0, 32], sizes = [8, 32], strides = [1, 1]} : vector<8x128xf32> to vector<8x32xf32>
    %26 = vector.extract_strided_slice %23 {offsets = [0, 64], sizes = [8, 32], strides = [1, 1]} : vector<8x128xf32> to vector<8x32xf32>
    %cst_13 = arith.constant 2.000000e+00 : f32
    %27 = vector.broadcast %cst_13 : f32 to vector<8x32xf32>
    %28 = arith.mulf %27, %26 : vector<8x32xf32>
    %cst_14 = arith.constant 1.000000e+00 : f32
    %29 = vector.broadcast %cst_14 : f32 to vector<8x32xf32>
    %30 = arith.subf %28, %29 : vector<8x32xf32>
    %31 = vector.extract_strided_slice %23 {offsets = [0, 96], sizes = [8, 32], strides = [1, 1]} : vector<8x128xf32> to vector<8x32xf32>
    %32 = arith.mulf %25, %15 : vector<8x32xf32>
    %33 = arith.mulf %24, %30 : vector<8x32xf32>
    %34 = arith.addf %32, %33 : vector<8x32xf32>
    %35 = math.tanh %34 : vector<8x32xf32>
    %36 = arith.mulf %31, %35 : vector<8x32xf32>
    %37 = arith.negf %18 : vector<8x128xf32>
    %38 = math.exp %37 : vector<8x128xf32>
    %cst_15 = arith.constant 1.000000e+00 : f32
    %39 = vector.broadcast %cst_15 : f32 to vector<8x128xf32>
    %40 = arith.addf %39, %38 : vector<8x128xf32>
    %41 = arith.divf %39, %40 : vector<8x128xf32>
    %42 = vector.extract_strided_slice %41 {offsets = [0, 0], sizes = [8, 32], strides = [1, 1]} : vector<8x128xf32> to vector<8x32xf32>
    %43 = vector.extract_strided_slice %41 {offsets = [0, 32], sizes = [8, 32], strides = [1, 1]} : vector<8x128xf32> to vector<8x32xf32>
    %44 = vector.extract_strided_slice %41 {offsets = [0, 64], sizes = [8, 32], strides = [1, 1]} : vector<8x128xf32> to vector<8x32xf32>
    %cst_16 = arith.constant 2.000000e+00 : f32
    %45 = vector.broadcast %cst_16 : f32 to vector<8x32xf32>
    %46 = arith.mulf %45, %44 : vector<8x32xf32>
    %cst_17 = arith.constant 1.000000e+00 : f32
    %47 = vector.broadcast %cst_17 : f32 to vector<8x32xf32>
    %48 = arith.subf %46, %47 : vector<8x32xf32>
    %49 = vector.extract_strided_slice %41 {offsets = [0, 96], sizes = [8, 32], strides = [1, 1]} : vector<8x128xf32> to vector<8x32xf32>
    %50 = arith.mulf %43, %16 : vector<8x32xf32>
    %51 = arith.mulf %42, %48 : vector<8x32xf32>
    %52 = arith.addf %50, %51 : vector<8x32xf32>
    %53 = math.tanh %52 : vector<8x32xf32>
    %54 = arith.mulf %49, %53 : vector<8x32xf32>
    %55 = tpu.concatenate %36, %54 in 1 : vector<8x32xf32>, vector<8x32xf32> -> vector<8x64xf32>
    %56 = vector.extract_strided_slice %13 {offsets = [8, 0], sizes = [8, 128], strides = [1, 1]} : vector<64x256xf32> to vector<8x128xf32>
    %57 = vector.extract_strided_slice %13 {offsets = [48, 128], sizes = [8, 128], strides = [1, 1]} : vector<64x256xf32> to vector<8x128xf32>
    %58 = arith.truncf %55 : vector<8x64xf32> to vector<8x64xbf16>
    %cst_18 = arith.constant dense<0.000000e+00> : vector<8x256xf32>
    %59 = tpu.matmul %58, %14, %cst_18 {dimension_numbers = #tpu.dot_dimension_numbers<[1], [0], [0], [1], [0, 0, 1, 1], [], []>} : vector<8x64xbf16>, vector<64x256xbf16>, vector<8x256xf32> -> vector<8x256xf32>
    %60 = vector.extract_strided_slice %59 {offsets = [0, 0], sizes = [8, 128], strides = [1, 1]} : vector<8x256xf32> to vector<8x128xf32>
    %61 = arith.addf %56, %60 : vector<8x128xf32>
    %62 = vector.extract_strided_slice %59 {offsets = [0, 128], sizes = [8, 128], strides = [1, 1]} : vector<8x256xf32> to vector<8x128xf32>
    %63 = arith.addf %57, %62 : vector<8x128xf32>
    %64 = arith.negf %61 : vector<8x128xf32>
    %65 = math.exp %64 : vector<8x128xf32>
    %cst_19 = arith.constant 1.000000e+00 : f32
    %66 = vector.broadcast %cst_19 : f32 to vector<8x128xf32>
    %67 = arith.addf %66, %65 : vector<8x128xf32>
    %68 = arith.divf %66, %67 : vector<8x128xf32>
    %69 = vector.extract_strided_slice %68 {offsets = [0, 0], sizes = [8, 32], strides = [1, 1]} : vector<8x128xf32> to vector<8x32xf32>
    %70 = vector.extract_strided_slice %68 {offsets = [0, 32], sizes = [8, 32], strides = [1, 1]} : vector<8x128xf32> to vector<8x32xf32>
    %71 = vector.extract_strided_slice %68 {offsets = [0, 64], sizes = [8, 32], strides = [1, 1]} : vector<8x128xf32> to vector<8x32xf32>
    %cst_20 = arith.constant 2.000000e+00 : f32
    %72 = vector.broadcast %cst_20 : f32 to vector<8x32xf32>
    %73 = arith.mulf %72, %71 : vector<8x32xf32>
    %cst_21 = arith.constant 1.000000e+00 : f32
    %74 = vector.broadcast %cst_21 : f32 to vector<8x32xf32>
    %75 = arith.subf %73, %74 : vector<8x32xf32>
    %76 = vector.extract_strided_slice %68 {offsets = [0, 96], sizes = [8, 32], strides = [1, 1]} : vector<8x128xf32> to vector<8x32xf32>
    %77 = arith.mulf %70, %34 : vector<8x32xf32>
    %78 = arith.mulf %69, %75 : vector<8x32xf32>
    %79 = arith.addf %77, %78 : vector<8x32xf32>
    %80 = math.tanh %79 : vector<8x32xf32>
    %81 = arith.mulf %76, %80 : vector<8x32xf32>
    %82 = arith.negf %63 : vector<8x128xf32>
    %83 = math.exp %82 : vector<8x128xf32>
    %cst_22 = arith.constant 1.000000e+00 : f32
    %84 = vector.broadcast %cst_22 : f32 to vector<8x128xf32>
    %85 = arith.addf %84, %83 : vector<8x128xf32>
    %86 = arith.divf %84, %85 : vector<8x128xf32>
    %87 = vector.extract_strided_slice %86 {offsets = [0, 0], sizes = [8, 32], strides = [1, 1]} : vector<8x128xf32> to vector<8x32xf32>
    %88 = vector.extract_strided_slice %86 {offsets = [0, 32], sizes = [8, 32], strides = [1, 1]} : vector<8x128xf32> to vector<8x32xf32>
    %89 = vector.extract_strided_slice %86 {offsets = [0, 64], sizes = [8, 32], strides = [1, 1]} : vector<8x128xf32> to vector<8x32xf32>
    %cst_23 = arith.constant 2.000000e+00 : f32
    %90 = vector.broadcast %cst_23 : f32 to vector<8x32xf32>
    %91 = arith.mulf %90, %89 : vector<8x32xf32>
    %cst_24 = arith.constant 1.000000e+00 : f32
    %92 = vector.broadcast %cst_24 : f32 to vector<8x32xf32>
    %93 = arith.subf %91, %92 : vector<8x32xf32>
    %94 = vector.extract_strided_slice %86 {offsets = [0, 96], sizes = [8, 32], strides = [1, 1]} : vector<8x128xf32> to vector<8x32xf32>
    %95 = arith.mulf %88, %52 : vector<8x32xf32>
    %96 = arith.mulf %87, %93 : vector<8x32xf32>
    %97 = arith.addf %95, %96 : vector<8x32xf32>
    %98 = math.tanh %97 : vector<8x32xf32>
    %99 = arith.mulf %94, %98 : vector<8x32xf32>
    %100 = tpu.concatenate %81, %99 in 1 : vector<8x32xf32>, vector<8x32xf32> -> vector<8x64xf32>
    %101 = vector.extract_strided_slice %13 {offsets = [16, 0], sizes = [8, 128], strides = [1, 1]} : vector<64x256xf32> to vector<8x128xf32>
    %102 = vector.extract_strided_slice %13 {offsets = [40, 128], sizes = [8, 128], strides = [1, 1]} : vector<64x256xf32> to vector<8x128xf32>
    %103 = arith.truncf %100 : vector<8x64xf32> to vector<8x64xbf16>
    %cst_25 = arith.constant dense<0.000000e+00> : vector<8x256xf32>
    %104 = tpu.matmul %103, %14, %cst_25 {dimension_numbers = #tpu.dot_dimension_numbers<[1], [0], [0], [1], [0, 0, 1, 1], [], []>} : vector<8x64xbf16>, vector<64x256xbf16>, vector<8x256xf32> -> vector<8x256xf32>
    %105 = vector.extract_strided_slice %104 {offsets = [0, 0], sizes = [8, 128], strides = [1, 1]} : vector<8x256xf32> to vector<8x128xf32>
    %106 = arith.addf %101, %105 : vector<8x128xf32>
    %107 = vector.extract_strided_slice %104 {offsets = [0, 128], sizes = [8, 128], strides = [1, 1]} : vector<8x256xf32> to vector<8x128xf32>
    %108 = arith.addf %102, %107 : vector<8x128xf32>
    %109 = arith.negf %106 : vector<8x128xf32>
    %110 = math.exp %109 : vector<8x128xf32>
    %cst_26 = arith.constant 1.000000e+00 : f32
    %111 = vector.broadcast %cst_26 : f32 to vector<8x128xf32>
    %112 = arith.addf %111, %110 : vector<8x128xf32>
    %113 = arith.divf %111, %112 : vector<8x128xf32>
    %114 = vector.extract_strided_slice %113 {offsets = [0, 0], sizes = [8, 32], strides = [1, 1]} : vector<8x128xf32> to vector<8x32xf32>
    %115 = vector.extract_strided_slice %113 {offsets = [0, 32], sizes = [8, 32], strides = [1, 1]} : vector<8x128xf32> to vector<8x32xf32>
    %116 = vector.extract_strided_slice %113 {offsets = [0, 64], sizes = [8, 32], strides = [1, 1]} : vector<8x128xf32> to vector<8x32xf32>
    %cst_27 = arith.constant 2.000000e+00 : f32
    %117 = vector.broadcast %cst_27 : f32 to vector<8x32xf32>
    %118 = arith.mulf %117, %116 : vector<8x32xf32>
    %cst_28 = arith.constant 1.000000e+00 : f32
    %119 = vector.broadcast %cst_28 : f32 to vector<8x32xf32>
    %120 = arith.subf %118, %119 : vector<8x32xf32>
    %121 = vector.extract_strided_slice %113 {offsets = [0, 96], sizes = [8, 32], strides = [1, 1]} : vector<8x128xf32> to vector<8x32xf32>
    %122 = arith.mulf %115, %79 : vector<8x32xf32>
    %123 = arith.mulf %114, %120 : vector<8x32xf32>
    %124 = arith.addf %122, %123 : vector<8x32xf32>
    %125 = math.tanh %124 : vector<8x32xf32>
    %126 = arith.mulf %121, %125 : vector<8x32xf32>
    %127 = arith.negf %108 : vector<8x128xf32>
    %128 = math.exp %127 : vector<8x128xf32>
    %cst_29 = arith.constant 1.000000e+00 : f32
    %129 = vector.broadcast %cst_29 : f32 to vector<8x128xf32>
    %130 = arith.addf %129, %128 : vector<8x128xf32>
    %131 = arith.divf %129, %130 : vector<8x128xf32>
    %132 = vector.extract_strided_slice %131 {offsets = [0, 0], sizes = [8, 32], strides = [1, 1]} : vector<8x128xf32> to vector<8x32xf32>
    %133 = vector.extract_strided_slice %131 {offsets = [0, 32], sizes = [8, 32], strides = [1, 1]} : vector<8x128xf32> to vector<8x32xf32>
    %134 = vector.extract_strided_slice %131 {offsets = [0, 64], sizes = [8, 32], strides = [1, 1]} : vector<8x128xf32> to vector<8x32xf32>
    %cst_30 = arith.constant 2.000000e+00 : f32
    %135 = vector.broadcast %cst_30 : f32 to vector<8x32xf32>
    %136 = arith.mulf %135, %134 : vector<8x32xf32>
    %cst_31 = arith.constant 1.000000e+00 : f32
    %137 = vector.broadcast %cst_31 : f32 to vector<8x32xf32>
    %138 = arith.subf %136, %137 : vector<8x32xf32>
    %139 = vector.extract_strided_slice %131 {offsets = [0, 96], sizes = [8, 32], strides = [1, 1]} : vector<8x128xf32> to vector<8x32xf32>
    %140 = arith.mulf %133, %97 : vector<8x32xf32>
    %141 = arith.mulf %132, %138 : vector<8x32xf32>
    %142 = arith.addf %140, %141 : vector<8x32xf32>
    %143 = math.tanh %142 : vector<8x32xf32>
    %144 = arith.mulf %139, %143 : vector<8x32xf32>
    %145 = tpu.concatenate %126, %144 in 1 : vector<8x32xf32>, vector<8x32xf32> -> vector<8x64xf32>
    %146 = vector.extract_strided_slice %13 {offsets = [24, 0], sizes = [8, 128], strides = [1, 1]} : vector<64x256xf32> to vector<8x128xf32>
    %147 = vector.extract_strided_slice %13 {offsets = [32, 128], sizes = [8, 128], strides = [1, 1]} : vector<64x256xf32> to vector<8x128xf32>
    %148 = arith.truncf %145 : vector<8x64xf32> to vector<8x64xbf16>
    %cst_32 = arith.constant dense<0.000000e+00> : vector<8x256xf32>
    %149 = tpu.matmul %148, %14, %cst_32 {dimension_numbers = #tpu.dot_dimension_numbers<[1], [0], [0], [1], [0, 0, 1, 1], [], []>} : vector<8x64xbf16>, vector<64x256xbf16>, vector<8x256xf32> -> vector<8x256xf32>
    %150 = vector.extract_strided_slice %149 {offsets = [0, 0], sizes = [8, 128], strides = [1, 1]} : vector<8x256xf32> to vector<8x128xf32>
    %151 = arith.addf %146, %150 : vector<8x128xf32>
    %152 = vector.extract_strided_slice %149 {offsets = [0, 128], sizes = [8, 128], strides = [1, 1]} : vector<8x256xf32> to vector<8x128xf32>
    %153 = arith.addf %147, %152 : vector<8x128xf32>
    %154 = arith.negf %151 : vector<8x128xf32>
    %155 = math.exp %154 : vector<8x128xf32>
    %cst_33 = arith.constant 1.000000e+00 : f32
    %156 = vector.broadcast %cst_33 : f32 to vector<8x128xf32>
    %157 = arith.addf %156, %155 : vector<8x128xf32>
    %158 = arith.divf %156, %157 : vector<8x128xf32>
    %159 = vector.extract_strided_slice %158 {offsets = [0, 0], sizes = [8, 32], strides = [1, 1]} : vector<8x128xf32> to vector<8x32xf32>
    %160 = vector.extract_strided_slice %158 {offsets = [0, 32], sizes = [8, 32], strides = [1, 1]} : vector<8x128xf32> to vector<8x32xf32>
    %161 = vector.extract_strided_slice %158 {offsets = [0, 64], sizes = [8, 32], strides = [1, 1]} : vector<8x128xf32> to vector<8x32xf32>
    %cst_34 = arith.constant 2.000000e+00 : f32
    %162 = vector.broadcast %cst_34 : f32 to vector<8x32xf32>
    %163 = arith.mulf %162, %161 : vector<8x32xf32>
    %cst_35 = arith.constant 1.000000e+00 : f32
    %164 = vector.broadcast %cst_35 : f32 to vector<8x32xf32>
    %165 = arith.subf %163, %164 : vector<8x32xf32>
    %166 = vector.extract_strided_slice %158 {offsets = [0, 96], sizes = [8, 32], strides = [1, 1]} : vector<8x128xf32> to vector<8x32xf32>
    %167 = arith.mulf %160, %124 : vector<8x32xf32>
    %168 = arith.mulf %159, %165 : vector<8x32xf32>
    %169 = arith.addf %167, %168 : vector<8x32xf32>
    %170 = math.tanh %169 : vector<8x32xf32>
    %171 = arith.mulf %166, %170 : vector<8x32xf32>
    %172 = arith.negf %153 : vector<8x128xf32>
    %173 = math.exp %172 : vector<8x128xf32>
    %cst_36 = arith.constant 1.000000e+00 : f32
    %174 = vector.broadcast %cst_36 : f32 to vector<8x128xf32>
    %175 = arith.addf %174, %173 : vector<8x128xf32>
    %176 = arith.divf %174, %175 : vector<8x128xf32>
    %177 = vector.extract_strided_slice %176 {offsets = [0, 0], sizes = [8, 32], strides = [1, 1]} : vector<8x128xf32> to vector<8x32xf32>
    %178 = vector.extract_strided_slice %176 {offsets = [0, 32], sizes = [8, 32], strides = [1, 1]} : vector<8x128xf32> to vector<8x32xf32>
    %179 = vector.extract_strided_slice %176 {offsets = [0, 64], sizes = [8, 32], strides = [1, 1]} : vector<8x128xf32> to vector<8x32xf32>
    %cst_37 = arith.constant 2.000000e+00 : f32
    %180 = vector.broadcast %cst_37 : f32 to vector<8x32xf32>
    %181 = arith.mulf %180, %179 : vector<8x32xf32>
    %cst_38 = arith.constant 1.000000e+00 : f32
    %182 = vector.broadcast %cst_38 : f32 to vector<8x32xf32>
    %183 = arith.subf %181, %182 : vector<8x32xf32>
    %184 = vector.extract_strided_slice %176 {offsets = [0, 96], sizes = [8, 32], strides = [1, 1]} : vector<8x128xf32> to vector<8x32xf32>
    %185 = arith.mulf %178, %142 : vector<8x32xf32>
    %186 = arith.mulf %177, %183 : vector<8x32xf32>
    %187 = arith.addf %185, %186 : vector<8x32xf32>
    %188 = math.tanh %187 : vector<8x32xf32>
    %189 = arith.mulf %184, %188 : vector<8x32xf32>
    %190 = tpu.concatenate %171, %189 in 1 : vector<8x32xf32>, vector<8x32xf32> -> vector<8x64xf32>
    %191 = vector.extract_strided_slice %13 {offsets = [32, 0], sizes = [8, 128], strides = [1, 1]} : vector<64x256xf32> to vector<8x128xf32>
    %192 = vector.extract_strided_slice %13 {offsets = [24, 128], sizes = [8, 128], strides = [1, 1]} : vector<64x256xf32> to vector<8x128xf32>
    %193 = arith.truncf %190 : vector<8x64xf32> to vector<8x64xbf16>
    %cst_39 = arith.constant dense<0.000000e+00> : vector<8x256xf32>
    %194 = tpu.matmul %193, %14, %cst_39 {dimension_numbers = #tpu.dot_dimension_numbers<[1], [0], [0], [1], [0, 0, 1, 1], [], []>} : vector<8x64xbf16>, vector<64x256xbf16>, vector<8x256xf32> -> vector<8x256xf32>
    %195 = vector.extract_strided_slice %194 {offsets = [0, 0], sizes = [8, 128], strides = [1, 1]} : vector<8x256xf32> to vector<8x128xf32>
    %196 = arith.addf %191, %195 : vector<8x128xf32>
    %197 = vector.extract_strided_slice %194 {offsets = [0, 128], sizes = [8, 128], strides = [1, 1]} : vector<8x256xf32> to vector<8x128xf32>
    %198 = arith.addf %192, %197 : vector<8x128xf32>
    %199 = arith.negf %196 : vector<8x128xf32>
    %200 = math.exp %199 : vector<8x128xf32>
    %cst_40 = arith.constant 1.000000e+00 : f32
    %201 = vector.broadcast %cst_40 : f32 to vector<8x128xf32>
    %202 = arith.addf %201, %200 : vector<8x128xf32>
    %203 = arith.divf %201, %202 : vector<8x128xf32>
    %204 = vector.extract_strided_slice %203 {offsets = [0, 0], sizes = [8, 32], strides = [1, 1]} : vector<8x128xf32> to vector<8x32xf32>
    %205 = vector.extract_strided_slice %203 {offsets = [0, 32], sizes = [8, 32], strides = [1, 1]} : vector<8x128xf32> to vector<8x32xf32>
    %206 = vector.extract_strided_slice %203 {offsets = [0, 64], sizes = [8, 32], strides = [1, 1]} : vector<8x128xf32> to vector<8x32xf32>
    %cst_41 = arith.constant 2.000000e+00 : f32
    %207 = vector.broadcast %cst_41 : f32 to vector<8x32xf32>
    %208 = arith.mulf %207, %206 : vector<8x32xf32>
    %cst_42 = arith.constant 1.000000e+00 : f32
    %209 = vector.broadcast %cst_42 : f32 to vector<8x32xf32>
    %210 = arith.subf %208, %209 : vector<8x32xf32>
    %211 = vector.extract_strided_slice %203 {offsets = [0, 96], sizes = [8, 32], strides = [1, 1]} : vector<8x128xf32> to vector<8x32xf32>
    %212 = arith.mulf %205, %169 : vector<8x32xf32>
    %213 = arith.mulf %204, %210 : vector<8x32xf32>
    %214 = arith.addf %212, %213 : vector<8x32xf32>
    %215 = math.tanh %214 : vector<8x32xf32>
    %216 = arith.mulf %211, %215 : vector<8x32xf32>
    %217 = arith.negf %198 : vector<8x128xf32>
    %218 = math.exp %217 : vector<8x128xf32>
    %cst_43 = arith.constant 1.000000e+00 : f32
    %219 = vector.broadcast %cst_43 : f32 to vector<8x128xf32>
    %220 = arith.addf %219, %218 : vector<8x128xf32>
    %221 = arith.divf %219, %220 : vector<8x128xf32>
    %222 = vector.extract_strided_slice %221 {offsets = [0, 0], sizes = [8, 32], strides = [1, 1]} : vector<8x128xf32> to vector<8x32xf32>
    %223 = vector.extract_strided_slice %221 {offsets = [0, 32], sizes = [8, 32], strides = [1, 1]} : vector<8x128xf32> to vector<8x32xf32>
    %224 = vector.extract_strided_slice %221 {offsets = [0, 64], sizes = [8, 32], strides = [1, 1]} : vector<8x128xf32> to vector<8x32xf32>
    %cst_44 = arith.constant 2.000000e+00 : f32
    %225 = vector.broadcast %cst_44 : f32 to vector<8x32xf32>
    %226 = arith.mulf %225, %224 : vector<8x32xf32>
    %cst_45 = arith.constant 1.000000e+00 : f32
    %227 = vector.broadcast %cst_45 : f32 to vector<8x32xf32>
    %228 = arith.subf %226, %227 : vector<8x32xf32>
    %229 = vector.extract_strided_slice %221 {offsets = [0, 96], sizes = [8, 32], strides = [1, 1]} : vector<8x128xf32> to vector<8x32xf32>
    %230 = arith.mulf %223, %187 : vector<8x32xf32>
    %231 = arith.mulf %222, %228 : vector<8x32xf32>
    %232 = arith.addf %230, %231 : vector<8x32xf32>
    %233 = math.tanh %232 : vector<8x32xf32>
    %234 = arith.mulf %229, %233 : vector<8x32xf32>
    %235 = tpu.concatenate %216, %234 in 1 : vector<8x32xf32>, vector<8x32xf32> -> vector<8x64xf32>
    %236 = vector.extract_strided_slice %13 {offsets = [40, 0], sizes = [8, 128], strides = [1, 1]} : vector<64x256xf32> to vector<8x128xf32>
    %237 = vector.extract_strided_slice %13 {offsets = [16, 128], sizes = [8, 128], strides = [1, 1]} : vector<64x256xf32> to vector<8x128xf32>
    %238 = arith.truncf %235 : vector<8x64xf32> to vector<8x64xbf16>
    %cst_46 = arith.constant dense<0.000000e+00> : vector<8x256xf32>
    %239 = tpu.matmul %238, %14, %cst_46 {dimension_numbers = #tpu.dot_dimension_numbers<[1], [0], [0], [1], [0, 0, 1, 1], [], []>} : vector<8x64xbf16>, vector<64x256xbf16>, vector<8x256xf32> -> vector<8x256xf32>
    %240 = vector.extract_strided_slice %239 {offsets = [0, 0], sizes = [8, 128], strides = [1, 1]} : vector<8x256xf32> to vector<8x128xf32>
    %241 = arith.addf %236, %240 : vector<8x128xf32>
    %242 = vector.extract_strided_slice %239 {offsets = [0, 128], sizes = [8, 128], strides = [1, 1]} : vector<8x256xf32> to vector<8x128xf32>
    %243 = arith.addf %237, %242 : vector<8x128xf32>
    %244 = arith.negf %241 : vector<8x128xf32>
    %245 = math.exp %244 : vector<8x128xf32>
    %cst_47 = arith.constant 1.000000e+00 : f32
    %246 = vector.broadcast %cst_47 : f32 to vector<8x128xf32>
    %247 = arith.addf %246, %245 : vector<8x128xf32>
    %248 = arith.divf %246, %247 : vector<8x128xf32>
    %249 = vector.extract_strided_slice %248 {offsets = [0, 0], sizes = [8, 32], strides = [1, 1]} : vector<8x128xf32> to vector<8x32xf32>
    %250 = vector.extract_strided_slice %248 {offsets = [0, 32], sizes = [8, 32], strides = [1, 1]} : vector<8x128xf32> to vector<8x32xf32>
    %251 = vector.extract_strided_slice %248 {offsets = [0, 64], sizes = [8, 32], strides = [1, 1]} : vector<8x128xf32> to vector<8x32xf32>
    %cst_48 = arith.constant 2.000000e+00 : f32
    %252 = vector.broadcast %cst_48 : f32 to vector<8x32xf32>
    %253 = arith.mulf %252, %251 : vector<8x32xf32>
    %cst_49 = arith.constant 1.000000e+00 : f32
    %254 = vector.broadcast %cst_49 : f32 to vector<8x32xf32>
    %255 = arith.subf %253, %254 : vector<8x32xf32>
    %256 = vector.extract_strided_slice %248 {offsets = [0, 96], sizes = [8, 32], strides = [1, 1]} : vector<8x128xf32> to vector<8x32xf32>
    %257 = arith.mulf %250, %214 : vector<8x32xf32>
    %258 = arith.mulf %249, %255 : vector<8x32xf32>
    %259 = arith.addf %257, %258 : vector<8x32xf32>
    %260 = math.tanh %259 : vector<8x32xf32>
    %261 = arith.mulf %256, %260 : vector<8x32xf32>
    %262 = arith.negf %243 : vector<8x128xf32>
    %263 = math.exp %262 : vector<8x128xf32>
    %cst_50 = arith.constant 1.000000e+00 : f32
    %264 = vector.broadcast %cst_50 : f32 to vector<8x128xf32>
    %265 = arith.addf %264, %263 : vector<8x128xf32>
    %266 = arith.divf %264, %265 : vector<8x128xf32>
    %267 = vector.extract_strided_slice %266 {offsets = [0, 0], sizes = [8, 32], strides = [1, 1]} : vector<8x128xf32> to vector<8x32xf32>
    %268 = vector.extract_strided_slice %266 {offsets = [0, 32], sizes = [8, 32], strides = [1, 1]} : vector<8x128xf32> to vector<8x32xf32>
    %269 = vector.extract_strided_slice %266 {offsets = [0, 64], sizes = [8, 32], strides = [1, 1]} : vector<8x128xf32> to vector<8x32xf32>
    %cst_51 = arith.constant 2.000000e+00 : f32
    %270 = vector.broadcast %cst_51 : f32 to vector<8x32xf32>
    %271 = arith.mulf %270, %269 : vector<8x32xf32>
    %cst_52 = arith.constant 1.000000e+00 : f32
    %272 = vector.broadcast %cst_52 : f32 to vector<8x32xf32>
    %273 = arith.subf %271, %272 : vector<8x32xf32>
    %274 = vector.extract_strided_slice %266 {offsets = [0, 96], sizes = [8, 32], strides = [1, 1]} : vector<8x128xf32> to vector<8x32xf32>
    %275 = arith.mulf %268, %232 : vector<8x32xf32>
    %276 = arith.mulf %267, %273 : vector<8x32xf32>
    %277 = arith.addf %275, %276 : vector<8x32xf32>
    %278 = math.tanh %277 : vector<8x32xf32>
    %279 = arith.mulf %274, %278 : vector<8x32xf32>
    %280 = tpu.concatenate %261, %279 in 1 : vector<8x32xf32>, vector<8x32xf32> -> vector<8x64xf32>
    %281 = vector.extract_strided_slice %13 {offsets = [48, 0], sizes = [8, 128], strides = [1, 1]} : vector<64x256xf32> to vector<8x128xf32>
    %282 = vector.extract_strided_slice %13 {offsets = [8, 128], sizes = [8, 128], strides = [1, 1]} : vector<64x256xf32> to vector<8x128xf32>
    %283 = arith.truncf %280 : vector<8x64xf32> to vector<8x64xbf16>
    %cst_53 = arith.constant dense<0.000000e+00> : vector<8x256xf32>
    %284 = tpu.matmul %283, %14, %cst_53 {dimension_numbers = #tpu.dot_dimension_numbers<[1], [0], [0], [1], [0, 0, 1, 1], [], []>} : vector<8x64xbf16>, vector<64x256xbf16>, vector<8x256xf32> -> vector<8x256xf32>
    %285 = vector.extract_strided_slice %284 {offsets = [0, 0], sizes = [8, 128], strides = [1, 1]} : vector<8x256xf32> to vector<8x128xf32>
    %286 = arith.addf %281, %285 : vector<8x128xf32>
    %287 = vector.extract_strided_slice %284 {offsets = [0, 128], sizes = [8, 128], strides = [1, 1]} : vector<8x256xf32> to vector<8x128xf32>
    %288 = arith.addf %282, %287 : vector<8x128xf32>
    %289 = arith.negf %286 : vector<8x128xf32>
    %290 = math.exp %289 : vector<8x128xf32>
    %cst_54 = arith.constant 1.000000e+00 : f32
    %291 = vector.broadcast %cst_54 : f32 to vector<8x128xf32>
    %292 = arith.addf %291, %290 : vector<8x128xf32>
    %293 = arith.divf %291, %292 : vector<8x128xf32>
    %294 = vector.extract_strided_slice %293 {offsets = [0, 0], sizes = [8, 32], strides = [1, 1]} : vector<8x128xf32> to vector<8x32xf32>
    %295 = vector.extract_strided_slice %293 {offsets = [0, 32], sizes = [8, 32], strides = [1, 1]} : vector<8x128xf32> to vector<8x32xf32>
    %296 = vector.extract_strided_slice %293 {offsets = [0, 64], sizes = [8, 32], strides = [1, 1]} : vector<8x128xf32> to vector<8x32xf32>
    %cst_55 = arith.constant 2.000000e+00 : f32
    %297 = vector.broadcast %cst_55 : f32 to vector<8x32xf32>
    %298 = arith.mulf %297, %296 : vector<8x32xf32>
    %cst_56 = arith.constant 1.000000e+00 : f32
    %299 = vector.broadcast %cst_56 : f32 to vector<8x32xf32>
    %300 = arith.subf %298, %299 : vector<8x32xf32>
    %301 = vector.extract_strided_slice %293 {offsets = [0, 96], sizes = [8, 32], strides = [1, 1]} : vector<8x128xf32> to vector<8x32xf32>
    %302 = arith.mulf %295, %259 : vector<8x32xf32>
    %303 = arith.mulf %294, %300 : vector<8x32xf32>
    %304 = arith.addf %302, %303 : vector<8x32xf32>
    %305 = math.tanh %304 : vector<8x32xf32>
    %306 = arith.mulf %301, %305 : vector<8x32xf32>
    %307 = arith.negf %288 : vector<8x128xf32>
    %308 = math.exp %307 : vector<8x128xf32>
    %cst_57 = arith.constant 1.000000e+00 : f32
    %309 = vector.broadcast %cst_57 : f32 to vector<8x128xf32>
    %310 = arith.addf %309, %308 : vector<8x128xf32>
    %311 = arith.divf %309, %310 : vector<8x128xf32>
    %312 = vector.extract_strided_slice %311 {offsets = [0, 0], sizes = [8, 32], strides = [1, 1]} : vector<8x128xf32> to vector<8x32xf32>
    %313 = vector.extract_strided_slice %311 {offsets = [0, 32], sizes = [8, 32], strides = [1, 1]} : vector<8x128xf32> to vector<8x32xf32>
    %314 = vector.extract_strided_slice %311 {offsets = [0, 64], sizes = [8, 32], strides = [1, 1]} : vector<8x128xf32> to vector<8x32xf32>
    %cst_58 = arith.constant 2.000000e+00 : f32
    %315 = vector.broadcast %cst_58 : f32 to vector<8x32xf32>
    %316 = arith.mulf %315, %314 : vector<8x32xf32>
    %cst_59 = arith.constant 1.000000e+00 : f32
    %317 = vector.broadcast %cst_59 : f32 to vector<8x32xf32>
    %318 = arith.subf %316, %317 : vector<8x32xf32>
    %319 = vector.extract_strided_slice %311 {offsets = [0, 96], sizes = [8, 32], strides = [1, 1]} : vector<8x128xf32> to vector<8x32xf32>
    %320 = arith.mulf %313, %277 : vector<8x32xf32>
    %321 = arith.mulf %312, %318 : vector<8x32xf32>
    %322 = arith.addf %320, %321 : vector<8x32xf32>
    %323 = math.tanh %322 : vector<8x32xf32>
    %324 = arith.mulf %319, %323 : vector<8x32xf32>
    %325 = tpu.concatenate %306, %324 in 1 : vector<8x32xf32>, vector<8x32xf32> -> vector<8x64xf32>
    %326 = vector.extract_strided_slice %13 {offsets = [56, 0], sizes = [8, 128], strides = [1, 1]} : vector<64x256xf32> to vector<8x128xf32>
    %327 = vector.extract_strided_slice %13 {offsets = [0, 128], sizes = [8, 128], strides = [1, 1]} : vector<64x256xf32> to vector<8x128xf32>
    %328 = arith.truncf %325 : vector<8x64xf32> to vector<8x64xbf16>
    %cst_60 = arith.constant dense<0.000000e+00> : vector<8x256xf32>
    %329 = tpu.matmul %328, %14, %cst_60 {dimension_numbers = #tpu.dot_dimension_numbers<[1], [0], [0], [1], [0, 0, 1, 1], [], []>} : vector<8x64xbf16>, vector<64x256xbf16>, vector<8x256xf32> -> vector<8x256xf32>
    %330 = vector.extract_strided_slice %329 {offsets = [0, 0], sizes = [8, 128], strides = [1, 1]} : vector<8x256xf32> to vector<8x128xf32>
    %331 = arith.addf %326, %330 : vector<8x128xf32>
    %332 = vector.extract_strided_slice %329 {offsets = [0, 128], sizes = [8, 128], strides = [1, 1]} : vector<8x256xf32> to vector<8x128xf32>
    %333 = arith.addf %327, %332 : vector<8x128xf32>
    %334 = arith.negf %331 : vector<8x128xf32>
    %335 = math.exp %334 : vector<8x128xf32>
    %cst_61 = arith.constant 1.000000e+00 : f32
    %336 = vector.broadcast %cst_61 : f32 to vector<8x128xf32>
    %337 = arith.addf %336, %335 : vector<8x128xf32>
    %338 = arith.divf %336, %337 : vector<8x128xf32>
    %339 = vector.extract_strided_slice %338 {offsets = [0, 0], sizes = [8, 32], strides = [1, 1]} : vector<8x128xf32> to vector<8x32xf32>
    %340 = vector.extract_strided_slice %338 {offsets = [0, 32], sizes = [8, 32], strides = [1, 1]} : vector<8x128xf32> to vector<8x32xf32>
    %341 = vector.extract_strided_slice %338 {offsets = [0, 64], sizes = [8, 32], strides = [1, 1]} : vector<8x128xf32> to vector<8x32xf32>
    %cst_62 = arith.constant 2.000000e+00 : f32
    %342 = vector.broadcast %cst_62 : f32 to vector<8x32xf32>
    %343 = arith.mulf %342, %341 : vector<8x32xf32>
    %cst_63 = arith.constant 1.000000e+00 : f32
    %344 = vector.broadcast %cst_63 : f32 to vector<8x32xf32>
    %345 = arith.subf %343, %344 : vector<8x32xf32>
    %346 = vector.extract_strided_slice %338 {offsets = [0, 96], sizes = [8, 32], strides = [1, 1]} : vector<8x128xf32> to vector<8x32xf32>
    %347 = arith.mulf %340, %304 : vector<8x32xf32>
    %348 = arith.mulf %339, %345 : vector<8x32xf32>
    %349 = arith.addf %347, %348 : vector<8x32xf32>
    %350 = math.tanh %349 : vector<8x32xf32>
    %351 = arith.mulf %346, %350 : vector<8x32xf32>
    %352 = arith.negf %333 : vector<8x128xf32>
    %353 = math.exp %352 : vector<8x128xf32>
    %cst_64 = arith.constant 1.000000e+00 : f32
    %354 = vector.broadcast %cst_64 : f32 to vector<8x128xf32>
    %355 = arith.addf %354, %353 : vector<8x128xf32>
    %356 = arith.divf %354, %355 : vector<8x128xf32>
    %357 = vector.extract_strided_slice %356 {offsets = [0, 0], sizes = [8, 32], strides = [1, 1]} : vector<8x128xf32> to vector<8x32xf32>
    %358 = vector.extract_strided_slice %356 {offsets = [0, 32], sizes = [8, 32], strides = [1, 1]} : vector<8x128xf32> to vector<8x32xf32>
    %359 = vector.extract_strided_slice %356 {offsets = [0, 64], sizes = [8, 32], strides = [1, 1]} : vector<8x128xf32> to vector<8x32xf32>
    %cst_65 = arith.constant 2.000000e+00 : f32
    %360 = vector.broadcast %cst_65 : f32 to vector<8x32xf32>
    %361 = arith.mulf %360, %359 : vector<8x32xf32>
    %cst_66 = arith.constant 1.000000e+00 : f32
    %362 = vector.broadcast %cst_66 : f32 to vector<8x32xf32>
    %363 = arith.subf %361, %362 : vector<8x32xf32>
    %364 = vector.extract_strided_slice %356 {offsets = [0, 96], sizes = [8, 32], strides = [1, 1]} : vector<8x128xf32> to vector<8x32xf32>
    %365 = arith.mulf %358, %322 : vector<8x32xf32>
    %366 = arith.mulf %357, %363 : vector<8x32xf32>
    %367 = arith.addf %365, %366 : vector<8x32xf32>
    %368 = math.tanh %367 : vector<8x32xf32>
    %369 = arith.mulf %364, %368 : vector<8x32xf32>
    %370 = tpu.concatenate %36, %369 in 1 : vector<8x32xf32>, vector<8x32xf32> -> vector<8x64xf32>
    %371 = tpu.concatenate %81, %324 in 1 : vector<8x32xf32>, vector<8x32xf32> -> vector<8x64xf32>
    %372 = tpu.concatenate %126, %279 in 1 : vector<8x32xf32>, vector<8x32xf32> -> vector<8x64xf32>
    %373 = tpu.concatenate %171, %234 in 1 : vector<8x32xf32>, vector<8x32xf32> -> vector<8x64xf32>
    %374 = tpu.concatenate %216, %189 in 1 : vector<8x32xf32>, vector<8x32xf32> -> vector<8x64xf32>
    %375 = tpu.concatenate %261, %144 in 1 : vector<8x32xf32>, vector<8x32xf32> -> vector<8x64xf32>
    %376 = tpu.concatenate %306, %99 in 1 : vector<8x32xf32>, vector<8x32xf32> -> vector<8x64xf32>
    %377 = tpu.concatenate %351, %54 in 1 : vector<8x32xf32>, vector<8x32xf32> -> vector<8x64xf32>
    %378 = tpu.concatenate %370, %371, %372, %373, %374, %375, %376, %377 in 0 : vector<8x64xf32>, vector<8x64xf32>, vector<8x64xf32>, vector<8x64xf32>, vector<8x64xf32>, vector<8x64xf32>, vector<8x64xf32>, vector<8x64xf32> -> vector<64x64xf32>
    %379 = arith.truncf %378 : vector<64x64xf32> to vector<64x64xbf16>
    %c0_67 = arith.constant 0 : index
    %c0_68 = arith.constant 0 : index
    %380 = vector.load %arg5[%c0_67, %c0_68] : memref<64x256xbf16, #tpu.memory_space<vmem>>, vector<64x256xbf16>
    %cst_69 = arith.constant dense<0.000000e+00> : vector<64x256xf32>
    %381 = tpu.matmul %379, %380, %cst_69 {dimension_numbers = #tpu.dot_dimension_numbers<[1], [0], [0], [1], [0, 0, 1, 1], [], []>} : vector<64x64xbf16>, vector<64x256xbf16>, vector<64x256xf32> -> vector<64x256xf32>
    %c0_70 = arith.constant 0 : index
    %c0_71 = arith.constant 0 : index
    %382 = vector.load %arg7[%c0_70, %c0_71] : memref<1x256xf32, #tpu.memory_space<vmem>>, vector<1x256xf32>
    %383 = vector.broadcast %382 : vector<1x256xf32> to vector<64x256xf32>
    %384 = arith.addf %381, %383 : vector<64x256xf32>
    %c0_72 = arith.constant 0 : index
    %c0_73 = arith.constant 0 : index
    %385 = vector.load %arg6[%c0_72, %c0_73] : memref<64x256xbf16, #tpu.memory_space<vmem>>, vector<64x256xbf16>
    %cst_74 = arith.constant 0.000000e+00 : f32
    %386 = vector.broadcast %cst_74 : f32 to vector<8x32xf32>
    %cst_75 = arith.constant 0.000000e+00 : f32
    %387 = vector.broadcast %cst_75 : f32 to vector<8x32xf32>
    %388 = vector.extract_strided_slice %384 {offsets = [0, 0], sizes = [8, 128], strides = [1, 1]} : vector<64x256xf32> to vector<8x128xf32>
    %389 = vector.extract_strided_slice %384 {offsets = [56, 128], sizes = [8, 128], strides = [1, 1]} : vector<64x256xf32> to vector<8x128xf32>
    %390 = arith.negf %388 : vector<8x128xf32>
    %391 = math.exp %390 : vector<8x128xf32>
    %cst_76 = arith.constant 1.000000e+00 : f32
    %392 = vector.broadcast %cst_76 : f32 to vector<8x128xf32>
    %393 = arith.addf %392, %391 : vector<8x128xf32>
    %394 = arith.divf %392, %393 : vector<8x128xf32>
    %395 = vector.extract_strided_slice %394 {offsets = [0, 0], sizes = [8, 32], strides = [1, 1]} : vector<8x128xf32> to vector<8x32xf32>
    %396 = vector.extract_strided_slice %394 {offsets = [0, 32], sizes = [8, 32], strides = [1, 1]} : vector<8x128xf32> to vector<8x32xf32>
    %397 = vector.extract_strided_slice %394 {offsets = [0, 64], sizes = [8, 32], strides = [1, 1]} : vector<8x128xf32> to vector<8x32xf32>
    %cst_77 = arith.constant 2.000000e+00 : f32
    %398 = vector.broadcast %cst_77 : f32 to vector<8x32xf32>
    %399 = arith.mulf %398, %397 : vector<8x32xf32>
    %cst_78 = arith.constant 1.000000e+00 : f32
    %400 = vector.broadcast %cst_78 : f32 to vector<8x32xf32>
    %401 = arith.subf %399, %400 : vector<8x32xf32>
    %402 = vector.extract_strided_slice %394 {offsets = [0, 96], sizes = [8, 32], strides = [1, 1]} : vector<8x128xf32> to vector<8x32xf32>
    %403 = arith.mulf %396, %386 : vector<8x32xf32>
    %404 = arith.mulf %395, %401 : vector<8x32xf32>
    %405 = arith.addf %403, %404 : vector<8x32xf32>
    %406 = math.tanh %405 : vector<8x32xf32>
    %407 = arith.mulf %402, %406 : vector<8x32xf32>
    %408 = arith.negf %389 : vector<8x128xf32>
    %409 = math.exp %408 : vector<8x128xf32>
    %cst_79 = arith.constant 1.000000e+00 : f32
    %410 = vector.broadcast %cst_79 : f32 to vector<8x128xf32>
    %411 = arith.addf %410, %409 : vector<8x128xf32>
    %412 = arith.divf %410, %411 : vector<8x128xf32>
    %413 = vector.extract_strided_slice %412 {offsets = [0, 0], sizes = [8, 32], strides = [1, 1]} : vector<8x128xf32> to vector<8x32xf32>
    %414 = vector.extract_strided_slice %412 {offsets = [0, 32], sizes = [8, 32], strides = [1, 1]} : vector<8x128xf32> to vector<8x32xf32>
    %415 = vector.extract_strided_slice %412 {offsets = [0, 64], sizes = [8, 32], strides = [1, 1]} : vector<8x128xf32> to vector<8x32xf32>
    %cst_80 = arith.constant 2.000000e+00 : f32
    %416 = vector.broadcast %cst_80 : f32 to vector<8x32xf32>
    %417 = arith.mulf %416, %415 : vector<8x32xf32>
    %cst_81 = arith.constant 1.000000e+00 : f32
    %418 = vector.broadcast %cst_81 : f32 to vector<8x32xf32>
    %419 = arith.subf %417, %418 : vector<8x32xf32>
    %420 = vector.extract_strided_slice %412 {offsets = [0, 96], sizes = [8, 32], strides = [1, 1]} : vector<8x128xf32> to vector<8x32xf32>
    %421 = arith.mulf %414, %387 : vector<8x32xf32>
    %422 = arith.mulf %413, %419 : vector<8x32xf32>
    %423 = arith.addf %421, %422 : vector<8x32xf32>
    %424 = math.tanh %423 : vector<8x32xf32>
    %425 = arith.mulf %420, %424 : vector<8x32xf32>
    %426 = tpu.concatenate %407, %425 in 1 : vector<8x32xf32>, vector<8x32xf32> -> vector<8x64xf32>
    %427 = vector.extract_strided_slice %384 {offsets = [8, 0], sizes = [8, 128], strides = [1, 1]} : vector<64x256xf32> to vector<8x128xf32>
    %428 = vector.extract_strided_slice %384 {offsets = [48, 128], sizes = [8, 128], strides = [1, 1]} : vector<64x256xf32> to vector<8x128xf32>
    %429 = arith.truncf %426 : vector<8x64xf32> to vector<8x64xbf16>
    %cst_82 = arith.constant dense<0.000000e+00> : vector<8x256xf32>
    %430 = tpu.matmul %429, %385, %cst_82 {dimension_numbers = #tpu.dot_dimension_numbers<[1], [0], [0], [1], [0, 0, 1, 1], [], []>} : vector<8x64xbf16>, vector<64x256xbf16>, vector<8x256xf32> -> vector<8x256xf32>
    %431 = vector.extract_strided_slice %430 {offsets = [0, 0], sizes = [8, 128], strides = [1, 1]} : vector<8x256xf32> to vector<8x128xf32>
    %432 = arith.addf %427, %431 : vector<8x128xf32>
    %433 = vector.extract_strided_slice %430 {offsets = [0, 128], sizes = [8, 128], strides = [1, 1]} : vector<8x256xf32> to vector<8x128xf32>
    %434 = arith.addf %428, %433 : vector<8x128xf32>
    %435 = arith.negf %432 : vector<8x128xf32>
    %436 = math.exp %435 : vector<8x128xf32>
    %cst_83 = arith.constant 1.000000e+00 : f32
    %437 = vector.broadcast %cst_83 : f32 to vector<8x128xf32>
    %438 = arith.addf %437, %436 : vector<8x128xf32>
    %439 = arith.divf %437, %438 : vector<8x128xf32>
    %440 = vector.extract_strided_slice %439 {offsets = [0, 0], sizes = [8, 32], strides = [1, 1]} : vector<8x128xf32> to vector<8x32xf32>
    %441 = vector.extract_strided_slice %439 {offsets = [0, 32], sizes = [8, 32], strides = [1, 1]} : vector<8x128xf32> to vector<8x32xf32>
    %442 = vector.extract_strided_slice %439 {offsets = [0, 64], sizes = [8, 32], strides = [1, 1]} : vector<8x128xf32> to vector<8x32xf32>
    %cst_84 = arith.constant 2.000000e+00 : f32
    %443 = vector.broadcast %cst_84 : f32 to vector<8x32xf32>
    %444 = arith.mulf %443, %442 : vector<8x32xf32>
    %cst_85 = arith.constant 1.000000e+00 : f32
    %445 = vector.broadcast %cst_85 : f32 to vector<8x32xf32>
    %446 = arith.subf %444, %445 : vector<8x32xf32>
    %447 = vector.extract_strided_slice %439 {offsets = [0, 96], sizes = [8, 32], strides = [1, 1]} : vector<8x128xf32> to vector<8x32xf32>
    %448 = arith.mulf %441, %405 : vector<8x32xf32>
    %449 = arith.mulf %440, %446 : vector<8x32xf32>
    %450 = arith.addf %448, %449 : vector<8x32xf32>
    %451 = math.tanh %450 : vector<8x32xf32>
    %452 = arith.mulf %447, %451 : vector<8x32xf32>
    %453 = arith.negf %434 : vector<8x128xf32>
    %454 = math.exp %453 : vector<8x128xf32>
    %cst_86 = arith.constant 1.000000e+00 : f32
    %455 = vector.broadcast %cst_86 : f32 to vector<8x128xf32>
    %456 = arith.addf %455, %454 : vector<8x128xf32>
    %457 = arith.divf %455, %456 : vector<8x128xf32>
    %458 = vector.extract_strided_slice %457 {offsets = [0, 0], sizes = [8, 32], strides = [1, 1]} : vector<8x128xf32> to vector<8x32xf32>
    %459 = vector.extract_strided_slice %457 {offsets = [0, 32], sizes = [8, 32], strides = [1, 1]} : vector<8x128xf32> to vector<8x32xf32>
    %460 = vector.extract_strided_slice %457 {offsets = [0, 64], sizes = [8, 32], strides = [1, 1]} : vector<8x128xf32> to vector<8x32xf32>
    %cst_87 = arith.constant 2.000000e+00 : f32
    %461 = vector.broadcast %cst_87 : f32 to vector<8x32xf32>
    %462 = arith.mulf %461, %460 : vector<8x32xf32>
    %cst_88 = arith.constant 1.000000e+00 : f32
    %463 = vector.broadcast %cst_88 : f32 to vector<8x32xf32>
    %464 = arith.subf %462, %463 : vector<8x32xf32>
    %465 = vector.extract_strided_slice %457 {offsets = [0, 96], sizes = [8, 32], strides = [1, 1]} : vector<8x128xf32> to vector<8x32xf32>
    %466 = arith.mulf %459, %423 : vector<8x32xf32>
    %467 = arith.mulf %458, %464 : vector<8x32xf32>
    %468 = arith.addf %466, %467 : vector<8x32xf32>
    %469 = math.tanh %468 : vector<8x32xf32>
    %470 = arith.mulf %465, %469 : vector<8x32xf32>
    %471 = tpu.concatenate %452, %470 in 1 : vector<8x32xf32>, vector<8x32xf32> -> vector<8x64xf32>
    %472 = vector.extract_strided_slice %384 {offsets = [16, 0], sizes = [8, 128], strides = [1, 1]} : vector<64x256xf32> to vector<8x128xf32>
    %473 = vector.extract_strided_slice %384 {offsets = [40, 128], sizes = [8, 128], strides = [1, 1]} : vector<64x256xf32> to vector<8x128xf32>
    %474 = arith.truncf %471 : vector<8x64xf32> to vector<8x64xbf16>
    %cst_89 = arith.constant dense<0.000000e+00> : vector<8x256xf32>
    %475 = tpu.matmul %474, %385, %cst_89 {dimension_numbers = #tpu.dot_dimension_numbers<[1], [0], [0], [1], [0, 0, 1, 1], [], []>} : vector<8x64xbf16>, vector<64x256xbf16>, vector<8x256xf32> -> vector<8x256xf32>
    %476 = vector.extract_strided_slice %475 {offsets = [0, 0], sizes = [8, 128], strides = [1, 1]} : vector<8x256xf32> to vector<8x128xf32>
    %477 = arith.addf %472, %476 : vector<8x128xf32>
    %478 = vector.extract_strided_slice %475 {offsets = [0, 128], sizes = [8, 128], strides = [1, 1]} : vector<8x256xf32> to vector<8x128xf32>
    %479 = arith.addf %473, %478 : vector<8x128xf32>
    %480 = arith.negf %477 : vector<8x128xf32>
    %481 = math.exp %480 : vector<8x128xf32>
    %cst_90 = arith.constant 1.000000e+00 : f32
    %482 = vector.broadcast %cst_90 : f32 to vector<8x128xf32>
    %483 = arith.addf %482, %481 : vector<8x128xf32>
    %484 = arith.divf %482, %483 : vector<8x128xf32>
    %485 = vector.extract_strided_slice %484 {offsets = [0, 0], sizes = [8, 32], strides = [1, 1]} : vector<8x128xf32> to vector<8x32xf32>
    %486 = vector.extract_strided_slice %484 {offsets = [0, 32], sizes = [8, 32], strides = [1, 1]} : vector<8x128xf32> to vector<8x32xf32>
    %487 = vector.extract_strided_slice %484 {offsets = [0, 64], sizes = [8, 32], strides = [1, 1]} : vector<8x128xf32> to vector<8x32xf32>
    %cst_91 = arith.constant 2.000000e+00 : f32
    %488 = vector.broadcast %cst_91 : f32 to vector<8x32xf32>
    %489 = arith.mulf %488, %487 : vector<8x32xf32>
    %cst_92 = arith.constant 1.000000e+00 : f32
    %490 = vector.broadcast %cst_92 : f32 to vector<8x32xf32>
    %491 = arith.subf %489, %490 : vector<8x32xf32>
    %492 = vector.extract_strided_slice %484 {offsets = [0, 96], sizes = [8, 32], strides = [1, 1]} : vector<8x128xf32> to vector<8x32xf32>
    %493 = arith.mulf %486, %450 : vector<8x32xf32>
    %494 = arith.mulf %485, %491 : vector<8x32xf32>
    %495 = arith.addf %493, %494 : vector<8x32xf32>
    %496 = math.tanh %495 : vector<8x32xf32>
    %497 = arith.mulf %492, %496 : vector<8x32xf32>
    %498 = arith.negf %479 : vector<8x128xf32>
    %499 = math.exp %498 : vector<8x128xf32>
    %cst_93 = arith.constant 1.000000e+00 : f32
    %500 = vector.broadcast %cst_93 : f32 to vector<8x128xf32>
    %501 = arith.addf %500, %499 : vector<8x128xf32>
    %502 = arith.divf %500, %501 : vector<8x128xf32>
    %503 = vector.extract_strided_slice %502 {offsets = [0, 0], sizes = [8, 32], strides = [1, 1]} : vector<8x128xf32> to vector<8x32xf32>
    %504 = vector.extract_strided_slice %502 {offsets = [0, 32], sizes = [8, 32], strides = [1, 1]} : vector<8x128xf32> to vector<8x32xf32>
    %505 = vector.extract_strided_slice %502 {offsets = [0, 64], sizes = [8, 32], strides = [1, 1]} : vector<8x128xf32> to vector<8x32xf32>
    %cst_94 = arith.constant 2.000000e+00 : f32
    %506 = vector.broadcast %cst_94 : f32 to vector<8x32xf32>
    %507 = arith.mulf %506, %505 : vector<8x32xf32>
    %cst_95 = arith.constant 1.000000e+00 : f32
    %508 = vector.broadcast %cst_95 : f32 to vector<8x32xf32>
    %509 = arith.subf %507, %508 : vector<8x32xf32>
    %510 = vector.extract_strided_slice %502 {offsets = [0, 96], sizes = [8, 32], strides = [1, 1]} : vector<8x128xf32> to vector<8x32xf32>
    %511 = arith.mulf %504, %468 : vector<8x32xf32>
    %512 = arith.mulf %503, %509 : vector<8x32xf32>
    %513 = arith.addf %511, %512 : vector<8x32xf32>
    %514 = math.tanh %513 : vector<8x32xf32>
    %515 = arith.mulf %510, %514 : vector<8x32xf32>
    %516 = tpu.concatenate %497, %515 in 1 : vector<8x32xf32>, vector<8x32xf32> -> vector<8x64xf32>
    %517 = vector.extract_strided_slice %384 {offsets = [24, 0], sizes = [8, 128], strides = [1, 1]} : vector<64x256xf32> to vector<8x128xf32>
    %518 = vector.extract_strided_slice %384 {offsets = [32, 128], sizes = [8, 128], strides = [1, 1]} : vector<64x256xf32> to vector<8x128xf32>
    %519 = arith.truncf %516 : vector<8x64xf32> to vector<8x64xbf16>
    %cst_96 = arith.constant dense<0.000000e+00> : vector<8x256xf32>
    %520 = tpu.matmul %519, %385, %cst_96 {dimension_numbers = #tpu.dot_dimension_numbers<[1], [0], [0], [1], [0, 0, 1, 1], [], []>} : vector<8x64xbf16>, vector<64x256xbf16>, vector<8x256xf32> -> vector<8x256xf32>
    %521 = vector.extract_strided_slice %520 {offsets = [0, 0], sizes = [8, 128], strides = [1, 1]} : vector<8x256xf32> to vector<8x128xf32>
    %522 = arith.addf %517, %521 : vector<8x128xf32>
    %523 = vector.extract_strided_slice %520 {offsets = [0, 128], sizes = [8, 128], strides = [1, 1]} : vector<8x256xf32> to vector<8x128xf32>
    %524 = arith.addf %518, %523 : vector<8x128xf32>
    %525 = arith.negf %522 : vector<8x128xf32>
    %526 = math.exp %525 : vector<8x128xf32>
    %cst_97 = arith.constant 1.000000e+00 : f32
    %527 = vector.broadcast %cst_97 : f32 to vector<8x128xf32>
    %528 = arith.addf %527, %526 : vector<8x128xf32>
    %529 = arith.divf %527, %528 : vector<8x128xf32>
    %530 = vector.extract_strided_slice %529 {offsets = [0, 0], sizes = [8, 32], strides = [1, 1]} : vector<8x128xf32> to vector<8x32xf32>
    %531 = vector.extract_strided_slice %529 {offsets = [0, 32], sizes = [8, 32], strides = [1, 1]} : vector<8x128xf32> to vector<8x32xf32>
    %532 = vector.extract_strided_slice %529 {offsets = [0, 64], sizes = [8, 32], strides = [1, 1]} : vector<8x128xf32> to vector<8x32xf32>
    %cst_98 = arith.constant 2.000000e+00 : f32
    %533 = vector.broadcast %cst_98 : f32 to vector<8x32xf32>
    %534 = arith.mulf %533, %532 : vector<8x32xf32>
    %cst_99 = arith.constant 1.000000e+00 : f32
    %535 = vector.broadcast %cst_99 : f32 to vector<8x32xf32>
    %536 = arith.subf %534, %535 : vector<8x32xf32>
    %537 = vector.extract_strided_slice %529 {offsets = [0, 96], sizes = [8, 32], strides = [1, 1]} : vector<8x128xf32> to vector<8x32xf32>
    %538 = arith.mulf %531, %495 : vector<8x32xf32>
    %539 = arith.mulf %530, %536 : vector<8x32xf32>
    %540 = arith.addf %538, %539 : vector<8x32xf32>
    %541 = math.tanh %540 : vector<8x32xf32>
    %542 = arith.mulf %537, %541 : vector<8x32xf32>
    %543 = arith.negf %524 : vector<8x128xf32>
    %544 = math.exp %543 : vector<8x128xf32>
    %cst_100 = arith.constant 1.000000e+00 : f32
    %545 = vector.broadcast %cst_100 : f32 to vector<8x128xf32>
    %546 = arith.addf %545, %544 : vector<8x128xf32>
    %547 = arith.divf %545, %546 : vector<8x128xf32>
    %548 = vector.extract_strided_slice %547 {offsets = [0, 0], sizes = [8, 32], strides = [1, 1]} : vector<8x128xf32> to vector<8x32xf32>
    %549 = vector.extract_strided_slice %547 {offsets = [0, 32], sizes = [8, 32], strides = [1, 1]} : vector<8x128xf32> to vector<8x32xf32>
    %550 = vector.extract_strided_slice %547 {offsets = [0, 64], sizes = [8, 32], strides = [1, 1]} : vector<8x128xf32> to vector<8x32xf32>
    %cst_101 = arith.constant 2.000000e+00 : f32
    %551 = vector.broadcast %cst_101 : f32 to vector<8x32xf32>
    %552 = arith.mulf %551, %550 : vector<8x32xf32>
    %cst_102 = arith.constant 1.000000e+00 : f32
    %553 = vector.broadcast %cst_102 : f32 to vector<8x32xf32>
    %554 = arith.subf %552, %553 : vector<8x32xf32>
    %555 = vector.extract_strided_slice %547 {offsets = [0, 96], sizes = [8, 32], strides = [1, 1]} : vector<8x128xf32> to vector<8x32xf32>
    %556 = arith.mulf %549, %513 : vector<8x32xf32>
    %557 = arith.mulf %548, %554 : vector<8x32xf32>
    %558 = arith.addf %556, %557 : vector<8x32xf32>
    %559 = math.tanh %558 : vector<8x32xf32>
    %560 = arith.mulf %555, %559 : vector<8x32xf32>
    %561 = tpu.concatenate %542, %560 in 1 : vector<8x32xf32>, vector<8x32xf32> -> vector<8x64xf32>
    %562 = vector.extract_strided_slice %384 {offsets = [32, 0], sizes = [8, 128], strides = [1, 1]} : vector<64x256xf32> to vector<8x128xf32>
    %563 = vector.extract_strided_slice %384 {offsets = [24, 128], sizes = [8, 128], strides = [1, 1]} : vector<64x256xf32> to vector<8x128xf32>
    %564 = arith.truncf %561 : vector<8x64xf32> to vector<8x64xbf16>
    %cst_103 = arith.constant dense<0.000000e+00> : vector<8x256xf32>
    %565 = tpu.matmul %564, %385, %cst_103 {dimension_numbers = #tpu.dot_dimension_numbers<[1], [0], [0], [1], [0, 0, 1, 1], [], []>} : vector<8x64xbf16>, vector<64x256xbf16>, vector<8x256xf32> -> vector<8x256xf32>
    %566 = vector.extract_strided_slice %565 {offsets = [0, 0], sizes = [8, 128], strides = [1, 1]} : vector<8x256xf32> to vector<8x128xf32>
    %567 = arith.addf %562, %566 : vector<8x128xf32>
    %568 = vector.extract_strided_slice %565 {offsets = [0, 128], sizes = [8, 128], strides = [1, 1]} : vector<8x256xf32> to vector<8x128xf32>
    %569 = arith.addf %563, %568 : vector<8x128xf32>
    %570 = arith.negf %567 : vector<8x128xf32>
    %571 = math.exp %570 : vector<8x128xf32>
    %cst_104 = arith.constant 1.000000e+00 : f32
    %572 = vector.broadcast %cst_104 : f32 to vector<8x128xf32>
    %573 = arith.addf %572, %571 : vector<8x128xf32>
    %574 = arith.divf %572, %573 : vector<8x128xf32>
    %575 = vector.extract_strided_slice %574 {offsets = [0, 0], sizes = [8, 32], strides = [1, 1]} : vector<8x128xf32> to vector<8x32xf32>
    %576 = vector.extract_strided_slice %574 {offsets = [0, 32], sizes = [8, 32], strides = [1, 1]} : vector<8x128xf32> to vector<8x32xf32>
    %577 = vector.extract_strided_slice %574 {offsets = [0, 64], sizes = [8, 32], strides = [1, 1]} : vector<8x128xf32> to vector<8x32xf32>
    %cst_105 = arith.constant 2.000000e+00 : f32
    %578 = vector.broadcast %cst_105 : f32 to vector<8x32xf32>
    %579 = arith.mulf %578, %577 : vector<8x32xf32>
    %cst_106 = arith.constant 1.000000e+00 : f32
    %580 = vector.broadcast %cst_106 : f32 to vector<8x32xf32>
    %581 = arith.subf %579, %580 : vector<8x32xf32>
    %582 = vector.extract_strided_slice %574 {offsets = [0, 96], sizes = [8, 32], strides = [1, 1]} : vector<8x128xf32> to vector<8x32xf32>
    %583 = arith.mulf %576, %540 : vector<8x32xf32>
    %584 = arith.mulf %575, %581 : vector<8x32xf32>
    %585 = arith.addf %583, %584 : vector<8x32xf32>
    %586 = math.tanh %585 : vector<8x32xf32>
    %587 = arith.mulf %582, %586 : vector<8x32xf32>
    %588 = arith.negf %569 : vector<8x128xf32>
    %589 = math.exp %588 : vector<8x128xf32>
    %cst_107 = arith.constant 1.000000e+00 : f32
    %590 = vector.broadcast %cst_107 : f32 to vector<8x128xf32>
    %591 = arith.addf %590, %589 : vector<8x128xf32>
    %592 = arith.divf %590, %591 : vector<8x128xf32>
    %593 = vector.extract_strided_slice %592 {offsets = [0, 0], sizes = [8, 32], strides = [1, 1]} : vector<8x128xf32> to vector<8x32xf32>
    %594 = vector.extract_strided_slice %592 {offsets = [0, 32], sizes = [8, 32], strides = [1, 1]} : vector<8x128xf32> to vector<8x32xf32>
    %595 = vector.extract_strided_slice %592 {offsets = [0, 64], sizes = [8, 32], strides = [1, 1]} : vector<8x128xf32> to vector<8x32xf32>
    %cst_108 = arith.constant 2.000000e+00 : f32
    %596 = vector.broadcast %cst_108 : f32 to vector<8x32xf32>
    %597 = arith.mulf %596, %595 : vector<8x32xf32>
    %cst_109 = arith.constant 1.000000e+00 : f32
    %598 = vector.broadcast %cst_109 : f32 to vector<8x32xf32>
    %599 = arith.subf %597, %598 : vector<8x32xf32>
    %600 = vector.extract_strided_slice %592 {offsets = [0, 96], sizes = [8, 32], strides = [1, 1]} : vector<8x128xf32> to vector<8x32xf32>
    %601 = arith.mulf %594, %558 : vector<8x32xf32>
    %602 = arith.mulf %593, %599 : vector<8x32xf32>
    %603 = arith.addf %601, %602 : vector<8x32xf32>
    %604 = math.tanh %603 : vector<8x32xf32>
    %605 = arith.mulf %600, %604 : vector<8x32xf32>
    %606 = tpu.concatenate %587, %605 in 1 : vector<8x32xf32>, vector<8x32xf32> -> vector<8x64xf32>
    %607 = vector.extract_strided_slice %384 {offsets = [40, 0], sizes = [8, 128], strides = [1, 1]} : vector<64x256xf32> to vector<8x128xf32>
    %608 = vector.extract_strided_slice %384 {offsets = [16, 128], sizes = [8, 128], strides = [1, 1]} : vector<64x256xf32> to vector<8x128xf32>
    %609 = arith.truncf %606 : vector<8x64xf32> to vector<8x64xbf16>
    %cst_110 = arith.constant dense<0.000000e+00> : vector<8x256xf32>
    %610 = tpu.matmul %609, %385, %cst_110 {dimension_numbers = #tpu.dot_dimension_numbers<[1], [0], [0], [1], [0, 0, 1, 1], [], []>} : vector<8x64xbf16>, vector<64x256xbf16>, vector<8x256xf32> -> vector<8x256xf32>
    %611 = vector.extract_strided_slice %610 {offsets = [0, 0], sizes = [8, 128], strides = [1, 1]} : vector<8x256xf32> to vector<8x128xf32>
    %612 = arith.addf %607, %611 : vector<8x128xf32>
    %613 = vector.extract_strided_slice %610 {offsets = [0, 128], sizes = [8, 128], strides = [1, 1]} : vector<8x256xf32> to vector<8x128xf32>
    %614 = arith.addf %608, %613 : vector<8x128xf32>
    %615 = arith.negf %612 : vector<8x128xf32>
    %616 = math.exp %615 : vector<8x128xf32>
    %cst_111 = arith.constant 1.000000e+00 : f32
    %617 = vector.broadcast %cst_111 : f32 to vector<8x128xf32>
    %618 = arith.addf %617, %616 : vector<8x128xf32>
    %619 = arith.divf %617, %618 : vector<8x128xf32>
    %620 = vector.extract_strided_slice %619 {offsets = [0, 0], sizes = [8, 32], strides = [1, 1]} : vector<8x128xf32> to vector<8x32xf32>
    %621 = vector.extract_strided_slice %619 {offsets = [0, 32], sizes = [8, 32], strides = [1, 1]} : vector<8x128xf32> to vector<8x32xf32>
    %622 = vector.extract_strided_slice %619 {offsets = [0, 64], sizes = [8, 32], strides = [1, 1]} : vector<8x128xf32> to vector<8x32xf32>
    %cst_112 = arith.constant 2.000000e+00 : f32
    %623 = vector.broadcast %cst_112 : f32 to vector<8x32xf32>
    %624 = arith.mulf %623, %622 : vector<8x32xf32>
    %cst_113 = arith.constant 1.000000e+00 : f32
    %625 = vector.broadcast %cst_113 : f32 to vector<8x32xf32>
    %626 = arith.subf %624, %625 : vector<8x32xf32>
    %627 = vector.extract_strided_slice %619 {offsets = [0, 96], sizes = [8, 32], strides = [1, 1]} : vector<8x128xf32> to vector<8x32xf32>
    %628 = arith.mulf %621, %585 : vector<8x32xf32>
    %629 = arith.mulf %620, %626 : vector<8x32xf32>
    %630 = arith.addf %628, %629 : vector<8x32xf32>
    %631 = math.tanh %630 : vector<8x32xf32>
    %632 = arith.mulf %627, %631 : vector<8x32xf32>
    %633 = arith.negf %614 : vector<8x128xf32>
    %634 = math.exp %633 : vector<8x128xf32>
    %cst_114 = arith.constant 1.000000e+00 : f32
    %635 = vector.broadcast %cst_114 : f32 to vector<8x128xf32>
    %636 = arith.addf %635, %634 : vector<8x128xf32>
    %637 = arith.divf %635, %636 : vector<8x128xf32>
    %638 = vector.extract_strided_slice %637 {offsets = [0, 0], sizes = [8, 32], strides = [1, 1]} : vector<8x128xf32> to vector<8x32xf32>
    %639 = vector.extract_strided_slice %637 {offsets = [0, 32], sizes = [8, 32], strides = [1, 1]} : vector<8x128xf32> to vector<8x32xf32>
    %640 = vector.extract_strided_slice %637 {offsets = [0, 64], sizes = [8, 32], strides = [1, 1]} : vector<8x128xf32> to vector<8x32xf32>
    %cst_115 = arith.constant 2.000000e+00 : f32
    %641 = vector.broadcast %cst_115 : f32 to vector<8x32xf32>
    %642 = arith.mulf %641, %640 : vector<8x32xf32>
    %cst_116 = arith.constant 1.000000e+00 : f32
    %643 = vector.broadcast %cst_116 : f32 to vector<8x32xf32>
    %644 = arith.subf %642, %643 : vector<8x32xf32>
    %645 = vector.extract_strided_slice %637 {offsets = [0, 96], sizes = [8, 32], strides = [1, 1]} : vector<8x128xf32> to vector<8x32xf32>
    %646 = arith.mulf %639, %603 : vector<8x32xf32>
    %647 = arith.mulf %638, %644 : vector<8x32xf32>
    %648 = arith.addf %646, %647 : vector<8x32xf32>
    %649 = math.tanh %648 : vector<8x32xf32>
    %650 = arith.mulf %645, %649 : vector<8x32xf32>
    %651 = tpu.concatenate %632, %650 in 1 : vector<8x32xf32>, vector<8x32xf32> -> vector<8x64xf32>
    %652 = vector.extract_strided_slice %384 {offsets = [48, 0], sizes = [8, 128], strides = [1, 1]} : vector<64x256xf32> to vector<8x128xf32>
    %653 = vector.extract_strided_slice %384 {offsets = [8, 128], sizes = [8, 128], strides = [1, 1]} : vector<64x256xf32> to vector<8x128xf32>
    %654 = arith.truncf %651 : vector<8x64xf32> to vector<8x64xbf16>
    %cst_117 = arith.constant dense<0.000000e+00> : vector<8x256xf32>
    %655 = tpu.matmul %654, %385, %cst_117 {dimension_numbers = #tpu.dot_dimension_numbers<[1], [0], [0], [1], [0, 0, 1, 1], [], []>} : vector<8x64xbf16>, vector<64x256xbf16>, vector<8x256xf32> -> vector<8x256xf32>
    %656 = vector.extract_strided_slice %655 {offsets = [0, 0], sizes = [8, 128], strides = [1, 1]} : vector<8x256xf32> to vector<8x128xf32>
    %657 = arith.addf %652, %656 : vector<8x128xf32>
    %658 = vector.extract_strided_slice %655 {offsets = [0, 128], sizes = [8, 128], strides = [1, 1]} : vector<8x256xf32> to vector<8x128xf32>
    %659 = arith.addf %653, %658 : vector<8x128xf32>
    %660 = arith.negf %657 : vector<8x128xf32>
    %661 = math.exp %660 : vector<8x128xf32>
    %cst_118 = arith.constant 1.000000e+00 : f32
    %662 = vector.broadcast %cst_118 : f32 to vector<8x128xf32>
    %663 = arith.addf %662, %661 : vector<8x128xf32>
    %664 = arith.divf %662, %663 : vector<8x128xf32>
    %665 = vector.extract_strided_slice %664 {offsets = [0, 0], sizes = [8, 32], strides = [1, 1]} : vector<8x128xf32> to vector<8x32xf32>
    %666 = vector.extract_strided_slice %664 {offsets = [0, 32], sizes = [8, 32], strides = [1, 1]} : vector<8x128xf32> to vector<8x32xf32>
    %667 = vector.extract_strided_slice %664 {offsets = [0, 64], sizes = [8, 32], strides = [1, 1]} : vector<8x128xf32> to vector<8x32xf32>
    %cst_119 = arith.constant 2.000000e+00 : f32
    %668 = vector.broadcast %cst_119 : f32 to vector<8x32xf32>
    %669 = arith.mulf %668, %667 : vector<8x32xf32>
    %cst_120 = arith.constant 1.000000e+00 : f32
    %670 = vector.broadcast %cst_120 : f32 to vector<8x32xf32>
    %671 = arith.subf %669, %670 : vector<8x32xf32>
    %672 = vector.extract_strided_slice %664 {offsets = [0, 96], sizes = [8, 32], strides = [1, 1]} : vector<8x128xf32> to vector<8x32xf32>
    %673 = arith.mulf %666, %630 : vector<8x32xf32>
    %674 = arith.mulf %665, %671 : vector<8x32xf32>
    %675 = arith.addf %673, %674 : vector<8x32xf32>
    %676 = math.tanh %675 : vector<8x32xf32>
    %677 = arith.mulf %672, %676 : vector<8x32xf32>
    %678 = arith.negf %659 : vector<8x128xf32>
    %679 = math.exp %678 : vector<8x128xf32>
    %cst_121 = arith.constant 1.000000e+00 : f32
    %680 = vector.broadcast %cst_121 : f32 to vector<8x128xf32>
    %681 = arith.addf %680, %679 : vector<8x128xf32>
    %682 = arith.divf %680, %681 : vector<8x128xf32>
    %683 = vector.extract_strided_slice %682 {offsets = [0, 0], sizes = [8, 32], strides = [1, 1]} : vector<8x128xf32> to vector<8x32xf32>
    %684 = vector.extract_strided_slice %682 {offsets = [0, 32], sizes = [8, 32], strides = [1, 1]} : vector<8x128xf32> to vector<8x32xf32>
    %685 = vector.extract_strided_slice %682 {offsets = [0, 64], sizes = [8, 32], strides = [1, 1]} : vector<8x128xf32> to vector<8x32xf32>
    %cst_122 = arith.constant 2.000000e+00 : f32
    %686 = vector.broadcast %cst_122 : f32 to vector<8x32xf32>
    %687 = arith.mulf %686, %685 : vector<8x32xf32>
    %cst_123 = arith.constant 1.000000e+00 : f32
    %688 = vector.broadcast %cst_123 : f32 to vector<8x32xf32>
    %689 = arith.subf %687, %688 : vector<8x32xf32>
    %690 = vector.extract_strided_slice %682 {offsets = [0, 96], sizes = [8, 32], strides = [1, 1]} : vector<8x128xf32> to vector<8x32xf32>
    %691 = arith.mulf %684, %648 : vector<8x32xf32>
    %692 = arith.mulf %683, %689 : vector<8x32xf32>
    %693 = arith.addf %691, %692 : vector<8x32xf32>
    %694 = math.tanh %693 : vector<8x32xf32>
    %695 = arith.mulf %690, %694 : vector<8x32xf32>
    %696 = tpu.concatenate %677, %695 in 1 : vector<8x32xf32>, vector<8x32xf32> -> vector<8x64xf32>
    %697 = vector.extract_strided_slice %384 {offsets = [56, 0], sizes = [8, 128], strides = [1, 1]} : vector<64x256xf32> to vector<8x128xf32>
    %698 = vector.extract_strided_slice %384 {offsets = [0, 128], sizes = [8, 128], strides = [1, 1]} : vector<64x256xf32> to vector<8x128xf32>
    %699 = arith.truncf %696 : vector<8x64xf32> to vector<8x64xbf16>
    %cst_124 = arith.constant dense<0.000000e+00> : vector<8x256xf32>
    %700 = tpu.matmul %699, %385, %cst_124 {dimension_numbers = #tpu.dot_dimension_numbers<[1], [0], [0], [1], [0, 0, 1, 1], [], []>} : vector<8x64xbf16>, vector<64x256xbf16>, vector<8x256xf32> -> vector<8x256xf32>
    %701 = vector.extract_strided_slice %700 {offsets = [0, 0], sizes = [8, 128], strides = [1, 1]} : vector<8x256xf32> to vector<8x128xf32>
    %702 = arith.addf %697, %701 : vector<8x128xf32>
    %703 = vector.extract_strided_slice %700 {offsets = [0, 128], sizes = [8, 128], strides = [1, 1]} : vector<8x256xf32> to vector<8x128xf32>
    %704 = arith.addf %698, %703 : vector<8x128xf32>
    %705 = arith.negf %702 : vector<8x128xf32>
    %706 = math.exp %705 : vector<8x128xf32>
    %cst_125 = arith.constant 1.000000e+00 : f32
    %707 = vector.broadcast %cst_125 : f32 to vector<8x128xf32>
    %708 = arith.addf %707, %706 : vector<8x128xf32>
    %709 = arith.divf %707, %708 : vector<8x128xf32>
    %710 = vector.extract_strided_slice %709 {offsets = [0, 0], sizes = [8, 32], strides = [1, 1]} : vector<8x128xf32> to vector<8x32xf32>
    %711 = vector.extract_strided_slice %709 {offsets = [0, 32], sizes = [8, 32], strides = [1, 1]} : vector<8x128xf32> to vector<8x32xf32>
    %712 = vector.extract_strided_slice %709 {offsets = [0, 64], sizes = [8, 32], strides = [1, 1]} : vector<8x128xf32> to vector<8x32xf32>
    %cst_126 = arith.constant 2.000000e+00 : f32
    %713 = vector.broadcast %cst_126 : f32 to vector<8x32xf32>
    %714 = arith.mulf %713, %712 : vector<8x32xf32>
    %cst_127 = arith.constant 1.000000e+00 : f32
    %715 = vector.broadcast %cst_127 : f32 to vector<8x32xf32>
    %716 = arith.subf %714, %715 : vector<8x32xf32>
    %717 = vector.extract_strided_slice %709 {offsets = [0, 96], sizes = [8, 32], strides = [1, 1]} : vector<8x128xf32> to vector<8x32xf32>
    %718 = arith.mulf %711, %675 : vector<8x32xf32>
    %719 = arith.mulf %710, %716 : vector<8x32xf32>
    %720 = arith.addf %718, %719 : vector<8x32xf32>
    %721 = math.tanh %720 : vector<8x32xf32>
    %722 = arith.mulf %717, %721 : vector<8x32xf32>
    %723 = arith.negf %704 : vector<8x128xf32>
    %724 = math.exp %723 : vector<8x128xf32>
    %cst_128 = arith.constant 1.000000e+00 : f32
    %725 = vector.broadcast %cst_128 : f32 to vector<8x128xf32>
    %726 = arith.addf %725, %724 : vector<8x128xf32>
    %727 = arith.divf %725, %726 : vector<8x128xf32>
    %728 = vector.extract_strided_slice %727 {offsets = [0, 0], sizes = [8, 32], strides = [1, 1]} : vector<8x128xf32> to vector<8x32xf32>
    %729 = vector.extract_strided_slice %727 {offsets = [0, 32], sizes = [8, 32], strides = [1, 1]} : vector<8x128xf32> to vector<8x32xf32>
    %730 = vector.extract_strided_slice %727 {offsets = [0, 64], sizes = [8, 32], strides = [1, 1]} : vector<8x128xf32> to vector<8x32xf32>
    %cst_129 = arith.constant 2.000000e+00 : f32
    %731 = vector.broadcast %cst_129 : f32 to vector<8x32xf32>
    %732 = arith.mulf %731, %730 : vector<8x32xf32>
    %cst_130 = arith.constant 1.000000e+00 : f32
    %733 = vector.broadcast %cst_130 : f32 to vector<8x32xf32>
    %734 = arith.subf %732, %733 : vector<8x32xf32>
    %735 = vector.extract_strided_slice %727 {offsets = [0, 96], sizes = [8, 32], strides = [1, 1]} : vector<8x128xf32> to vector<8x32xf32>
    %736 = arith.mulf %729, %693 : vector<8x32xf32>
    %737 = arith.mulf %728, %734 : vector<8x32xf32>
    %738 = arith.addf %736, %737 : vector<8x32xf32>
    %739 = math.tanh %738 : vector<8x32xf32>
    %740 = arith.mulf %735, %739 : vector<8x32xf32>
    %741 = tpu.concatenate %722, %740 in 1 : vector<8x32xf32>, vector<8x32xf32> -> vector<8x64xf32>
    %742 = arith.truncf %741 : vector<8x64xf32> to vector<8x64xbf16>
    %c0_131 = arith.constant 0 : index
    %c0_132 = arith.constant 0 : index
    %743 = vector.load %arg9[%c0_131, %c0_132] : memref<64x128xbf16, #tpu.memory_space<vmem>>, vector<64x128xbf16>
    %cst_133 = arith.constant dense<0.000000e+00> : vector<8x128xf32>
    %744 = tpu.matmul %742, %743, %cst_133 {dimension_numbers = #tpu.dot_dimension_numbers<[1], [0], [0], [1], [0, 0, 1, 1], [], []>} : vector<8x64xbf16>, vector<64x128xbf16>, vector<8x128xf32> -> vector<8x128xf32>
    %c0_134 = arith.constant 0 : index
    %c0_135 = arith.constant 0 : index
    %745 = vector.load %arg11[%c0_134, %c0_135] : memref<1x128xf32, #tpu.memory_space<vmem>>, vector<1x128xf32>
    %746 = vector.broadcast %745 : vector<1x128xf32> to vector<8x128xf32>
    %747 = arith.addf %744, %746 : vector<8x128xf32>
    %c0_136 = arith.constant 0 : index
    %c0_137 = arith.constant 0 : index
    %748 = vector.load %arg8[%c0_136, %c0_137] : memref<8x3xf32, #tpu.memory_space<vmem>>, vector<8x3xf32>
    %c0_138 = arith.constant 0 : index
    %c0_139 = arith.constant 0 : index
    %749 = vector.load %arg10[%c0_138, %c0_139] : memref<3x128xf32, #tpu.memory_space<vmem>>, vector<3x128xf32>
    %750 = vector.extract_strided_slice %748 {offsets = [0, 0], sizes = [8, 1], strides = [1, 1]} : vector<8x3xf32> to vector<8x1xf32>
    %751 = vector.extract_strided_slice %749 {offsets = [0, 0], sizes = [1, 128], strides = [1, 1]} : vector<3x128xf32> to vector<1x128xf32>
    %752 = vector.broadcast %750 : vector<8x1xf32> to vector<8x128xf32>
    %753 = vector.broadcast %751 : vector<1x128xf32> to vector<8x128xf32>
    %754 = arith.mulf %752, %753 : vector<8x128xf32>
    %755 = arith.addf %747, %754 : vector<8x128xf32>
    %756 = vector.extract_strided_slice %748 {offsets = [0, 1], sizes = [8, 1], strides = [1, 1]} : vector<8x3xf32> to vector<8x1xf32>
    %757 = vector.extract_strided_slice %749 {offsets = [1, 0], sizes = [1, 128], strides = [1, 1]} : vector<3x128xf32> to vector<1x128xf32>
    %758 = vector.broadcast %756 : vector<8x1xf32> to vector<8x128xf32>
    %759 = vector.broadcast %757 : vector<1x128xf32> to vector<8x128xf32>
    %760 = arith.mulf %758, %759 : vector<8x128xf32>
    %761 = arith.addf %755, %760 : vector<8x128xf32>
    %762 = vector.extract_strided_slice %748 {offsets = [0, 2], sizes = [8, 1], strides = [1, 1]} : vector<8x3xf32> to vector<8x1xf32>
    %763 = vector.extract_strided_slice %749 {offsets = [2, 0], sizes = [1, 128], strides = [1, 1]} : vector<3x128xf32> to vector<1x128xf32>
    %764 = vector.broadcast %762 : vector<8x1xf32> to vector<8x128xf32>
    %765 = vector.broadcast %763 : vector<1x128xf32> to vector<8x128xf32>
    %766 = arith.mulf %764, %765 : vector<8x128xf32>
    %767 = arith.addf %761, %766 : vector<8x128xf32>
    %c0_140 = arith.constant 0 : index
    %c0_141 = arith.constant 0 : index
    %768 = vector.load %arg12[%c0_140, %c0_141] : memref<8x128xf32, #tpu.memory_space<vmem>>, vector<8x128xf32>
    tpu.vector_store %arg12[%c0_140, %c0_141], %767 {strides = array<i32>} : memref<8x128xf32, #tpu.memory_space<vmem>>, vector<8x128xf32>,
    return
  }
}

</mosaic_0001>

<bundles_post_ra>
// kernel: bilstm_sentiment_forward.1
= control target key start
LH: loop header
LB: loop body
LE: loop exit
PB: predicated region body
PF: predicated region fallthrough
CT: control target
= control target key end

     0   :  { %17 = vsyncpa [#allocation3], 0  ;;  %s3653_s0 = inlined_call_operand.vmem [shape: s32[64,1], index: 0, kind: input, shape index: {}]   ;;  %s3654_s1 = inlined_call_operand.vmem [shape: f32[50,32], index: 1, kind: input, shape index: {}]   ;;  %s3655_s2 = inlined_call_operand.hbm [shape: bf16[32,256], index: 2, kind: input, shape index: {}]   ;;  %s3656_s3 = inlined_call_operand.vmem [shape: bf16[64,256], index: 3, kind: input, shape index: {}]   ;;  %s3657_s4 = inlined_call_operand.vmem [shape: f32[1,256], index: 4, kind: input, shape index: {}]   ;;  %s3658_s5 = inlined_call_operand.vmem [shape: bf16[64,256], index: 5, kind: input, shape index: {}]   ;;  %s3659_s6 = inlined_call_operand.vmem [shape: bf16[64,256], index: 6, kind: input, shape index: {}]   ;;  %s3660_s7 = inlined_call_operand.vmem [shape: f32[1,256], index: 7, kind: input, shape index: {}]   ;;  %s3661_s8 = inlined_call_operand.vmem [shape: f32[8,3], index: 8, kind: input, shape index: {}]   ;;  %s3662_s9 = inlined_call_operand.hbm [shape: bf16[64,128], index: 9, kind: input, shape index: {}]   ;;  %s3663_s10 = inlined_call_operand.vmem [shape: f32[3,128], index: 10, kind: input, shape index: {}]   ;;  %s3664_s11 = inlined_call_operand.hbm [shape: f32[1,128], index: 11, kind: input, shape index: {}]   ;;  %s3665_s12 = inlined_call_operand.vmem [shape: f32[8,128], index: 12, kind: output, shape index: {}]  }
   0x1   :  { %18 = vsyncpa [#allocation5], 0  ;;  %s2898_s21 = smov [#allocation4]  }
   0x2   :  { %s52_s22 = sshll.u32 %s2898_s21, 4  ;;  %s53_s22 = int_to_ptr.vmem [resolvable:$true] %s52_s22 }
   0x3   :  { %s2842_s23 = scalar_lea.vmem %s53_s22, 512  ;;  %p2847_p1 = scmp.lt.s32.totalorder %s53_s22, %s53_s22 }
   0x4   :  { %p2843_p0 = scmp.ne.s32.totalorder %s53_s22, %s2842_s23  ;;  %p2848_p2 = scmp.lt.s32.totalorder %s2842_s23, %s2842_s23 }
   0x6   :  { %p2849_p3 = por %p2848_p2, %p2847_p1 }
   0x8   :  { %p2850_p4 = pnand %p2849_p3, %p2843_p0 }
   0xa   :  { %2853 = shalt.err (!%p2850_p4)
}
   0xb   :  { %s2899_s24 = smov 64   ;;  %s2900_s25 = smov 4  }
   0xc   :  { %58 = dma.hbm_to_vmem [thread:$0]  %s3662_s9, 512, %s53_s22, [#allocation5], %s2899_s24, %s2899_s24, %s2900_s25  }
   0xd   :  { %s2901_s28 = smov [#allocation2]  }
   0xe   :  { %s28_s29 = sshll.u32 %s2901_s28, 4  ;;  %s29_s29 = int_to_ptr.vmem [resolvable:$true] %s28_s29 }
   0xf   :  { %s2862_s30 = scalar_lea.vmem %s29_s29, 512  ;;  %p2867_p6 = scmp.lt.s32.totalorder %s29_s29, %s29_s29 }
  0x10   :  { %p2863_p5 = scmp.ne.s32.totalorder %s29_s29, %s2862_s30  ;;  %p2868_p7 = scmp.lt.s32.totalorder %s2862_s30, %s2862_s30 }
  0x12   :  { %p2869_p8 = por %p2868_p7, %p2867_p6 }
  0x14   :  { %p2870_p9 = pnand %p2869_p8, %p2863_p5 }
  0x16   :  { %2873 = shalt.err (!%p2870_p9)
}
  0x17   :  { %s2902_s13 = smov 128   ;;  %s2903_s14 = smov 8  }
  0x18   :  { %34 = dma.hbm_to_vmem [thread:$0]  %s3655_s2, 512, %s29_s29, [#allocation3], %s2902_s13, %s2902_s13, %s2903_s14  }
  0x19   :  { %s2904_s17 = smov [#allocation6]  }
  0x1a   :  { %s67_s18 = sshll.u32 %s2904_s17, 4  ;;  %s68_s18 = int_to_ptr.vmem [resolvable:$true] %s67_s18 }
  0x1b   :  { %s2882_s9 = scalar_lea.vmem %s68_s18, 16  ;;  %s2886_s19 = scalar_lea.vmem %s68_s18, 32 }
  0x1c   :  { %p2883_p10 = scmp.ne.s32.totalorder %s68_s18, %s2882_s9  ;;  %p2887_p11 = scmp.lt.s32.totalorder %s68_s18, %s68_s18 }
  0x1d   :  { %p2888_p12 = scmp.lt.s32.totalorder %s2886_s19, %s2882_s9 }
  0x1f   :  { %p2889_p13 = por %p2888_p12, %p2887_p11 }
  0x21   :  { %p2890_p0 = pnand %p2889_p13, %p2883_p10 }
  0x23   :  { %2893 = shalt.err (!%p2890_p0)
}
  0x24   :  { %70 = dma.hbm_to_vmem [thread:$0]  %s3664_s11, 16, %s68_s18, [#allocation5]  }
  0x25   :  { %2894 = dma.done.wait [#allocation3], 512  }
  0x26   :  { %2895 = vsyncadd [#allocation3], 4294966784 }
  0x27   :  { %2896 = dma.done.wait [#allocation5], 528  }
  0x28   :  { %2897 = vsyncadd [#allocation5], 4294966768  ;;  %v2905_v0 = vmov 0   ;;  %v83_v1 = vld [vmem:[%s3653_s0 + $0x10] sm:$0xff]  ;;  %v81_v2 = vld [vmem:[%s3653_s0] sm:$0xff]  ;;  %vm171_vm0 = vcmask 1041408   ;;  %v89_v18 = vlaneseq }
  0x29   :  { %2593 = vset.pattern.permute.xlu1 %v2905_v0  ;;  %2592 = vset.pattern.permute.xlu0 %v2905_v0  ;;  %v84_v3 = vld [vmem:[%s3653_s0 + $0x18] sm:$0xff]  ;;  %v82_v4 = vld [vmem:[%s3653_s0 + $0x8] sm:$0xff]  ;;  %v145_v5 = vld [vmem:[%s3654_s1 + $0x30] sm:$0x3]  ;;  %vm146_vm1 = vcmask 408576   ;;  %v2906_v22 = vmov 0.0  }
  0x2a   :  { %365 = vmatprep.mubr.bf16.mxu1 %v2905_v0  ;;  %98 = vperm.xlu1 %2593, %v83_v1   ;;  %v144_v6 = vld [vmem:[%s3654_s1 + $0x28] sm:$0xff]  ;;  %v85_v8 = vld [vmem:[%s3653_s0 + $0x20] sm:$0xff]  ;;  %v142_v10 = vld [vmem:[%s3654_s1 + $0x18] sm:$0xff]  ;;  %v90_v19 = vand.u32 127, %v89_v18  ;;  %vm320_vm10 = vcmask 261120   ;;  %v3060_v51 = vshrl.u32 %v89_v18, 7 }
  0x2b   :  { %92 = vperm.xlu0 %2592, %v81_v2   ;;  %2541 = vmatprep.subr.msk.mxu0 %vm171_vm0, %v145_v5  ;;  %v86_v7 = vld [vmem:[%s3653_s0 + $0x28] sm:$0xff]  ;;  %v143_v9 = vld [vmem:[%s3654_s1 + $0x20] sm:$0xff]  ;;  %v88_v11 = vld [vmem:[%s3653_s0 + $0x38] sm:$0xff]  ;;  %vm514_vm11 = vcmask 523264   ;;  %vm2908_vm12 = vmmov 0  }
  0x2c   :  { %2542 = vmatpush3.msk.msra.mxu0 %vm171_vm0, %v145_v5  ;;  %v87_v12 = vld [vmem:[%s3653_s0 + $0x30] sm:$0xff]  ;;  %v140_v14 = vld [vmem:[%s3654_s1 + $0x8] sm:$0xff]  ;;  %v139_v15 = vld [vmem:[%s3654_s1] sm:$0xff]  ;;  %v3063_v52 = vsub.s32 0, %v3060_v51  ;;  %v3069_v54 = vsub.s32 1, %v3060_v51 }
  0x2d   :  { %2543 = vmatprep.subr.mxu0 %v144_v6  ;;  %v141_v13 = vld [vmem:[%s3654_s1 + $0x10] sm:$0xff]  ;;  %v2599_v37 = vld [vmem:[#allocation2 + $0x4] ss:$8 sps:$4 sm:$0xff]   ;;  %v2601_v38 = vld [vmem:[#allocation2] ss:$8 sps:$4 sm:$0xff]  }
  0x2e   :  { %101 = vperm.xlu1 %2593, %v84_v3   ;;  %2544 = vmatpush3.msra.mxu0 %v144_v6  ;;  %v2596_v16 = vld [vmem:[#allocation2 + $0x14] ss:$8 sps:$4 sm:$0xff]   ;;  %v2598_v17 = vld [vmem:[#allocation2 + $0x10] ss:$8 sps:$4 sm:$0xff]   ;;  %v288_v53 = vld [vmem:[%s3657_s4] sm:$0x3] }
  0x2f   :  { %95 = vperm.xlu0 %2592, %v82_v4   ;;  %2545 = vmatprep.subr.mxu0 %v143_v9  ;;  %v293_v55 = vrot.slane %v288_v53, %v3063_v52  ;;  %v297_v56 = vrot.slane %v288_v53, %v3069_v54  ;;  %s2907_s4 = smov 32   ;;  %v3116_v53 = vld [vmem:[%s3656_s3 + $0x34] ss:$8 sps:$4 sm:$0xff]  }
  0x30   :  { %2546 = vmatpush3.msra.mxu0 %v143_v9  ;;  %345 = vmatprep.subr.bf16.mxu1 %v2596_v16 }
  0x31   :  { %2547 = vmatprep.subr.mxu0 %v142_v10  ;;  %346 = vmatpush1.bf16.msra.mxu1 %v2598_v17 }
  0x32   :  { %107 = vperm.xlu1 %2593, %v86_v7   ;;  %2548 = vmatpush3.msra.mxu0 %v142_v10 }
  0x33   :  { %104 = vperm.xlu0 %2592, %v85_v8   ;;  %2549 = vmatprep.subr.mxu0 %v141_v13 }
  0x34   :  { %2550 = vmatpush3.msra.mxu0 %v141_v13  ;;  %347 = vmatprep.subr.bf16.mxu1 %v2599_v37 }
  0x35   :  { %2551 = vmatprep.subr.mxu0 %v140_v14  ;;  %348 = vmatpush1.bf16.msra.mxu1 %v2601_v38 }
  0x36   :  { %113 = vperm.xlu1 %2593, %v88_v11   ;;  %2552 = vmatpush3.msra.mxu0 %v140_v14 }
  0x37   :  { %110 = vperm.xlu0 %2592, %v87_v12   ;;  %2553 = vmatprep.subr.mxu0 %v139_v15 }
  0x38   :  { %2554 = vmatpush3.msra.mxu0 %v139_v15  ;;  %632 = vmatprep.subr.bf16.mxu1 %v3116_v53 }
  0x39   :  { %526 = vmatprep.subr.bf16.mxu0 %v3116_v53 }
  0xa5   :  { %v99_v20 = vpop.permute.xlu1 %98 }
  0xa6   :  { %v93_v21 = vpop.permute.xlu0 %92  ;;  %vm117_vm3 = vcmp.eq.s32.totalorder %v99_v20, %v90_v19 }
  0xa7   :  { %vm115_vm2 = vcmp.eq.s32.totalorder %v93_v21, %v90_v19  ;;  %v2386_v26 = vsel %vm117_vm3, 1.0, %v2906_v22 }
  0xa8   :  { %v2384_v23 = vsel %vm115_vm2, 1.0, %v2906_v22 }
  0xa9   :  { %2555 = vmatprep.mubr.msk.f32.mxu0 %vm146_vm1, %v2384_v23  ;;  %v102_v24 = vpop.permute.xlu1 %101 }
  0xaa   :  { %v96_v25 = vpop.permute.xlu0 %95  ;;  %vm118_vm4 = vcmp.eq.s32.totalorder %v102_v24, %v90_v19 }
  0xab   :  { %vm116_vm5 = vcmp.eq.s32.totalorder %v96_v25, %v90_v19  ;;  %v2387_v28 = vsel %vm118_vm4, 1.0, %v2906_v22 }
  0xac   :  { %v2385_v27 = vsel %vm116_vm5, 1.0, %v2906_v22 }
  0xad   :  { %2556 = vmatmul.mubr.msk.f32.vlgmr.msra.gmra.mxu0 %vm146_vm1, %v2385_v27  ;;  %v108_v29 = vpop.permute.xlu1 %107 }
  0xae   :  { %v105_v30 = vpop.permute.xlu0 %104  ;;  %2558 = vmatprep.mubr.msk.f32.mxu0 %vm146_vm1, %v2386_v26  ;;  %vm120_vm7 = vcmp.eq.s32.totalorder %v108_v29, %v90_v19 }
  0xaf   :  { %vm119_vm6 = vcmp.eq.s32.totalorder %v105_v30, %v90_v19  ;;  %v2389_v34 = vsel %vm120_vm7, 1.0, %v2906_v22 }
  0xb0   :  { %v2388_v31 = vsel %vm119_vm6, 1.0, %v2906_v22 }
  0xb1   :  { %2559 = vmatmul.mubr.msk.f32.gmra.mxu0 %vm146_vm1, %v2387_v28  ;;  %v114_v32 = vpop.permute.xlu1 %113 }
  0xb2   :  { %2561 = vmatprep.mubr.msk.f32.mxu0 %vm146_vm1, %v2388_v31  ;;  %v111_v33 = vpop.permute.xlu0 %110  ;;  %vm122_vm9 = vcmp.eq.s32.totalorder %v114_v32, %v90_v19 }
  0xb3   :  { %vm121_vm8 = vcmp.eq.s32.totalorder %v111_v33, %v90_v19  ;;  %v2391_v36 = vsel %vm122_vm9, 1.0, %v2906_v22 }
  0xb4   :  { %v2390_v35 = vsel %vm121_vm8, 1.0, %v2906_v22 }
  0xb5   :  { %2562 = vmatmul.mubr.msk.f32.gmra.mxu0 %vm146_vm1, %v2389_v34 }
  0xb6   :  { %2564 = vmatprep.mubr.msk.f32.mxu0 %vm146_vm1, %v2390_v35 }
  0xb9   :  { %2565 = vmatmul.mubr.msk.f32.gmra.mxu0 %vm146_vm1, %v2391_v36 }
  0xba   :  { %550 = vmatprep.mubr.bf16.mxu0 %v2905_v0 }
 0x16d   :  { %v2557_v39 = vpop.f32.mrf.mxu0 }
 0x16f   :  { %v241_v40 = vpop.f32.mrf.mxu0 }
 0x170   :  { %v280_v41 = vpack.c.bf16 %v2557_v39, %v241_v40 }
 0x171   :  { %v2560_v42 = vpop.f32.mrf.mxu0 }
 0x172   :  { %2405 = vmatmul.mubr.msk.bf16.vlgmr.msra.gmra.mxu1 %vm320_vm10, %v280_v41 }
 0x173   :  { %375 = vmatprep.mubr.bf16.mxu1 %v2905_v0  ;;  %v251_v43 = vpop.f32.mrf.mxu0 }
 0x174   :  { %v281_v44 = vpack.c.bf16 %v2560_v42, %v251_v43 }
 0x175   :  { %v2563_v45 = vpop.f32.mrf.mxu0 }
 0x177   :  { %v261_v46 = vpop.f32.mrf.mxu0 }
 0x178   :  { %v282_v47 = vpack.c.bf16 %v2563_v45, %v261_v46 }
 0x179   :  { %v2566_v48 = vpop.f32.mrf.mxu0 }
 0x17a   :  { %2406 = vmatmul.mubr.msk.bf16.gmra.mxu1 %vm320_vm10, %v281_v44 }
 0x17b   :  { %385 = vmatprep.mubr.bf16.mxu1 %v2905_v0  ;;  %v271_v49 = vpop.f32.mrf.mxu0 }
 0x17c   :  { %v283_v50 = vpack.c.bf16 %v2566_v48, %v271_v49 }
 0x182   :  { %2407 = vmatmul.mubr.msk.bf16.gmra.mxu1 %vm320_vm10, %v282_v47 }
 0x183   :  { %395 = vmatprep.mubr.bf16.mxu1 %v2905_v0 }
 0x18a   :  { %2408 = vmatmul.mubr.msk.bf16.gmra.mxu1 %vm320_vm10, %v283_v50 }
 0x18b   :  { %656 = vmatprep.mubr.bf16.mxu1 %v2905_v0 }
 0x232   :  { %v367_v57 = vpop.f32.mrf.mxu1 }
 0x233   :  { %v368_v58 = vadd.f32 %v367_v57, %v293_v55  ;;  %v3134_v57 = vld [vmem:[%s3656_s3 + $0x20] ss:$8 sps:$4 sm:$0xff]  }
 0x234   :  { %v369_v59 = vpop.f32.mrf.mxu1 }
 0x235   :  { %v2409_v60 = vmul.f32 -1.442695, %v368_v58  ;;  %v3073_v61 = vadd.f32 %v369_v59, %v297_v56  ;;  %v3141_v58 = vld [vmem:[%s3656_s3 + $0x14] ss:$8 sps:$4 sm:$0xff]   ;;  %v3148_v59 = vld [vmem:[%s3656_s3 + $0x10] ss:$8 sps:$4 sm:$0xff]  }
 0x236   :  { %v371_v62 = vpop.f32.mrf.mxu1 }
 0x237   :  { %2642 = vpow2.f32 %v2409_v60  ;;  %v3075_v63 = vadd.f32 %v371_v62, %v293_v55  ;;  %v3155_v60 = vld [vmem:[%s3656_s3 + $0x4] ss:$8 sps:$4 sm:$0xff]  }
 0x238   :  { %v373_v1 = vpop.f32.mrf.mxu1 }
 0x239   :  { %v3077_v2 = vadd.f32 %v373_v1, %v297_v56  ;;  %v3162_v1 = vld [vmem:[%s3656_s3] ss:$8 sps:$4 sm:$0xff]  }
 0x23a   :  { %v377_v3 = vpop.f32.mrf.mxu1 }
 0x23b   :  { %v3079_v4 = vadd.f32 %v377_v3, %v293_v55 }
 0x23c   :  { %v379_v5 = vpop.f32.mrf.mxu1 }
 0x23d   :  { %v3081_v6 = vadd.f32 %v379_v5, %v297_v56 }
 0x23e   :  { %v381_v7 = vpop.f32.mrf.mxu1 }
 0x23f   :  { %v3083_v8 = vadd.f32 %v381_v7, %v293_v55 }
 0x240   :  { %v383_v9 = vpop.f32.mrf.mxu1 }
 0x241   :  { %v3085_v10 = vadd.f32 %v383_v9, %v297_v56 }
 0x242   :  { %v387_v11 = vpop.f32.mrf.mxu1 }
 0x243   :  { %v3087_v12 = vadd.f32 %v387_v11, %v293_v55 }
 0x244   :  { %v2643_v13 = vpop.eup %2642  ;;  %v389_v14 = vpop.f32.mrf.mxu1 }
 0x245   :  { %v417_v15 = vadd.f32 1.0, %v2643_v13  ;;  %v3089_v16 = vadd.f32 %v389_v14, %v297_v56 }
 0x246   :  { %v391_v17 = vpop.f32.mrf.mxu1 }
 0x247   :  { %2644 = vrcp.f32 %v417_v15  ;;  %v3091_v18 = vadd.f32 %v391_v17, %v293_v55 }
 0x248   :  { %v393_v19 = vpop.f32.mrf.mxu1 }
 0x249   :  { %v3093_v20 = vadd.f32 %v393_v19, %v297_v56 }
 0x24a   :  { %v397_v21 = vpop.f32.mrf.mxu1 }
 0x24b   :  { %v3095_v23 = vadd.f32 %v397_v21, %v293_v55 }
 0x24c   :  { %v399_v24 = vpop.f32.mrf.mxu1 }
 0x24d   :  { %v3097_v25 = vadd.f32 %v399_v24, %v297_v56 }
 0x24e   :  { %v401_v26 = vpop.f32.mrf.mxu1 }
 0x24f   :  { %v3099_v27 = vadd.f32 %v401_v26, %v293_v55  ;;  %v3121_v55 = vld [vmem:[%s3656_s3 + $0x30] ss:$8 sps:$4 sm:$0xff]  }
 0x250   :  { %v403_v28 = vpop.f32.mrf.mxu1  ;;  %527 = vmatpush1.bf16.msra.mxu0 %v3121_v55  ;;  %633 = vmatpush1.bf16.msra.mxu1 %v3121_v55 }
 0x251   :  { %v404_v29 = vadd.f32 %v403_v28, %v297_v56  ;;  %v3126_v56 = vld [vmem:[%s3656_s3 + $0x24] ss:$8 sps:$4 sm:$0xff]  }
 0x252   :  { %528 = vmatprep.subr.bf16.mxu0 %v3126_v56  ;;  %634 = vmatprep.subr.bf16.mxu1 %v3126_v56 }
 0x253   :  { %v2411_v30 = vmul.f32 -1.442695, %v404_v29 }
 0x254   :  { %v2645_v31 = vpop.eup %2644  ;;  %529 = vmatpush1.bf16.msra.mxu0 %v3134_v57  ;;  %635 = vmatpush1.bf16.msra.mxu1 %v3134_v57 }
 0x255   :  { %2646 = vpow2.f32 %v2411_v30  ;;  %v420_v32 = vmul.f32 2.0, %v2645_v31  ;;  %v422_v43 = vmul.f32 0.0, %v2645_v31  ;;  %530 = vmatprep.subr.bf16.mxu0 %v3141_v58  ;;  %636 = vmatprep.subr.bf16.mxu1 %v3141_v58 }
 0x257   :  { %v2410_v33 = vadd.f32 -1.0, %v420_v32 }
 0x258   :  { %531 = vmatpush1.bf16.msra.mxu0 %v3148_v59  ;;  %637 = vmatpush1.bf16.msra.mxu1 %v3148_v59 }
 0x259   :  { %424 = vrot.lane.b32.xlu0 %v2410_v33, %s2899_s24  ;;  %532 = vmatprep.subr.bf16.mxu0 %v3155_v60 }
 0x25a   :  { %638 = vmatprep.subr.bf16.mxu1 %v3155_v60 }
 0x25c   :  { %533 = vmatpush1.bf16.msra.mxu0 %v3162_v1  ;;  %639 = vmatpush1.bf16.msra.mxu1 %v3162_v1 }
 0x25d   :  { %738 = vmatprep.subr.bf16.mxu0 %v3116_v53  ;;  %844 = vmatprep.subr.bf16.mxu1 %v3116_v53 }
 0x262   :  { %v2647_v34 = vpop.eup %2646 }
 0x263   :  { %v442_v35 = vadd.f32 1.0, %v2647_v34 }
 0x265   :  { %2648 = vrcp.f32 %v442_v35 }
 0x272   :  { %v2649_v36 = vpop.eup %2648 }
 0x273   :  { %v445_v37 = vmul.f32 2.0, %v2649_v36  ;;  %v447_v47 = vmul.f32 0.0, %v2649_v36 }
 0x275   :  { %v2412_v38 = vadd.f32 -1.0, %v445_v37 }
 0x277   :  { %449 = vrot.lane.b32.xlu1 %v2412_v38, %s2899_s24 }
 0x2cb   :  { %v425_v39 = vpop.permute.xlu0 %424 }
 0x2cc   :  { %v427_v40 = vmul.f32 %v2645_v31, %v425_v39 }
 0x2ce   :  { %429 = vrot.lane.b32.xlu0 %v427_v40, %s2907_s4 }
 0x2e9   :  { %v450_v41 = vpop.permute.xlu1 %449 }
 0x2ea   :  { %v452_v42 = vmul.f32 %v2649_v36, %v450_v41 }
 0x2ec   :  { %454 = vrot.lane.b32.xlu1 %v452_v42, %s2907_s4 }
 0x340   :  { %v430_v44 = vpop.permute.xlu0 %429 }
 0x341   :  { %v3105_v45 = vadd.f32 %v430_v44, %v422_v43 }
 0x343   :  { %2650 = vtanh.f32 %v3105_v45 }
 0x350   :  { %v2651_v46 = vpop.eup %2650 }
 0x351   :  { %435 = vrot.lane.b32.xlu0 %v2651_v46, %s2899_s24 }
 0x35e   :  { %v455_v48 = vpop.permute.xlu1 %454 }
 0x35f   :  { %v3109_v49 = vadd.f32 %v455_v48, %v447_v47 }
 0x361   :  { %2652 = vtanh.f32 %v3109_v49 }
 0x36e   :  { %v2653_v50 = vpop.eup %2652 }
 0x36f   :  { %460 = vrot.lane.b32.xlu1 %v2653_v50, %s2899_s24 }
 0x3c3   :  { %v436_v62 = vpop.permute.xlu0 %435 }
 0x3c4   :  { %v438_v3 = vmul.f32 %v2645_v31, %v436_v62 }
 0x3c6   :  { %465 = vrot.lane.b32.xlu0 %v438_v3, %s2907_s4 }
 0x3e1   :  { %v461_v5 = vpop.permute.xlu1 %460 }
 0x3e2   :  { %v463_v7 = vmul.f32 %v2649_v36, %v461_v5 }
 0x3e4   :  { %469 = vrot.lane.b32.xlu1 %v463_v7, %s2899_s24 }
 0x438   :  { %v3173_v9 = vpop.permute.xlu0 %465 }
 0x456   :  { %v3175_v11 = vpop.permute.xlu1 %469 }
 0x457   :  { %v472_v13 = vsel %vm320_vm10, %v3173_v9, %v3175_v11 }
 0x458   :  { %v473_v14 = vpack.c.bf16 %v472_v13, %v472_v13 }
 0x45a   :  { %2421 = vmatmul.mubr.msk.bf16.vlgmr.msra.gmra.mxu0 %vm514_vm11, %v473_v14 }
 0x45b   :  { %739 = vmatpush1.bf16.msra.mxu0 %v3121_v55  ;;  %762 = vmatprep.mubr.bf16.mxu0 %v2905_v0 }
 0x45c   :  { %740 = vmatprep.subr.bf16.mxu0 %v3126_v56 }
 0x45f   :  { %741 = vmatpush1.bf16.msra.mxu0 %v3134_v57 }
 0x460   :  { %742 = vmatprep.subr.bf16.mxu0 %v3141_v58 }
 0x463   :  { %743 = vmatpush1.bf16.msra.mxu0 %v3148_v59 }
 0x464   :  { %744 = vmatprep.subr.bf16.mxu0 %v3155_v60 }
 0x467   :  { %745 = vmatpush1.bf16.msra.mxu0 %v3162_v1 }
 0x468   :  { %950 = vmatprep.subr.bf16.mxu0 %v3116_v53 }
 0x51a   :  { %v552_v15 = vpop.f32.mrf.mxu0 }
 0x51b   :  { %v559_v17 = vadd.f32 %v552_v15, %v3075_v63 }
 0x51c   :  { %v554_v19 = vpop.f32.mrf.mxu0 }
 0x51d   :  { %v2422_v21 = vmul.f32 -1.442695, %v559_v17  ;;  %v560_v24 = vadd.f32 %v554_v19, %v3097_v25 }
 0x51e   :  { %v556_v26 = vpop.f32.mrf.mxu0 }
 0x51f   :  { %2654 = vpow2.f32 %v2422_v21  ;;  %v2424_v28 = vmul.f32 -1.442695, %v560_v24 }
 0x520   :  { %v557_v29 = vpop.f32.mrf.mxu0 }
 0x521   :  { %2656 = vpow2.f32 %v2424_v28 }
 0x52c   :  { %v2655_v30 = vpop.eup %2654 }
 0x52d   :  { %v564_v31 = vadd.f32 1.0, %v2655_v30 }
 0x52e   :  { %v2657_v32 = vpop.eup %2656 }
 0x52f   :  { %2658 = vrcp.f32 %v564_v31  ;;  %v589_v33 = vadd.f32 1.0, %v2657_v32 }
 0x531   :  { %2660 = vrcp.f32 %v589_v33 }
 0x53c   :  { %v2659_v34 = vpop.eup %2658 }
 0x53d   :  { %v567_v35 = vmul.f32 2.0, %v2659_v34  ;;  %v569_v42 = vmul.f32 %v2659_v34, %v3105_v45 }
 0x53e   :  { %v2661_v36 = vpop.eup %2660 }
 0x53f   :  { %v2423_v37 = vadd.f32 -1.0, %v567_v35  ;;  %v592_v63 = vmul.f32 2.0, %v2661_v36  ;;  %v594_v46 = vmul.f32 %v2661_v36, %v3109_v49 }
 0x541   :  { %571 = vrot.lane.b32.xlu0 %v2423_v37, %s2899_s24  ;;  %v2425_v38 = vadd.f32 -1.0, %v592_v63 }
 0x543   :  { %596 = vrot.lane.b32.xlu1 %v2425_v38, %s2899_s24 }
 0x5b3   :  { %v572_v25 = vpop.permute.xlu0 %571 }
 0x5b4   :  { %v574_v39 = vmul.f32 %v2659_v34, %v572_v25 }
 0x5b5   :  { %v597_v40 = vpop.permute.xlu1 %596 }
 0x5b6   :  { %v599_v41 = vmul.f32 %v2661_v36, %v597_v40  ;;  %576 = vrot.lane.b32.xlu0 %v574_v39, %s2907_s4 }
 0x5b8   :  { %601 = vrot.lane.b32.xlu1 %v599_v41, %s2907_s4 }
 0x628   :  { %v577_v43 = vpop.permute.xlu0 %576 }
 0x629   :  { %v579_v44 = vadd.f32 %v577_v43, %v569_v42 }
 0x62a   :  { %v602_v47 = vpop.permute.xlu1 %601 }
 0x62b   :  { %2662 = vtanh.f32 %v579_v44  ;;  %v604_v48 = vadd.f32 %v602_v47, %v594_v46 }
 0x62d   :  { %2664 = vtanh.f32 %v604_v48 }
 0x638   :  { %v2663_v50 = vpop.eup %2662 }
 0x639   :  { %582 = vrot.lane.b32.xlu0 %v2663_v50, %s2899_s24 }
 0x63a   :  { %v2665_v62 = vpop.eup %2664 }
 0x63b   :  { %607 = vrot.lane.b32.xlu1 %v2665_v62, %s2899_s24 }
 0x6ab   :  { %v583_v3 = vpop.permute.xlu0 %582 }
 0x6ac   :  { %v585_v5 = vmul.f32 %v2659_v34, %v583_v3 }
 0x6ad   :  { %v608_v7 = vpop.permute.xlu1 %607 }
 0x6ae   :  { %612 = vrot.lane.b32.xlu0 %v585_v5, %s2907_s4  ;;  %v610_v45 = vmul.f32 %v2661_v36, %v608_v7 }
 0x6b0   :  { %616 = vrot.lane.b32.xlu1 %v610_v45, %s2899_s24 }
 0x720   :  { %v3202_v13 = vpop.permute.xlu0 %612 }
 0x722   :  { %v3204_v49 = vpop.permute.xlu1 %616 }
 0x723   :  { %v619_v14 = vsel %vm320_vm10, %v3202_v13, %v3204_v49 }
 0x724   :  { %v620_v15 = vpack.c.bf16 %v619_v14, %v619_v14 }
 0x726   :  { %2426 = vmatmul.mubr.msk.bf16.vlgmr.msra.gmra.mxu1 %vm514_vm11, %v620_v15 }
 0x727   :  { %845 = vmatpush1.bf16.msra.mxu1 %v3121_v55  ;;  %868 = vmatprep.mubr.bf16.mxu1 %v2905_v0 }
 0x728   :  { %846 = vmatprep.subr.bf16.mxu1 %v3126_v56 }
 0x72b   :  { %847 = vmatpush1.bf16.msra.mxu1 %v3134_v57 }
 0x72c   :  { %848 = vmatprep.subr.bf16.mxu1 %v3141_v58 }
 0x72f   :  { %849 = vmatpush1.bf16.msra.mxu1 %v3148_v59 }
 0x730   :  { %850 = vmatprep.subr.bf16.mxu1 %v3155_v60 }
 0x733   :  { %851 = vmatpush1.bf16.msra.mxu1 %v3162_v1 }
 0x734   :  { %1056 = vmatprep.subr.bf16.mxu1 %v3116_v53 }
 0x7e6   :  { %v658_v17 = vpop.f32.mrf.mxu1 }
 0x7e7   :  { %v665_v19 = vadd.f32 %v658_v17, %v3079_v4 }
 0x7e8   :  { %v660_v21 = vpop.f32.mrf.mxu1 }
 0x7e9   :  { %v2427_v24 = vmul.f32 -1.442695, %v665_v19  ;;  %v666_v26 = vadd.f32 %v660_v21, %v3093_v20 }
 0x7ea   :  { %v662_v28 = vpop.f32.mrf.mxu1 }
 0x7eb   :  { %2666 = vpow2.f32 %v2427_v24  ;;  %v2429_v29 = vmul.f32 -1.442695, %v666_v26 }
 0x7ec   :  { %v663_v30 = vpop.f32.mrf.mxu1 }
 0x7ed   :  { %2668 = vpow2.f32 %v2429_v29 }
 0x7f8   :  { %v2667_v31 = vpop.eup %2666 }
 0x7f9   :  { %v670_v32 = vadd.f32 1.0, %v2667_v31 }
 0x7fa   :  { %v2669_v33 = vpop.eup %2668 }
 0x7fb   :  { %2670 = vrcp.f32 %v670_v32  ;;  %v695_v34 = vadd.f32 1.0, %v2669_v33 }
 0x7fd   :  { %2672 = vrcp.f32 %v695_v34 }
 0x808   :  { %v2671_v35 = vpop.eup %2670 }
 0x809   :  { %v673_v36 = vmul.f32 2.0, %v2671_v35  ;;  %v675_v41 = vmul.f32 %v2671_v35, %v579_v44 }
 0x80a   :  { %v2673_v37 = vpop.eup %2672 }
 0x80b   :  { %v2428_v63 = vadd.f32 -1.0, %v673_v36  ;;  %v698_v4 = vmul.f32 2.0, %v2673_v37  ;;  %v700_v46 = vmul.f32 %v2673_v37, %v604_v48 }
 0x80d   :  { %677 = vrot.lane.b32.xlu0 %v2428_v63, %s2899_s24  ;;  %v2430_v38 = vadd.f32 -1.0, %v698_v4 }
 0x80f   :  { %702 = vrot.lane.b32.xlu1 %v2430_v38, %s2899_s24 }
 0x87f   :  { %v678_v20 = vpop.permute.xlu0 %677 }
 0x880   :  { %v680_v25 = vmul.f32 %v2671_v35, %v678_v20 }
 0x881   :  { %v703_v39 = vpop.permute.xlu1 %702 }
 0x882   :  { %v705_v40 = vmul.f32 %v2673_v37, %v703_v39  ;;  %682 = vrot.lane.b32.xlu0 %v680_v25, %s2907_s4 }
 0x884   :  { %707 = vrot.lane.b32.xlu1 %v705_v40, %s2907_s4 }
 0x8f4   :  { %v683_v42 = vpop.permute.xlu0 %682 }
 0x8f5   :  { %v685_v43 = vadd.f32 %v683_v42, %v675_v41 }
 0x8f6   :  { %v708_v47 = vpop.permute.xlu1 %707 }
 0x8f7   :  { %2674 = vtanh.f32 %v685_v43  ;;  %v710_v50 = vadd.f32 %v708_v47, %v700_v46 }
 0x8f9   :  { %2676 = vtanh.f32 %v710_v50 }
 0x904   :  { %v2675_v62 = vpop.eup %2674 }
 0x905   :  { %688 = vrot.lane.b32.xlu0 %v2675_v62, %s2899_s24 }
 0x906   :  { %v2677_v3 = vpop.eup %2676 }
 0x907   :  { %713 = vrot.lane.b32.xlu1 %v2677_v3, %s2899_s24 }
 0x977   :  { %v689_v5 = vpop.permute.xlu0 %688 }
 0x978   :  { %v691_v7 = vmul.f32 %v2671_v35, %v689_v5 }
 0x979   :  { %v714_v45 = vpop.permute.xlu1 %713 }
 0x97a   :  { %718 = vrot.lane.b32.xlu0 %v691_v7, %s2907_s4  ;;  %v716_v14 = vmul.f32 %v2673_v37, %v714_v45 }
 0x97c   :  { %722 = vrot.lane.b32.xlu1 %v716_v14, %s2899_s24 }
 0x9ec   :  { %v3229_v44 = vpop.permute.xlu0 %718 }
 0x9ee   :  { %v3231_v48 = vpop.permute.xlu1 %722 }
 0x9ef   :  { %v725_v15 = vsel %vm320_vm10, %v3229_v44, %v3231_v48 }
 0x9f0   :  { %v726_v17 = vpack.c.bf16 %v725_v15, %v725_v15 }
 0x9f2   :  { %2431 = vmatmul.mubr.msk.bf16.vlgmr.msra.gmra.mxu0 %vm514_vm11, %v726_v17 }
 0x9f3   :  { %951 = vmatpush1.bf16.msra.mxu0 %v3121_v55  ;;  %974 = vmatprep.mubr.bf16.mxu0 %v2905_v0 }
 0x9f4   :  { %952 = vmatprep.subr.bf16.mxu0 %v3126_v56 }
 0x9f7   :  { %953 = vmatpush1.bf16.msra.mxu0 %v3134_v57 }
 0x9f8   :  { %954 = vmatprep.subr.bf16.mxu0 %v3141_v58 }
 0x9fb   :  { %955 = vmatpush1.bf16.msra.mxu0 %v3148_v59 }
 0x9fc   :  { %956 = vmatprep.subr.bf16.mxu0 %v3155_v60 }
 0x9ff   :  { %957 = vmatpush1.bf16.msra.mxu0 %v3162_v1 }
 0xa00   :  { %1162 = vmatprep.subr.bf16.mxu0 %v3116_v53 }
 0xab2   :  { %v764_v19 = vpop.f32.mrf.mxu0 }
 0xab3   :  { %v771_v21 = vadd.f32 %v764_v19, %v3083_v8 }
 0xab4   :  { %v766_v24 = vpop.f32.mrf.mxu0 }
 0xab5   :  { %v2432_v26 = vmul.f32 -1.442695, %v771_v21  ;;  %v772_v28 = vadd.f32 %v766_v24, %v3089_v16 }
 0xab6   :  { %v768_v29 = vpop.f32.mrf.mxu0 }
 0xab7   :  { %2678 = vpow2.f32 %v2432_v26  ;;  %v2434_v30 = vmul.f32 -1.442695, %v772_v28 }
 0xab8   :  { %v769_v31 = vpop.f32.mrf.mxu0 }
 0xab9   :  { %2680 = vpow2.f32 %v2434_v30 }
 0xac4   :  { %v2679_v32 = vpop.eup %2678 }
 0xac5   :  { %v776_v33 = vadd.f32 1.0, %v2679_v32 }
 0xac6   :  { %v2681_v34 = vpop.eup %2680 }
 0xac7   :  { %2682 = vrcp.f32 %v776_v33  ;;  %v801_v35 = vadd.f32 1.0, %v2681_v34 }
 0xac9   :  { %2684 = vrcp.f32 %v801_v35 }
 0xad4   :  { %v2683_v36 = vpop.eup %2682 }
 0xad5   :  { %v779_v53 = vmul.f32 2.0, %v2683_v36  ;;  %v781_v39 = vmul.f32 %v2683_v36, %v685_v43 }
 0xad6   :  { %v2685_v37 = vpop.eup %2684 }
 0xad7   :  { %v2433_v63 = vadd.f32 -1.0, %v779_v53  ;;  %v804_v8 = vmul.f32 2.0, %v2685_v37  ;;  %v806_v42 = vmul.f32 %v2685_v37, %v710_v50 }
 0xad9   :  { %783 = vrot.lane.b32.xlu0 %v2433_v63, %s2899_s24  ;;  %v2435_v4 = vadd.f32 -1.0, %v804_v8 }
 0xadb   :  { %808 = vrot.lane.b32.xlu1 %v2435_v4, %s2899_s24 }
 0xb4b   :  { %v784_v16 = vpop.permute.xlu0 %783 }
 0xb4c   :  { %v786_v38 = vmul.f32 %v2683_v36, %v784_v16 }
 0xb4d   :  { %v809_v20 = vpop.permute.xlu1 %808 }
 0xb4e   :  { %v811_v25 = vmul.f32 %v2685_v37, %v809_v20  ;;  %788 = vrot.lane.b32.xlu0 %v786_v38, %s2907_s4 }
 0xb50   :  { %813 = vrot.lane.b32.xlu1 %v811_v25, %s2907_s4 }
 0xbc0   :  { %v789_v40 = vpop.permute.xlu0 %788 }
 0xbc1   :  { %v791_v41 = vadd.f32 %v789_v40, %v781_v39 }
 0xbc2   :  { %v814_v46 = vpop.permute.xlu1 %813 }
 0xbc3   :  { %2686 = vtanh.f32 %v791_v41  ;;  %v816_v47 = vadd.f32 %v814_v46, %v806_v42 }
 0xbc5   :  { %2688 = vtanh.f32 %v816_v47 }
 0xbd0   :  { %v2687_v62 = vpop.eup %2686 }
 0xbd1   :  { %794 = vrot.lane.b32.xlu0 %v2687_v62, %s2899_s24 }
 0xbd2   :  { %v2689_v3 = vpop.eup %2688 }
 0xbd3   :  { %819 = vrot.lane.b32.xlu1 %v2689_v3, %s2899_s24 }
 0xc43   :  { %v795_v5 = vpop.permute.xlu0 %794 }
 0xc44   :  { %v797_v7 = vmul.f32 %v2683_v36, %v795_v5 }
 0xc45   :  { %v820_v45 = vpop.permute.xlu1 %819 }
 0xc46   :  { %824 = vrot.lane.b32.xlu0 %v797_v7, %s2907_s4  ;;  %v822_v14 = vmul.f32 %v2685_v37, %v820_v45 }
 0xc48   :  { %828 = vrot.lane.b32.xlu1 %v822_v14, %s2899_s24 }
 0xcb8   :  { %v3256_v43 = vpop.permute.xlu0 %824 }
 0xcba   :  { %v3258_v50 = vpop.permute.xlu1 %828 }
 0xcbb   :  { %v831_v15 = vsel %vm320_vm10, %v3256_v43, %v3258_v50 }
 0xcbc   :  { %v832_v17 = vpack.c.bf16 %v831_v15, %v831_v15 }
 0xcbe   :  { %2436 = vmatmul.mubr.msk.bf16.vlgmr.msra.gmra.mxu1 %vm514_vm11, %v832_v17 }
 0xcbf   :  { %1057 = vmatpush1.bf16.msra.mxu1 %v3121_v55  ;;  %1080 = vmatprep.mubr.bf16.mxu1 %v2905_v0 }
 0xcc0   :  { %1058 = vmatprep.subr.bf16.mxu1 %v3126_v56 }
 0xcc3   :  { %1059 = vmatpush1.bf16.msra.mxu1 %v3134_v57 }
 0xcc4   :  { %1060 = vmatprep.subr.bf16.mxu1 %v3141_v58 }
 0xcc7   :  { %1061 = vmatpush1.bf16.msra.mxu1 %v3148_v59 }
 0xcc8   :  { %1062 = vmatprep.subr.bf16.mxu1 %v3155_v60 }
 0xccb   :  { %1063 = vmatpush1.bf16.msra.mxu1 %v3162_v1 }
 0xd7e   :  { %v870_v19 = vpop.f32.mrf.mxu1 }
 0xd7f   :  { %v877_v21 = vadd.f32 %v870_v19, %v3087_v12 }
 0xd80   :  { %v872_v24 = vpop.f32.mrf.mxu1 }
 0xd81   :  { %v2437_v26 = vmul.f32 -1.442695, %v877_v21  ;;  %v878_v28 = vadd.f32 %v872_v24, %v3085_v10 }
 0xd82   :  { %v874_v29 = vpop.f32.mrf.mxu1 }
 0xd83   :  { %2690 = vpow2.f32 %v2437_v26  ;;  %v2439_v30 = vmul.f32 -1.442695, %v878_v28 }
 0xd84   :  { %v875_v31 = vpop.f32.mrf.mxu1 }
 0xd85   :  { %2692 = vpow2.f32 %v2439_v30 }
 0xd90   :  { %v2691_v32 = vpop.eup %2690 }
 0xd91   :  { %v882_v33 = vadd.f32 1.0, %v2691_v32 }
 0xd92   :  { %v2693_v34 = vpop.eup %2692 }
 0xd93   :  { %2694 = vrcp.f32 %v882_v33  ;;  %v907_v35 = vadd.f32 1.0, %v2693_v34 }
 0xd95   :  { %2696 = vrcp.f32 %v907_v35 }
 0xda0   :  { %v2695_v36 = vpop.eup %2694 }
 0xda1   :  { %v885_v53 = vmul.f32 2.0, %v2695_v36  ;;  %v887_v20 = vmul.f32 %v2695_v36, %v791_v41 }
 0xda2   :  { %v2697_v37 = vpop.eup %2696 }
 0xda3   :  { %v2438_v63 = vadd.f32 -1.0, %v885_v53  ;;  %v910_v12 = vmul.f32 2.0, %v2697_v37  ;;  %v912_v40 = vmul.f32 %v2697_v37, %v816_v47 }
 0xda5   :  { %889 = vrot.lane.b32.xlu0 %v2438_v63, %s2899_s24  ;;  %v2440_v8 = vadd.f32 -1.0, %v910_v12 }
 0xda7   :  { %914 = vrot.lane.b32.xlu1 %v2440_v8, %s2899_s24 }
 0xe17   :  { %v890_v10 = vpop.permute.xlu0 %889 }
 0xe18   :  { %v892_v4 = vmul.f32 %v2695_v36, %v890_v10 }
 0xe19   :  { %v915_v16 = vpop.permute.xlu1 %914 }
 0xe1a   :  { %v917_v38 = vmul.f32 %v2697_v37, %v915_v16  ;;  %894 = vrot.lane.b32.xlu0 %v892_v4, %s2907_s4 }
 0xe1c   :  { %919 = vrot.lane.b32.xlu1 %v917_v38, %s2907_s4 }
 0xe8c   :  { %v895_v25 = vpop.permute.xlu0 %894 }
 0xe8d   :  { %v897_v39 = vadd.f32 %v895_v25, %v887_v20 }
 0xe8e   :  { %v920_v42 = vpop.permute.xlu1 %919 }
 0xe8f   :  { %2698 = vtanh.f32 %v897_v39  ;;  %v922_v46 = vadd.f32 %v920_v42, %v912_v40 }
 0xe91   :  { %2700 = vtanh.f32 %v922_v46 }
 0xe9c   :  { %v2699_v62 = vpop.eup %2698 }
 0xe9d   :  { %900 = vrot.lane.b32.xlu0 %v2699_v62, %s2899_s24 }
 0xe9e   :  { %v2701_v3 = vpop.eup %2700 }
 0xe9f   :  { %925 = vrot.lane.b32.xlu1 %v2701_v3, %s2899_s24 }
 0xf0f   :  { %v901_v5 = vpop.permute.xlu0 %900 }
 0xf10   :  { %v903_v7 = vmul.f32 %v2695_v36, %v901_v5 }
 0xf11   :  { %v926_v45 = vpop.permute.xlu1 %925 }
 0xf12   :  { %v928_v14 = vmul.f32 %v2697_v37, %v926_v45  ;;  %930 = vrot.lane.b32.xlu0 %v903_v7, %s2907_s4 }
 0xf14   :  { %934 = vrot.lane.b32.xlu1 %v928_v14, %s2899_s24 }
 0xf84   :  { %v3282_v41 = vpop.permute.xlu0 %930 }
 0xf86   :  { %v3284_v47 = vpop.permute.xlu1 %934 }
 0xf87   :  { %v937_v15 = vsel %vm320_vm10, %v3282_v41, %v3284_v47 }
 0xf88   :  { %v938_v17 = vpack.c.bf16 %v937_v15, %v937_v15 }
 0xf8a   :  { %2441 = vmatmul.mubr.msk.bf16.vlgmr.msra.gmra.mxu0 %vm514_vm11, %v938_v17 }
 0xf8b   :  { %1163 = vmatpush1.bf16.msra.mxu0 %v3121_v55  ;;  %1186 = vmatprep.mubr.bf16.mxu0 %v2905_v0 }
 0xf8c   :  { %1164 = vmatprep.subr.bf16.mxu0 %v3126_v56 }
 0xf8f   :  { %1165 = vmatpush1.bf16.msra.mxu0 %v3134_v57 }
 0xf90   :  { %1166 = vmatprep.subr.bf16.mxu0 %v3141_v58 }
 0xf93   :  { %1167 = vmatpush1.bf16.msra.mxu0 %v3148_v59 }
 0xf94   :  { %1168 = vmatprep.subr.bf16.mxu0 %v3155_v60 }
 0xf97   :  { %1169 = vmatpush1.bf16.msra.mxu0 %v3162_v1 }
0x104a   :  { %v976_v19 = vpop.f32.mrf.mxu0 }
0x104b   :  { %v983_v21 = vadd.f32 %v976_v19, %v3091_v18 }
0x104c   :  { %v978_v24 = vpop.f32.mrf.mxu0 }
0x104d   :  { %v2442_v26 = vmul.f32 -1.442695, %v983_v21  ;;  %v984_v55 = vadd.f32 %v978_v24, %v3081_v6 }
0x104e   :  { %v980_v28 = vpop.f32.mrf.mxu0 }
0x104f   :  { %2702 = vpow2.f32 %v2442_v26  ;;  %v2444_v56 = vmul.f32 -1.442695, %v984_v55 }
0x1050   :  { %v981_v29 = vpop.f32.mrf.mxu0 }
0x1051   :  { %2704 = vpow2.f32 %v2444_v56 }
0x105c   :  { %v2703_v57 = vpop.eup %2702 }
0x105d   :  { %v988_v58 = vadd.f32 1.0, %v2703_v57 }
0x105e   :  { %v2705_v30 = vpop.eup %2704 }
0x105f   :  { %2706 = vrcp.f32 %v988_v58  ;;  %v1013_v59 = vadd.f32 1.0, %v2705_v30 }
0x1061   :  { %2708 = vrcp.f32 %v1013_v59 }
0x106c   :  { %v2707_v60 = vpop.eup %2706 }
0x106d   :  { %v991_v1 = vmul.f32 2.0, %v2707_v60  ;;  %v993_v53 = vmul.f32 %v2707_v60, %v897_v39 }
0x106e   :  { %v2709_v31 = vpop.eup %2708 }
0x106f   :  { %v2443_v32 = vadd.f32 -1.0, %v991_v1  ;;  %v1016_v18 = vmul.f32 2.0, %v2709_v31  ;;  %v1018_v12 = vmul.f32 %v2709_v31, %v922_v46 }
0x1071   :  { %995 = vrot.lane.b32.xlu0 %v2443_v32, %s2899_s24  ;;  %v2445_v33 = vadd.f32 -1.0, %v1016_v18 }
0x1073   :  { %1020 = vrot.lane.b32.xlu1 %v2445_v33, %s2899_s24 }
0x10e3   :  { %v996_v6 = vpop.permute.xlu0 %995 }
0x10e4   :  { %v998_v34 = vmul.f32 %v2707_v60, %v996_v6 }
0x10e5   :  { %v1021_v35 = vpop.permute.xlu1 %1020 }
0x10e6   :  { %v1023_v36 = vmul.f32 %v2709_v31, %v1021_v35  ;;  %1000 = vrot.lane.b32.xlu0 %v998_v34, %s2907_s4 }
0x10e8   :  { %1025 = vrot.lane.b32.xlu1 %v1023_v36, %s2907_s4 }
0x1158   :  { %v1001_v37 = vpop.permute.xlu0 %1000 }
0x1159   :  { %v1003_v63 = vadd.f32 %v1001_v37, %v993_v53 }
0x115a   :  { %v1026_v8 = vpop.permute.xlu1 %1025 }
0x115b   :  { %2710 = vtanh.f32 %v1003_v63  ;;  %v1028_v10 = vadd.f32 %v1026_v8, %v1018_v12 }
0x115d   :  { %2712 = vtanh.f32 %v1028_v10 }
0x1168   :  { %v2711_v4 = vpop.eup %2710 }
0x1169   :  { %1006 = vrot.lane.b32.xlu0 %v2711_v4, %s2899_s24 }
0x116a   :  { %v2713_v16 = vpop.eup %2712 }
0x116b   :  { %1031 = vrot.lane.b32.xlu1 %v2713_v16, %s2899_s24 }
0x11db   :  { %v1007_v38 = vpop.permute.xlu0 %1006 }
0x11dc   :  { %v1009_v20 = vmul.f32 %v2707_v60, %v1007_v38 }
0x11dd   :  { %v1032_v25 = vpop.permute.xlu1 %1031 }
0x11de   :  { %v1034_v40 = vmul.f32 %v2709_v31, %v1032_v25  ;;  %1036 = vrot.lane.b32.xlu0 %v1009_v20, %s2907_s4 }
0x11e0   :  { %1040 = vrot.lane.b32.xlu1 %v1034_v40, %s2899_s24 }
0x1250   :  { %v3308_v39 = vpop.permute.xlu0 %1036 }
0x1252   :  { %v3310_v42 = vpop.permute.xlu1 %1040 }
0x1253   :  { %v1043_v46 = vsel %vm320_vm10, %v3308_v39, %v3310_v42 }
0x1254   :  { %v1044_v62 = vpack.c.bf16 %v1043_v46, %v1043_v46 }
0x1256   :  { %2446 = vmatmul.mubr.msk.bf16.vlgmr.msra.gmra.mxu1 %vm514_vm11, %v1044_v62 }
0x1257   :  { %1371 = vmatprep.mubr.bf16.mxu1 %v2905_v0 }
0x1316   :  { %v1082_v3 = vpop.f32.mrf.mxu1 }
0x1317   :  { %v1089_v5 = vadd.f32 %v1082_v3, %v3095_v23 }
0x1318   :  { %v1084_v7 = vpop.f32.mrf.mxu1 }
0x1319   :  { %v2447_v45 = vmul.f32 -1.442695, %v1089_v5  ;;  %v1090_v14 = vadd.f32 %v1084_v7, %v3077_v2 }
0x131a   :  { %v1086_v15 = vpop.f32.mrf.mxu1 }
0x131b   :  { %2714 = vpow2.f32 %v2447_v45  ;;  %v2449_v17 = vmul.f32 -1.442695, %v1090_v14 }
0x131c   :  { %v1087_v19 = vpop.f32.mrf.mxu1 }
0x131d   :  { %2716 = vpow2.f32 %v2449_v17 }
0x1328   :  { %v2715_v21 = vpop.eup %2714 }
0x1329   :  { %v1094_v24 = vadd.f32 1.0, %v2715_v21 }
0x132a   :  { %v2717_v26 = vpop.eup %2716 }
0x132b   :  { %2718 = vrcp.f32 %v1094_v24  ;;  %v1119_v55 = vadd.f32 1.0, %v2717_v26 }
0x132d   :  { %2720 = vrcp.f32 %v1119_v55 }
0x1338   :  { %v2719_v28 = vpop.eup %2718 }
0x1339   :  { %v1097_v56 = vmul.f32 2.0, %v2719_v28  ;;  %v1099_v1 = vmul.f32 %v2719_v28, %v1003_v63 }
0x133a   :  { %v2721_v29 = vpop.eup %2720 }
0x133b   :  { %v2448_v57 = vadd.f32 -1.0, %v1097_v56  ;;  %v1122_v23 = vmul.f32 2.0, %v2721_v29  ;;  %v1124_v18 = vmul.f32 %v2721_v29, %v1028_v10 }
0x133d   :  { %1101 = vrot.lane.b32.xlu0 %v2448_v57, %s2899_s24  ;;  %v2450_v58 = vadd.f32 -1.0, %v1122_v23 }
0x133f   :  { %1126 = vrot.lane.b32.xlu1 %v2450_v58, %s2899_s24 }
0x13af   :  { %v1102_v2 = vpop.permute.xlu0 %1101 }
0x13b0   :  { %v1104_v30 = vmul.f32 %v2719_v28, %v1102_v2 }
0x13b1   :  { %v1127_v59 = vpop.permute.xlu1 %1126 }
0x13b2   :  { %v1129_v60 = vmul.f32 %v2721_v29, %v1127_v59  ;;  %1106 = vrot.lane.b32.xlu0 %v1104_v30, %s2907_s4  ;;  %v2614_v30 = vld [vmem:[%s3658_s5 + $0x30] ss:$8 sps:$4 sm:$0xff]   ;;  %v2616_v59 = vld [vmem:[%s3658_s5 + $0x34] ss:$8 sps:$4 sm:$0xff]  }
0x13b3   :  { %1347 = vmatprep.subr.bf16.mxu1 %v2616_v59 }
0x13b4   :  { %1131 = vrot.lane.b32.xlu1 %v1129_v60, %s2907_s4  ;;  %v2619_v60 = vld [vmem:[%s3658_s5 + $0x24] ss:$8 sps:$4 sm:$0xff]   ;;  %1348 = vmatpush1.bf16.msra.mxu1 %v2614_v30 }
0x13b5   :  { %1349 = vmatprep.subr.bf16.mxu1 %v2619_v60 }
0x1424   :  { %v1107_v31 = vpop.permute.xlu0 %1106 }
0x1425   :  { %v1109_v32 = vadd.f32 %v1107_v31, %v1099_v1  ;;  %v2617_v1 = vld [vmem:[%s3658_s5 + $0x20] ss:$8 sps:$4 sm:$0xff]   ;;  %v2622_v31 = vld [vmem:[%s3658_s5 + $0x14] ss:$8 sps:$4 sm:$0xff]  }
0x1426   :  { %v1132_v33 = vpop.permute.xlu1 %1131  ;;  %1350 = vmatpush1.bf16.msra.mxu1 %v2617_v1 }
0x1427   :  { %2722 = vtanh.f32 %v1109_v32  ;;  %v1134_v6 = vadd.f32 %v1132_v33, %v1124_v18  ;;  %1351 = vmatprep.subr.bf16.mxu1 %v2622_v31 }
0x1429   :  { %2724 = vtanh.f32 %v1134_v6 }
0x1434   :  { %v2723_v34 = vpop.eup %2722 }
0x1435   :  { %1112 = vrot.lane.b32.xlu0 %v2723_v34, %s2899_s24  ;;  %v2623_v34 = vld [vmem:[%s3658_s5] ss:$8 sps:$4 sm:$0xff]  }
0x1436   :  { %v2725_v35 = vpop.eup %2724 }
0x1437   :  { %1137 = vrot.lane.b32.xlu1 %v2725_v35, %s2899_s24 }
0x14a7   :  { %v1113_v36 = vpop.permute.xlu0 %1112 }
0x14a8   :  { %v1115_v53 = vmul.f32 %v2719_v28, %v1113_v36 }
0x14a9   :  { %v1138_v37 = vpop.permute.xlu1 %1137 }
0x14aa   :  { %v1140_v12 = vmul.f32 %v2721_v29, %v1138_v37  ;;  %1142 = vrot.lane.b32.xlu0 %v1115_v53, %s2907_s4 }
0x14ac   :  { %1146 = vrot.lane.b32.xlu1 %v1140_v12, %s2899_s24 }
0x151c   :  { %v3327_v63 = vpop.permute.xlu0 %1142 }
0x151e   :  { %v3329_v8 = vpop.permute.xlu1 %1146 }
0x151f   :  { %v1149_v10 = vsel %vm320_vm10, %v3327_v63, %v3329_v8 }
0x1520   :  { %v1150_v4 = vpack.c.bf16 %v1149_v10, %v1149_v10  ;;  %v1252_v10 = vsel %vm320_vm10, %v3202_v13, %v3329_v8  ;;  %v1255_v13 = vsel %vm320_vm10, %v3282_v41, %v3258_v50 }
0x1522   :  { %2451 = vmatmul.mubr.msk.bf16.vlgmr.msra.gmra.mxu0 %vm514_vm11, %v1150_v4 }
0x1523   :  { %1555 = vmatprep.mubr.bf16.mxu0 %v2905_v0 }
0x15e2   :  { %v1188_v16 = vpop.f32.mrf.mxu0 }
0x15e3   :  { %v1195_v38 = vadd.f32 %v1188_v16, %v3099_v27 }
0x15e4   :  { %v1190_v20 = vpop.f32.mrf.mxu0 }
0x15e5   :  { %v2452_v25 = vmul.f32 -1.442695, %v1195_v38  ;;  %v1196_v40 = vadd.f32 %v1190_v20, %v3073_v61  ;;  %v1253_v38 = vsel %vm320_vm10, %v3229_v44, %v3310_v42  ;;  %v1254_v20 = vsel %vm320_vm10, %v3256_v43, %v3284_v47 }
0x15e6   :  { %v1192_v46 = vpop.f32.mrf.mxu0  ;;  %v1257_v43 = vsel %vm320_vm10, %v3327_v63, %v3204_v49 }
0x15e7   :  { %2726 = vpow2.f32 %v2452_v25  ;;  %v2454_v62 = vmul.f32 -1.442695, %v1196_v40  ;;  %v1264_v25 = vpack.c.bf16 %v1254_v20, %v1253_v38 }
0x15e8   :  { %v1193_v3 = vpop.f32.mrf.mxu0 }
0x15e9   :  { %2728 = vpow2.f32 %v2454_v62 }
0x15f4   :  { %v2727_v5 = vpop.eup %2726 }
0x15f5   :  { %v1200_v7 = vadd.f32 1.0, %v2727_v5 }
0x15f6   :  { %v2729_v45 = vpop.eup %2728 }
0x15f7   :  { %2730 = vrcp.f32 %v1200_v7  ;;  %v1225_v14 = vadd.f32 1.0, %v2729_v45 }
0x15f9   :  { %2732 = vrcp.f32 %v1225_v14 }
0x1604   :  { %v2731_v15 = vpop.eup %2730 }
0x1605   :  { %v1203_v17 = vmul.f32 2.0, %v2731_v15  ;;  %v1205_v56 = vmul.f32 %v2731_v15, %v1109_v32  ;;  %v2620_v32 = vld [vmem:[%s3658_s5 + $0x10] ss:$8 sps:$4 sm:$0xff]  }
0x1606   :  { %v2733_v19 = vpop.eup %2732  ;;  %1352 = vmatpush1.bf16.msra.mxu1 %v2620_v32 }
0x1607   :  { %v2453_v21 = vadd.f32 -1.0, %v1203_v17  ;;  %v1228_v27 = vmul.f32 2.0, %v2733_v19  ;;  %v1230_v23 = vmul.f32 %v2733_v19, %v1134_v6  ;;  %v2625_v6 = vld [vmem:[%s3658_s5 + $0x4] ss:$8 sps:$4 sm:$0xff]  }
0x1608   :  { %1353 = vmatprep.subr.bf16.mxu1 %v2625_v6 }
0x1609   :  { %1207 = vrot.lane.b32.xlu1 %v2453_v21, %s2899_s24  ;;  %v2455_v24 = vadd.f32 -1.0, %v1228_v27 }
0x160a   :  { %1354 = vmatpush1.bf16.msra.mxu1 %v2623_v34 }
0x160b   :  { %1232 = vrot.lane.b32.xlu0 %v2455_v24, %s2899_s24 }
0x167b   :  { %v1208_v61 = vpop.permute.xlu1 %1207 }
0x167c   :  { %v1210_v26 = vmul.f32 %v2731_v15, %v1208_v61 }
0x167d   :  { %v1233_v55 = vpop.permute.xlu0 %1232 }
0x167e   :  { %v1235_v28 = vmul.f32 %v2733_v19, %v1233_v55  ;;  %1212 = vrot.lane.b32.xlu1 %v1210_v26, %s2907_s4 }
0x1680   :  { %1237 = vrot.lane.b32.xlu0 %v1235_v28, %s2907_s4 }
0x16f0   :  { %v1213_v29 = vpop.permute.xlu1 %1212 }
0x16f1   :  { %v1215_v57 = vadd.f32 %v1213_v29, %v1205_v56 }
0x16f2   :  { %v1238_v58 = vpop.permute.xlu0 %1237 }
0x16f3   :  { %2734 = vtanh.f32 %v1215_v57  ;;  %v1240_v2 = vadd.f32 %v1238_v58, %v1230_v23 }
0x16f5   :  { %2736 = vtanh.f32 %v1240_v2 }
0x1700   :  { %v2735_v18 = vpop.eup %2734 }
0x1701   :  { %1218 = vrot.lane.b32.xlu1 %v2735_v18, %s2899_s24 }
0x1702   :  { %v2737_v33 = vpop.eup %2736 }
0x1703   :  { %1243 = vrot.lane.b32.xlu0 %v2737_v33, %s2899_s24 }
0x1773   :  { %v1219_v35 = vpop.permute.xlu1 %1218 }
0x1774   :  { %v1221_v36 = vmul.f32 %v2731_v15, %v1219_v35 }
0x1775   :  { %v1244_v53 = vpop.permute.xlu0 %1243 }
0x1776   :  { %v1246_v37 = vmul.f32 %v2733_v19, %v1244_v53  ;;  %1259 = vrot.lane.b32.xlu1 %v1221_v36, %s2907_s4 }
0x1778   :  { %1248 = vrot.lane.b32.xlu0 %v1246_v37, %s2899_s24 }
0x17e8   :  { %v1260_v40 = vpop.permute.xlu1 %1259 }
0x17e9   :  { %v1262_v44 = vsel %vm320_vm10, %v1260_v40, %v3175_v11 }
0x17ea   :  { %v1249_v12 = vpop.permute.xlu0 %1248  ;;  %v1266_v47 = vpack.c.bf16 %v1262_v44, %v1257_v43 }
0x17eb   :  { %v1251_v4 = vsel %vm320_vm10, %v3173_v9, %v1249_v12  ;;  %v1256_v9 = vsel %vm320_vm10, %v3308_v39, %v3231_v48  ;;  %v1275_v48 = vld [vmem:[%s3660_s7] sm:$0x3] }
0x17ec   :  { %v1263_v16 = vpack.c.bf16 %v1252_v10, %v1251_v4  ;;  %v1265_v8 = vpack.c.bf16 %v1256_v9, %v1255_v13  ;;  %v1280_v50 = vrot.slane %v1275_v48, %v3063_v52  ;;  %v1284_v41 = vrot.slane %v1275_v48, %v3069_v54  ;;  %v3448_v48 = vld [vmem:[%s3659_s6 + $0x34] ss:$8 sps:$4 sm:$0xff]  }
0x17ed   :  { %1531 = vmatprep.subr.bf16.mxu0 %v3448_v48  ;;  %1743 = vmatprep.subr.bf16.mxu1 %v3448_v48 }
0x17ee   :  { %2464 = vmatmul.mubr.msk.bf16.vlgmr.msra.gmra.mxu1 %vm514_vm11, %v1263_v16 }
0x17ef   :  { %1381 = vmatprep.mubr.bf16.mxu1 %v2905_v0 }
0x17f6   :  { %2465 = vmatmul.mubr.msk.bf16.gmra.mxu1 %vm514_vm11, %v1264_v25 }
0x17f7   :  { %1391 = vmatprep.mubr.bf16.mxu1 %v2905_v0 }
0x17fe   :  { %2466 = vmatmul.mubr.msk.bf16.gmra.mxu1 %vm514_vm11, %v1265_v8 }
0x17ff   :  { %1401 = vmatprep.mubr.bf16.mxu1 %v2905_v0 }
0x1806   :  { %2467 = vmatmul.mubr.msk.bf16.gmra.mxu1 %vm514_vm11, %v1266_v47 }
0x1807   :  { %1767 = vmatprep.mubr.bf16.mxu1 %v2905_v0 }
0x18ae   :  { %v1373_v39 = vpop.f32.mrf.mxu1 }
0x18af   :  { %v1374_v42 = vadd.f32 %v1373_v39, %v1280_v50  ;;  %v3466_v39 = vld [vmem:[%s3659_s6 + $0x20] ss:$8 sps:$4 sm:$0xff]  }
0x18b0   :  { %v1375_v11 = vpop.f32.mrf.mxu1 }
0x18b1   :  { %v2468_v46 = vmul.f32 -1.442695, %v1374_v42  ;;  %v3405_v62 = vadd.f32 %v1375_v11, %v1284_v41  ;;  %v3473_v42 = vld [vmem:[%s3659_s6 + $0x14] ss:$8 sps:$4 sm:$0xff]   ;;  %v3480_v11 = vld [vmem:[%s3659_s6 + $0x10] ss:$8 sps:$4 sm:$0xff]  }
0x18b2   :  { %v1377_v49 = vpop.f32.mrf.mxu1 }
0x18b3   :  { %2738 = vpow2.f32 %v2468_v46  ;;  %v3407_v63 = vadd.f32 %v1377_v49, %v1280_v50  ;;  %v3487_v46 = vld [vmem:[%s3659_s6 + $0x4] ss:$8 sps:$4 sm:$0xff]  }
0x18b4   :  { %v1379_v3 = vpop.f32.mrf.mxu1 }
0x18b5   :  { %v3409_v5 = vadd.f32 %v1379_v3, %v1284_v41 }
0x18b6   :  { %v1383_v7 = vpop.f32.mrf.mxu1 }
0x18b7   :  { %v3411_v45 = vadd.f32 %v1383_v7, %v1280_v50  ;;  %v3498_v7 = vld [vmem:[%s3659_s6] ss:$8 sps:$4 sm:$0xff]  }
0x18b8   :  { %v1385_v14 = vpop.f32.mrf.mxu1 }
0x18b9   :  { %v3413_v15 = vadd.f32 %v1385_v14, %v1284_v41 }
0x18ba   :  { %v1387_v17 = vpop.f32.mrf.mxu1 }
0x18bb   :  { %v3415_v19 = vadd.f32 %v1387_v17, %v1280_v50 }
0x18bc   :  { %v1389_v21 = vpop.f32.mrf.mxu1 }
0x18bd   :  { %v3417_v27 = vadd.f32 %v1389_v21, %v1284_v41 }
0x18be   :  { %v1393_v24 = vpop.f32.mrf.mxu1 }
0x18bf   :  { %v3419_v61 = vadd.f32 %v1393_v24, %v1280_v50 }
0x18c0   :  { %v2739_v26 = vpop.eup %2738  ;;  %v1395_v55 = vpop.f32.mrf.mxu1 }
0x18c1   :  { %v1423_v28 = vadd.f32 1.0, %v2739_v26  ;;  %v3421_v56 = vadd.f32 %v1395_v55, %v1284_v41 }
0x18c2   :  { %v1397_v29 = vpop.f32.mrf.mxu1 }
0x18c3   :  { %2740 = vrcp.f32 %v1423_v28  ;;  %v3423_v57 = vadd.f32 %v1397_v29, %v1280_v50 }
0x18c4   :  { %v1399_v23 = vpop.f32.mrf.mxu1 }
0x18c5   :  { %v3425_v58 = vadd.f32 %v1399_v23, %v1284_v41 }
0x18c6   :  { %v1403_v2 = vpop.f32.mrf.mxu1 }
0x18c7   :  { %v3427_v30 = vadd.f32 %v1403_v2, %v1280_v50 }
0x18c8   :  { %v1405_v59 = vpop.f32.mrf.mxu1 }
0x18c9   :  { %v3429_v60 = vadd.f32 %v1405_v59, %v1284_v41 }
0x18ca   :  { %v1407_v1 = vpop.f32.mrf.mxu1 }
0x18cb   :  { %v3431_v31 = vadd.f32 %v1407_v1, %v1280_v50  ;;  %v3453_v50 = vld [vmem:[%s3659_s6 + $0x30] ss:$8 sps:$4 sm:$0xff]  }
0x18cc   :  { %v1409_v32 = vpop.f32.mrf.mxu1  ;;  %1532 = vmatpush1.bf16.msra.mxu0 %v3453_v50  ;;  %1744 = vmatpush1.bf16.msra.mxu1 %v3453_v50 }
0x18cd   :  { %v1410_v18 = vadd.f32 %v1409_v32, %v1284_v41  ;;  %v3458_v41 = vld [vmem:[%s3659_s6 + $0x24] ss:$8 sps:$4 sm:$0xff]  }
0x18ce   :  { %1533 = vmatprep.subr.bf16.mxu0 %v3458_v41  ;;  %1745 = vmatprep.subr.bf16.mxu1 %v3458_v41 }
0x18cf   :  { %v2470_v33 = vmul.f32 -1.442695, %v1410_v18 }
0x18d0   :  { %v2741_v6 = vpop.eup %2740  ;;  %1534 = vmatpush1.bf16.msra.mxu0 %v3466_v39  ;;  %1746 = vmatpush1.bf16.msra.mxu1 %v3466_v39 }
0x18d1   :  { %2742 = vpow2.f32 %v2470_v33  ;;  %v1426_v34 = vmul.f32 2.0, %v2741_v6  ;;  %v1428_v25 = vmul.f32 0.0, %v2741_v6  ;;  %1535 = vmatprep.subr.bf16.mxu0 %v3473_v42  ;;  %1747 = vmatprep.subr.bf16.mxu1 %v3473_v42 }
0x18d3   :  { %v2469_v35 = vadd.f32 -1.0, %v1426_v34 }
0x18d4   :  { %1536 = vmatpush1.bf16.msra.mxu0 %v3480_v11  ;;  %1748 = vmatpush1.bf16.msra.mxu1 %v3480_v11 }
0x18d5   :  { %1430 = vrot.lane.b32.xlu0 %v2469_v35, %s2899_s24  ;;  %1537 = vmatprep.subr.bf16.mxu0 %v3487_v46 }
0x18d6   :  { %1749 = vmatprep.subr.bf16.mxu1 %v3487_v46 }
0x18d8   :  { %1538 = vmatpush1.bf16.msra.mxu0 %v3498_v7  ;;  %1750 = vmatpush1.bf16.msra.mxu1 %v3498_v7 }
0x18d9   :  { %1637 = vmatprep.subr.bf16.mxu0 %v3448_v48  ;;  %1955 = vmatprep.subr.bf16.mxu1 %v3448_v48 }
0x18de   :  { %v2743_v36 = vpop.eup %2742 }
0x18df   :  { %v1448_v53 = vadd.f32 1.0, %v2743_v36 }
0x18e1   :  { %2744 = vrcp.f32 %v1448_v53 }
0x18ee   :  { %v2745_v37 = vpop.eup %2744 }
0x18ef   :  { %v1451_v12 = vmul.f32 2.0, %v2745_v37  ;;  %v1453_v40 = vmul.f32 0.0, %v2745_v37 }
0x18f1   :  { %v2471_v10 = vadd.f32 -1.0, %v1451_v12 }
0x18f3   :  { %1455 = vrot.lane.b32.xlu1 %v2471_v10, %s2899_s24 }
0x1947   :  { %v1431_v4 = vpop.permute.xlu0 %1430 }
0x1948   :  { %v1433_v16 = vmul.f32 %v2741_v6, %v1431_v4 }
0x194a   :  { %1435 = vrot.lane.b32.xlu0 %v1433_v16, %s2907_s4 }
0x1965   :  { %v1456_v38 = vpop.permute.xlu1 %1455 }
0x1966   :  { %v1458_v20 = vmul.f32 %v2745_v37, %v1456_v38 }
0x1968   :  { %1460 = vrot.lane.b32.xlu1 %v1458_v20, %s2907_s4 }
0x19bc   :  { %v1436_v9 = vpop.permute.xlu0 %1435 }
0x19bd   :  { %v3437_v13 = vadd.f32 %v1436_v9, %v1428_v25 }
0x19bf   :  { %2746 = vtanh.f32 %v3437_v13 }
0x19cc   :  { %v2747_v8 = vpop.eup %2746 }
0x19cd   :  { %1441 = vrot.lane.b32.xlu0 %v2747_v8, %s2899_s24 }
0x19da   :  { %v1461_v44 = vpop.permute.xlu1 %1460 }
0x19db   :  { %v3441_v43 = vadd.f32 %v1461_v44, %v1453_v40 }
0x19dd   :  { %2748 = vtanh.f32 %v3441_v43 }
0x19ea   :  { %v2749_v47 = vpop.eup %2748 }
0x19eb   :  { %1466 = vrot.lane.b32.xlu1 %v2749_v47, %s2899_s24 }
0x1a3f   :  { %v1442_v49 = vpop.permute.xlu0 %1441 }
0x1a40   :  { %v1444_v3 = vmul.f32 %v2741_v6, %v1442_v49 }
0x1a42   :  { %1471 = vrot.lane.b32.xlu0 %v1444_v3, %s2907_s4 }
0x1a5d   :  { %v1467_v14 = vpop.permute.xlu1 %1466 }
0x1a5e   :  { %v1469_v17 = vmul.f32 %v2745_v37, %v1467_v14 }
0x1a60   :  { %1475 = vrot.lane.b32.xlu1 %v1469_v17, %s2899_s24 }
0x1ab4   :  { %v1472_v21 = vpop.permute.xlu0 %1471 }
0x1ad2   :  { %v1476_v24 = vpop.permute.xlu1 %1475 }
0x1ad3   :  { %v1478_v26 = vsel %vm320_vm10, %v1472_v21, %v1476_v24 }
0x1ad4   :  { %v1479_v55 = vpack.c.bf16 %v1478_v26, %v1478_v26 }
0x1ad6   :  { %2480 = vmatmul.mubr.msk.bf16.vlgmr.msra.gmra.mxu0 %vm514_vm11, %v1479_v55 }
0x1ad7   :  { %1638 = vmatpush1.bf16.msra.mxu0 %v3453_v50  ;;  %1661 = vmatprep.mubr.bf16.mxu0 %v2905_v0 }
0x1ad8   :  { %1639 = vmatprep.subr.bf16.mxu0 %v3458_v41 }
0x1adb   :  { %1640 = vmatpush1.bf16.msra.mxu0 %v3466_v39 }
0x1adc   :  { %1641 = vmatprep.subr.bf16.mxu0 %v3473_v42 }
0x1adf   :  { %1642 = vmatpush1.bf16.msra.mxu0 %v3480_v11 }
0x1ae0   :  { %1643 = vmatprep.subr.bf16.mxu0 %v3487_v46 }
0x1ae3   :  { %1644 = vmatpush1.bf16.msra.mxu0 %v3498_v7 }
0x1ae4   :  { %1849 = vmatprep.subr.bf16.mxu0 %v3448_v48 }
0x1b96   :  { %v1557_v28 = vpop.f32.mrf.mxu0 }
0x1b97   :  { %v1564_v29 = vadd.f32 %v1557_v28, %v3407_v63 }
0x1b98   :  { %v1559_v23 = vpop.f32.mrf.mxu0 }
0x1b99   :  { %v2481_v2 = vmul.f32 -1.442695, %v1564_v29  ;;  %v1565_v59 = vadd.f32 %v1559_v23, %v3429_v60 }
0x1b9a   :  { %v1561_v1 = vpop.f32.mrf.mxu0 }
0x1b9b   :  { %2750 = vpow2.f32 %v2481_v2  ;;  %v2483_v32 = vmul.f32 -1.442695, %v1565_v59 }
0x1b9c   :  { %v1562_v18 = vpop.f32.mrf.mxu0 }
0x1b9d   :  { %2752 = vpow2.f32 %v2483_v32 }
0x1ba8   :  { %v2751_v33 = vpop.eup %2750 }
0x1ba9   :  { %v1569_v6 = vadd.f32 1.0, %v2751_v33 }
0x1baa   :  { %v2753_v34 = vpop.eup %2752 }
0x1bab   :  { %2754 = vrcp.f32 %v1569_v6  ;;  %v1594_v35 = vadd.f32 1.0, %v2753_v34 }
0x1bad   :  { %2756 = vrcp.f32 %v1594_v35 }
0x1bb8   :  { %v2755_v36 = vpop.eup %2754 }
0x1bb9   :  { %v1572_v53 = vmul.f32 2.0, %v2755_v36  ;;  %v1574_v20 = vmul.f32 %v2755_v36, %v3437_v13 }
0x1bba   :  { %v2757_v37 = vpop.eup %2756 }
0x1bbb   :  { %v2482_v12 = vadd.f32 -1.0, %v1572_v53  ;;  %v1597_v63 = vmul.f32 2.0, %v2757_v37  ;;  %v1599_v8 = vmul.f32 %v2757_v37, %v3441_v43 }
0x1bbd   :  { %1576 = vrot.lane.b32.xlu0 %v2482_v12, %s2899_s24  ;;  %v2484_v10 = vadd.f32 -1.0, %v1597_v63 }
0x1bbf   :  { %1601 = vrot.lane.b32.xlu1 %v2484_v10, %s2899_s24 }
0x1c2f   :  { %v1577_v60 = vpop.permute.xlu0 %1576 }
0x1c30   :  { %v1579_v4 = vmul.f32 %v2755_v36, %v1577_v60 }
0x1c31   :  { %v1602_v16 = vpop.permute.xlu1 %1601 }
0x1c32   :  { %v1604_v38 = vmul.f32 %v2757_v37, %v1602_v16  ;;  %1581 = vrot.lane.b32.xlu0 %v1579_v4, %s2907_s4 }
0x1c34   :  { %1606 = vrot.lane.b32.xlu1 %v1604_v38, %s2907_s4 }
0x1ca4   :  { %v1582_v25 = vpop.permute.xlu0 %1581 }
0x1ca5   :  { %v1584_v9 = vadd.f32 %v1582_v25, %v1574_v20 }
0x1ca6   :  { %v1607_v40 = vpop.permute.xlu1 %1606 }
0x1ca7   :  { %2758 = vtanh.f32 %v1584_v9  ;;  %v1609_v44 = vadd.f32 %v1607_v40, %v1599_v8 }
0x1ca9   :  { %2760 = vtanh.f32 %v1609_v44 }
0x1cb4   :  { %v2759_v47 = vpop.eup %2758 }
0x1cb5   :  { %1587 = vrot.lane.b32.xlu0 %v2759_v47, %s2899_s24 }
0x1cb6   :  { %v2761_v49 = vpop.eup %2760 }
0x1cb7   :  { %1612 = vrot.lane.b32.xlu1 %v2761_v49, %s2899_s24 }
0x1d27   :  { %v1588_v3 = vpop.permute.xlu0 %1587 }
0x1d28   :  { %v1590_v14 = vmul.f32 %v2755_v36, %v1588_v3 }
0x1d29   :  { %v1613_v17 = vpop.permute.xlu1 %1612 }
0x1d2a   :  { %v1615_v21 = vmul.f32 %v2757_v37, %v1613_v17  ;;  %1617 = vrot.lane.b32.xlu0 %v1590_v14, %s2907_s4 }
0x1d2c   :  { %1621 = vrot.lane.b32.xlu1 %v1615_v21, %s2899_s24 }
0x1d9c   :  { %v1618_v13 = vpop.permute.xlu0 %1617 }
0x1d9e   :  { %v1622_v43 = vpop.permute.xlu1 %1621 }
0x1d9f   :  { %v1624_v24 = vsel %vm320_vm10, %v1618_v13, %v1622_v43 }
0x1da0   :  { %v1625_v26 = vpack.c.bf16 %v1624_v24, %v1624_v24 }
0x1da2   :  { %2485 = vmatmul.mubr.msk.bf16.vlgmr.msra.gmra.mxu0 %vm514_vm11, %v1625_v26 }
0x1da3   :  { %1850 = vmatpush1.bf16.msra.mxu0 %v3453_v50  ;;  %1873 = vmatprep.mubr.bf16.mxu0 %v2905_v0 }
0x1da4   :  { %1851 = vmatprep.subr.bf16.mxu0 %v3458_v41 }
0x1da7   :  { %1852 = vmatpush1.bf16.msra.mxu0 %v3466_v39 }
0x1da8   :  { %1853 = vmatprep.subr.bf16.mxu0 %v3473_v42 }
0x1dab   :  { %1854 = vmatpush1.bf16.msra.mxu0 %v3480_v11 }
0x1dac   :  { %1855 = vmatprep.subr.bf16.mxu0 %v3487_v46 }
0x1daf   :  { %1856 = vmatpush1.bf16.msra.mxu0 %v3498_v7 }
0x1db0   :  { %2061 = vmatprep.subr.bf16.mxu0 %v3448_v48 }
0x1e62   :  { %v1663_v55 = vpop.f32.mrf.mxu0 }
0x1e63   :  { %v1670_v28 = vadd.f32 %v1663_v55, %v3411_v45 }
0x1e64   :  { %v1665_v29 = vpop.f32.mrf.mxu0 }
0x1e65   :  { %v2486_v23 = vmul.f32 -1.442695, %v1670_v28  ;;  %v1671_v2 = vadd.f32 %v1665_v29, %v3425_v58 }
0x1e66   :  { %v1667_v59 = vpop.f32.mrf.mxu0 }
0x1e67   :  { %2762 = vpow2.f32 %v2486_v23  ;;  %v2488_v1 = vmul.f32 -1.442695, %v1671_v2 }
0x1e68   :  { %v1668_v32 = vpop.f32.mrf.mxu0 }
0x1e69   :  { %2764 = vpow2.f32 %v2488_v1 }
0x1e74   :  { %v2763_v18 = vpop.eup %2762 }
0x1e75   :  { %v1675_v33 = vadd.f32 1.0, %v2763_v18 }
0x1e76   :  { %v2765_v6 = vpop.eup %2764 }
0x1e77   :  { %2766 = vrcp.f32 %v1675_v33  ;;  %v1700_v34 = vadd.f32 1.0, %v2765_v6 }
0x1e79   :  { %2768 = vrcp.f32 %v1700_v34 }
0x1e84   :  { %v2767_v35 = vpop.eup %2766 }
0x1e85   :  { %v1678_v36 = vmul.f32 2.0, %v2767_v35  ;;  %v1680_v4 = vmul.f32 %v2767_v35, %v1584_v9 }
0x1e86   :  { %v2769_v53 = vpop.eup %2768 }
0x1e87   :  { %v2487_v37 = vadd.f32 -1.0, %v1678_v36  ;;  %v1703_v45 = vmul.f32 2.0, %v2769_v53  ;;  %v1705_v20 = vmul.f32 %v2769_v53, %v1609_v44 }
0x1e89   :  { %1682 = vrot.lane.b32.xlu0 %v2487_v37, %s2899_s24  ;;  %v2489_v12 = vadd.f32 -1.0, %v1703_v45 }
0x1e8b   :  { %1707 = vrot.lane.b32.xlu1 %v2489_v12, %s2899_s24 }
0x1efb   :  { %v1683_v58 = vpop.permute.xlu0 %1682 }
0x1efc   :  { %v1685_v63 = vmul.f32 %v2767_v35, %v1683_v58 }
0x1efd   :  { %v1708_v10 = vpop.permute.xlu1 %1707 }
0x1efe   :  { %v1710_v60 = vmul.f32 %v2769_v53, %v1708_v10  ;;  %1687 = vrot.lane.b32.xlu0 %v1685_v63, %s2907_s4 }
0x1f00   :  { %1712 = vrot.lane.b32.xlu1 %v1710_v60, %s2907_s4 }
0x1f70   :  { %v1688_v16 = vpop.permute.xlu0 %1687 }
0x1f71   :  { %v1690_v38 = vadd.f32 %v1688_v16, %v1680_v4 }
0x1f72   :  { %v1713_v25 = vpop.permute.xlu1 %1712 }
0x1f73   :  { %2770 = vtanh.f32 %v1690_v38  ;;  %v1715_v8 = vadd.f32 %v1713_v25, %v1705_v20 }
0x1f75   :  { %2772 = vtanh.f32 %v1715_v8 }
0x1f80   :  { %v2771_v40 = vpop.eup %2770 }
0x1f81   :  { %1693 = vrot.lane.b32.xlu0 %v2771_v40, %s2899_s24 }
0x1f82   :  { %v2773_v47 = vpop.eup %2772 }
0x1f83   :  { %1718 = vrot.lane.b32.xlu1 %v2773_v47, %s2899_s24 }
0x1ff3   :  { %v1694_v49 = vpop.permute.xlu0 %1693 }
0x1ff4   :  { %v1696_v3 = vmul.f32 %v2767_v35, %v1694_v49 }
0x1ff5   :  { %v1719_v14 = vpop.permute.xlu1 %1718 }
0x1ff6   :  { %v1721_v17 = vmul.f32 %v2769_v53, %v1719_v14  ;;  %1723 = vrot.lane.b32.xlu0 %v1696_v3, %s2907_s4 }
0x1ff8   :  { %1727 = vrot.lane.b32.xlu1 %v1721_v17, %s2899_s24 }
0x2068   :  { %v1724_v9 = vpop.permute.xlu0 %1723 }
0x206a   :  { %v1728_v44 = vpop.permute.xlu1 %1727 }
0x206b   :  { %v1730_v21 = vsel %vm320_vm10, %v1724_v9, %v1728_v44 }
0x206c   :  { %v1731_v13 = vpack.c.bf16 %v1730_v21, %v1730_v21 }
0x206e   :  { %2490 = vmatmul.mubr.msk.bf16.vlgmr.msra.gmra.mxu1 %vm514_vm11, %v1731_v13 }
0x206f   :  { %1956 = vmatpush1.bf16.msra.mxu1 %v3453_v50  ;;  %1979 = vmatprep.mubr.bf16.mxu1 %v2905_v0 }
0x2070   :  { %1957 = vmatprep.subr.bf16.mxu1 %v3458_v41 }
0x2073   :  { %1958 = vmatpush1.bf16.msra.mxu1 %v3466_v39 }
0x2074   :  { %1959 = vmatprep.subr.bf16.mxu1 %v3473_v42 }
0x2077   :  { %1960 = vmatpush1.bf16.msra.mxu1 %v3480_v11 }
0x2078   :  { %1961 = vmatprep.subr.bf16.mxu1 %v3487_v46 }
0x207b   :  { %1962 = vmatpush1.bf16.msra.mxu1 %v3498_v7 }
0x207c   :  { %2167 = vmatprep.subr.bf16.mxu1 %v3448_v48 }
0x212e   :  { %v1769_v43 = vpop.f32.mrf.mxu1 }
0x212f   :  { %v1776_v24 = vadd.f32 %v1769_v43, %v3415_v19 }
0x2130   :  { %v1771_v26 = vpop.f32.mrf.mxu1 }
0x2131   :  { %v2491_v55 = vmul.f32 -1.442695, %v1776_v24  ;;  %v1777_v28 = vadd.f32 %v1771_v26, %v3421_v56 }
0x2132   :  { %v1773_v29 = vpop.f32.mrf.mxu1 }
0x2133   :  { %2774 = vpow2.f32 %v2491_v55  ;;  %v2493_v23 = vmul.f32 -1.442695, %v1777_v28 }
0x2134   :  { %v1774_v2 = vpop.f32.mrf.mxu1 }
0x2135   :  { %2776 = vpow2.f32 %v2493_v23 }
0x2140   :  { %v2775_v59 = vpop.eup %2774 }
0x2141   :  { %v1781_v1 = vadd.f32 1.0, %v2775_v59 }
0x2142   :  { %v2777_v32 = vpop.eup %2776 }
0x2143   :  { %2778 = vrcp.f32 %v1781_v1  ;;  %v1806_v18 = vadd.f32 1.0, %v2777_v32 }
0x2145   :  { %2780 = vrcp.f32 %v1806_v18 }
0x2150   :  { %v2779_v33 = vpop.eup %2778 }
0x2151   :  { %v1784_v48 = vmul.f32 2.0, %v2779_v33  ;;  %v1786_v45 = vmul.f32 %v2779_v33, %v1690_v38 }
0x2152   :  { %v2781_v6 = vpop.eup %2780 }
0x2153   :  { %v2492_v34 = vadd.f32 -1.0, %v1784_v48  ;;  %v1809_v19 = vmul.f32 2.0, %v2781_v6  ;;  %v1811_v63 = vmul.f32 %v2781_v6, %v1715_v8 }
0x2155   :  { %1788 = vrot.lane.b32.xlu0 %v2492_v34, %s2899_s24  ;;  %v2494_v35 = vadd.f32 -1.0, %v1809_v19 }
0x2157   :  { %1813 = vrot.lane.b32.xlu1 %v2494_v35, %s2899_s24 }
0x21c7   :  { %v1789_v56 = vpop.permute.xlu0 %1788 }
0x21c8   :  { %v1791_v36 = vmul.f32 %v2779_v33, %v1789_v56 }
0x21c9   :  { %v1814_v53 = vpop.permute.xlu1 %1813 }
0x21ca   :  { %v1816_v37 = vmul.f32 %v2781_v6, %v1814_v53  ;;  %1793 = vrot.lane.b32.xlu0 %v1791_v36, %s2907_s4 }
0x21cc   :  { %1818 = vrot.lane.b32.xlu1 %v1816_v37, %s2907_s4 }
0x223c   :  { %v1794_v12 = vpop.permute.xlu0 %1793 }
0x223d   :  { %v1796_v58 = vadd.f32 %v1794_v12, %v1786_v45 }
0x223e   :  { %v1819_v10 = vpop.permute.xlu1 %1818 }
0x223f   :  { %2782 = vtanh.f32 %v1796_v58  ;;  %v1821_v60 = vadd.f32 %v1819_v10, %v1811_v63 }
0x2241   :  { %2784 = vtanh.f32 %v1821_v60 }
0x224c   :  { %v2783_v4 = vpop.eup %2782 }
0x224d   :  { %1799 = vrot.lane.b32.xlu0 %v2783_v4, %s2899_s24 }
0x224e   :  { %v2785_v16 = vpop.eup %2784 }
0x224f   :  { %1824 = vrot.lane.b32.xlu1 %v2785_v16, %s2899_s24 }
0x22bf   :  { %v1800_v20 = vpop.permute.xlu0 %1799 }
0x22c0   :  { %v1802_v25 = vmul.f32 %v2779_v33, %v1800_v20 }
0x22c1   :  { %v1825_v40 = vpop.permute.xlu1 %1824 }
0x22c2   :  { %v1827_v47 = vmul.f32 %v2781_v6, %v1825_v40  ;;  %1829 = vrot.lane.b32.xlu0 %v1802_v25, %s2907_s4 }
0x22c4   :  { %1833 = vrot.lane.b32.xlu1 %v1827_v47, %s2899_s24 }
0x2334   :  { %v1830_v38 = vpop.permute.xlu0 %1829 }
0x2336   :  { %v1834_v8 = vpop.permute.xlu1 %1833 }
0x2337   :  { %v1836_v49 = vsel %vm320_vm10, %v1830_v38, %v1834_v8 }
0x2338   :  { %v1837_v3 = vpack.c.bf16 %v1836_v49, %v1836_v49 }
0x233a   :  { %2495 = vmatmul.mubr.msk.bf16.vlgmr.msra.gmra.mxu0 %vm514_vm11, %v1837_v3 }
0x233b   :  { %2062 = vmatpush1.bf16.msra.mxu0 %v3453_v50  ;;  %2085 = vmatprep.mubr.bf16.mxu0 %v2905_v0 }
0x233c   :  { %2063 = vmatprep.subr.bf16.mxu0 %v3458_v41 }
0x233f   :  { %2064 = vmatpush1.bf16.msra.mxu0 %v3466_v39 }
0x2340   :  { %2065 = vmatprep.subr.bf16.mxu0 %v3473_v42 }
0x2343   :  { %2066 = vmatpush1.bf16.msra.mxu0 %v3480_v11 }
0x2344   :  { %2067 = vmatprep.subr.bf16.mxu0 %v3487_v46 }
0x2347   :  { %2068 = vmatpush1.bf16.msra.mxu0 %v3498_v7 }
0x2348   :  { %2567 = vmatprep.subr.bf16.mxu0 %v2906_v22 }
0x23fa   :  { %v1875_v14 = vpop.f32.mrf.mxu0 }
0x23fb   :  { %v1882_v17 = vadd.f32 %v1875_v14, %v3419_v61 }
0x23fc   :  { %v1877_v9 = vpop.f32.mrf.mxu0 }
0x23fd   :  { %v2496_v44 = vmul.f32 -1.442695, %v1882_v17  ;;  %v1883_v21 = vadd.f32 %v1877_v9, %v3417_v27 }
0x23fe   :  { %v1879_v13 = vpop.f32.mrf.mxu0 }
0x23ff   :  { %2786 = vpow2.f32 %v2496_v44  ;;  %v2498_v43 = vmul.f32 -1.442695, %v1883_v21 }
0x2400   :  { %v1880_v24 = vpop.f32.mrf.mxu0 }
0x2401   :  { %2788 = vpow2.f32 %v2498_v43 }
0x240c   :  { %v2787_v26 = vpop.eup %2786 }
0x240d   :  { %v1887_v55 = vadd.f32 1.0, %v2787_v26 }
0x240e   :  { %v2789_v28 = vpop.eup %2788 }
0x240f   :  { %2790 = vrcp.f32 %v1887_v55  ;;  %v1912_v29 = vadd.f32 1.0, %v2789_v28 }
0x2411   :  { %2792 = vrcp.f32 %v1912_v29 }
0x241c   :  { %v2791_v23 = vpop.eup %2790 }
0x241d   :  { %v1890_v2 = vmul.f32 2.0, %v2791_v23  ;;  %v1892_v6 = vmul.f32 %v2791_v23, %v1796_v58 }
0x241e   :  { %v2793_v59 = vpop.eup %2792 }
0x241f   :  { %v2497_v1 = vadd.f32 -1.0, %v1890_v2  ;;  %v1915_v61 = vmul.f32 2.0, %v2793_v59  ;;  %v1917_v35 = vmul.f32 %v2793_v59, %v1821_v60 }
0x2421   :  { %1894 = vrot.lane.b32.xlu0 %v2497_v1, %s2899_s24  ;;  %v2499_v32 = vadd.f32 -1.0, %v1915_v61 }
0x2423   :  { %1919 = vrot.lane.b32.xlu1 %v2499_v32, %s2899_s24 }
0x2493   :  { %v1895_v27 = vpop.permute.xlu0 %1894 }
0x2494   :  { %v1897_v18 = vmul.f32 %v2791_v23, %v1895_v27 }
0x2495   :  { %v1920_v33 = vpop.permute.xlu1 %1919 }
0x2496   :  { %v1922_v48 = vmul.f32 %v2793_v59, %v1920_v33  ;;  %1899 = vrot.lane.b32.xlu0 %v1897_v18, %s2907_s4 }
0x2498   :  { %1924 = vrot.lane.b32.xlu1 %v1922_v48, %s2907_s4 }
0x2508   :  { %v1900_v34 = vpop.permute.xlu0 %1899 }
0x2509   :  { %v1902_v19 = vadd.f32 %v1900_v34, %v1892_v6 }
0x250a   :  { %v1925_v56 = vpop.permute.xlu1 %1924 }
0x250b   :  { %2794 = vtanh.f32 %v1902_v19  ;;  %v1927_v36 = vadd.f32 %v1925_v56, %v1917_v35 }
0x250d   :  { %2796 = vtanh.f32 %v1927_v36 }
0x2518   :  { %v2795_v53 = vpop.eup %2794 }
0x2519   :  { %1905 = vrot.lane.b32.xlu0 %v2795_v53, %s2899_s24 }
0x251a   :  { %v2797_v37 = vpop.eup %2796 }
0x251b   :  { %1930 = vrot.lane.b32.xlu1 %v2797_v37, %s2899_s24 }
0x258b   :  { %v1906_v45 = vpop.permute.xlu0 %1905 }
0x258c   :  { %v1908_v12 = vmul.f32 %v2791_v23, %v1906_v45 }
0x258d   :  { %v1931_v63 = vpop.permute.xlu1 %1930 }
0x258e   :  { %v1933_v10 = vmul.f32 %v2793_v59, %v1931_v63  ;;  %1935 = vrot.lane.b32.xlu0 %v1908_v12, %s2907_s4 }
0x2590   :  { %1939 = vrot.lane.b32.xlu1 %v1933_v10, %s2899_s24 }
0x2600   :  { %v1936_v58 = vpop.permute.xlu0 %1935 }
0x2602   :  { %v1940_v60 = vpop.permute.xlu1 %1939 }
0x2603   :  { %v1942_v4 = vsel %vm320_vm10, %v1936_v58, %v1940_v60 }
0x2604   :  { %v1943_v16 = vpack.c.bf16 %v1942_v4, %v1942_v4 }
0x2606   :  { %2500 = vmatmul.mubr.msk.bf16.vlgmr.msra.gmra.mxu1 %vm514_vm11, %v1943_v16 }
0x2607   :  { %2168 = vmatpush1.bf16.msra.mxu1 %v3453_v50  ;;  %2191 = vmatprep.mubr.bf16.mxu1 %v2905_v0 }
0x2608   :  { %2169 = vmatprep.subr.bf16.mxu1 %v3458_v41 }
0x260b   :  { %2170 = vmatpush1.bf16.msra.mxu1 %v3466_v39 }
0x260c   :  { %2171 = vmatprep.subr.bf16.mxu1 %v3473_v42 }
0x260f   :  { %2172 = vmatpush1.bf16.msra.mxu1 %v3480_v11 }
0x2610   :  { %2173 = vmatprep.subr.bf16.mxu1 %v3487_v46 }
0x2613   :  { %2174 = vmatpush1.bf16.msra.mxu1 %v3498_v7 }
0x26c6   :  { %v1981_v20 = vpop.f32.mrf.mxu1 }
0x26c7   :  { %v1988_v25 = vadd.f32 %v1981_v20, %v3423_v57 }
0x26c8   :  { %v1983_v40 = vpop.f32.mrf.mxu1 }
0x26c9   :  { %v2501_v47 = vmul.f32 -1.442695, %v1988_v25  ;;  %v1989_v50 = vadd.f32 %v1983_v40, %v3413_v15 }
0x26ca   :  { %v1985_v0 = vpop.f32.mrf.mxu1 }
0x26cb   :  { %2798 = vpow2.f32 %v2501_v47  ;;  %v2503_v41 = vmul.f32 -1.442695, %v1989_v50 }
0x26cc   :  { %v1986_v38 = vpop.f32.mrf.mxu1 }
0x26cd   :  { %2800 = vpow2.f32 %v2503_v41 }
0x26d8   :  { %v2799_v39 = vpop.eup %2798 }
0x26d9   :  { %v1993_v42 = vadd.f32 1.0, %v2799_v39 }
0x26da   :  { %v2801_v8 = vpop.eup %2800 }
0x26db   :  { %2802 = vrcp.f32 %v1993_v42  ;;  %v2018_v11 = vadd.f32 1.0, %v2801_v8 }
0x26dd   :  { %2804 = vrcp.f32 %v2018_v11 }
0x26e8   :  { %v2803_v46 = vpop.eup %2802 }
0x26e9   :  { %v1996_v7 = vmul.f32 2.0, %v2803_v46  ;;  %v1998_v21 = vmul.f32 %v2803_v46, %v1902_v19 }
0x26ea   :  { %v2805_v49 = vpop.eup %2804 }
0x26eb   :  { %v2502_v3 = vadd.f32 -1.0, %v1996_v7  ;;  %v2021_v57 = vmul.f32 2.0, %v2805_v49  ;;  %v2023_v24 = vmul.f32 %v2805_v49, %v1927_v36 }
0x26ed   :  { %2000 = vrot.lane.b32.xlu0 %v2502_v3, %s2899_s24  ;;  %v2504_v14 = vadd.f32 -1.0, %v2021_v57 }
0x26ef   :  { %2025 = vrot.lane.b32.xlu1 %v2504_v14, %s2899_s24 }
0x275f   :  { %v2001_v15 = vpop.permute.xlu0 %2000 }
0x2760   :  { %v2003_v17 = vmul.f32 %v2803_v46, %v2001_v15 }
0x2761   :  { %v2026_v9 = vpop.permute.xlu1 %2025 }
0x2762   :  { %v2028_v44 = vmul.f32 %v2805_v49, %v2026_v9  ;;  %2005 = vrot.lane.b32.xlu0 %v2003_v17, %s2907_s4 }
0x2764   :  { %2030 = vrot.lane.b32.xlu1 %v2028_v44, %s2907_s4 }
0x27d4   :  { %v2006_v13 = vpop.permute.xlu0 %2005 }
0x27d5   :  { %v2008_v43 = vadd.f32 %v2006_v13, %v1998_v21 }
0x27d6   :  { %v2031_v26 = vpop.permute.xlu1 %2030 }
0x27d7   :  { %2806 = vtanh.f32 %v2008_v43  ;;  %v2033_v55 = vadd.f32 %v2031_v26, %v2023_v24 }
0x27d9   :  { %2808 = vtanh.f32 %v2033_v55 }
0x27e4   :  { %v2807_v28 = vpop.eup %2806 }
0x27e5   :  { %2011 = vrot.lane.b32.xlu0 %v2807_v28, %s2899_s24 }
0x27e6   :  { %v2809_v29 = vpop.eup %2808 }
0x27e7   :  { %2036 = vrot.lane.b32.xlu1 %v2809_v29, %s2899_s24 }
0x2857   :  { %v2012_v23 = vpop.permute.xlu0 %2011 }
0x2858   :  { %v2014_v2 = vmul.f32 %v2803_v46, %v2012_v23 }
0x2859   :  { %v2037_v59 = vpop.permute.xlu1 %2036 }
0x285a   :  { %v2039_v1 = vmul.f32 %v2805_v49, %v2037_v59  ;;  %2041 = vrot.lane.b32.xlu0 %v2014_v2, %s2907_s4 }
0x285c   :  { %2045 = vrot.lane.b32.xlu1 %v2039_v1, %s2899_s24 }
0x28cc   :  { %v2042_v61 = vpop.permute.xlu0 %2041 }
0x28ce   :  { %v2046_v32 = vpop.permute.xlu1 %2045 }
0x28cf   :  { %v2048_v27 = vsel %vm320_vm10, %v2042_v61, %v2046_v32 }
0x28d0   :  { %v2049_v18 = vpack.c.bf16 %v2048_v27, %v2048_v27 }
0x28d2   :  { %2505 = vmatmul.mubr.msk.bf16.vlgmr.msra.gmra.mxu0 %vm514_vm11, %v2049_v18 }
0x28d3   :  { %2575 = vmatprep.mubr.msk.bf16.mxu0 %vm2908_vm12, %v2906_v22 }
0x2992   :  { %v2087_v33 = vpop.f32.mrf.mxu0 }
0x2993   :  { %v2094_v48 = vadd.f32 %v2087_v33, %v3427_v30 }
0x2994   :  { %v2089_v6 = vpop.f32.mrf.mxu0 }
0x2995   :  { %v2506_v34 = vmul.f32 -1.442695, %v2094_v48  ;;  %v2095_v19 = vadd.f32 %v2089_v6, %v3409_v5 }
0x2996   :  { %v2091_v35 = vpop.f32.mrf.mxu0 }
0x2997   :  { %2810 = vpow2.f32 %v2506_v34  ;;  %v2508_v56 = vmul.f32 -1.442695, %v2095_v19 }
0x2998   :  { %v2092_v36 = vpop.f32.mrf.mxu0 }
0x2999   :  { %2812 = vpow2.f32 %v2508_v56  ;;  %v2638_v56 = vld [vmem:[#allocation4 + $0x18] sm:$0xff]   ;;  %v2639_v36 = vld [vmem:[#allocation4 + $0x10] sm:$0xff]  }
0x299a   :  { %2568 = vmatpush3.bf16.msra.mxu0 %v2638_v56 }
0x299b   :  { %2569 = vmatprep.subr.bf16.mxu0 %v2906_v22 }
0x299e   :  { %2570 = vmatpush3.bf16.msra.mxu0 %v2639_v36 }
0x299f   :  { %2571 = vmatprep.subr.bf16.mxu0 %v2906_v22 }
0x29a4   :  { %v2811_v53 = vpop.eup %2810 }
0x29a5   :  { %v2099_v37 = vadd.f32 1.0, %v2811_v53 }
0x29a6   :  { %v2813_v45 = vpop.eup %2812 }
0x29a7   :  { %2814 = vrcp.f32 %v2099_v37  ;;  %v2124_v12 = vadd.f32 1.0, %v2813_v45  ;;  %v2640_v37 = vld [vmem:[#allocation4 + $0x8] sm:$0xff]  }
0x29a8   :  { %2572 = vmatpush3.bf16.msra.mxu0 %v2640_v37 }
0x29a9   :  { %2816 = vrcp.f32 %v2124_v12  ;;  %2573 = vmatprep.subr.bf16.mxu0 %v2906_v22  ;;  %v2641_v12 = vld [vmem:[#allocation4] sm:$0xff]  }
0x29ac   :  { %2574 = vmatpush3.bf16.msra.mxu0 %v2641_v12 }
0x29b4   :  { %v2815_v63 = vpop.eup %2814 }
0x29b5   :  { %v2102_v10 = vmul.f32 2.0, %v2815_v63  ;;  %v2104_v40 = vmul.f32 %v2815_v63, %v2008_v43 }
0x29b6   :  { %v2817_v58 = vpop.eup %2816 }
0x29b7   :  { %v2507_v60 = vadd.f32 -1.0, %v2102_v10  ;;  %v2127_v30 = vmul.f32 2.0, %v2817_v58  ;;  %v2129_v0 = vmul.f32 %v2817_v58, %v2033_v55 }
0x29b9   :  { %2106 = vrot.lane.b32.xlu0 %v2507_v60, %s2899_s24  ;;  %v2509_v4 = vadd.f32 -1.0, %v2127_v30  ;;  %v2344_v30 = vld [vmem:[%s3661_s8] sm:$0xff] }
0x29bb   :  { %2131 = vrot.lane.b32.xlu1 %v2509_v4, %s2899_s24  ;;  %v2909_v4 = vmov 1  }
0x29bc   :  { %2594 = vset.pattern.permute.xlu1 %v2909_v4 }
0x2a2b   :  { %v2107_v5 = vpop.permute.xlu0 %2106 }
0x2a2c   :  { %v2109_v16 = vmul.f32 %v2815_v63, %v2107_v5  ;;  %v2910_v5 = vmov 2  }
0x2a2d   :  { %v2132_v20 = vpop.permute.xlu1 %2131 }
0x2a2e   :  { %v2134_v25 = vmul.f32 %v2817_v58, %v2132_v20  ;;  %2111 = vrot.lane.b32.xlu0 %v2109_v16, %s2907_s4 }
0x2a30   :  { %2136 = vrot.lane.b32.xlu1 %v2134_v25, %s2907_s4 }
0x2aa0   :  { %v2112_v47 = vpop.permute.xlu0 %2111 }
0x2aa1   :  { %v2114_v50 = vadd.f32 %v2112_v47, %v2104_v40  ;;  %v2345_v40 = vld [vmem:[%s3663_s10] sm:$0x7]  ;;  %v2373_v47 = vsub.s32 2, %v3060_v51 }
0x2aa2   :  { %v2137_v41 = vpop.permute.xlu1 %2136 }
0x2aa3   :  { %2818 = vtanh.f32 %v2114_v50  ;;  %v2139_v38 = vadd.f32 %v2137_v41, %v2129_v0  ;;  %v2354_v0 = vrot.slane %v2345_v40, %v3063_v52  ;;  %v2364_v41 = vrot.slane %v2345_v40, %v3069_v54 }
0x2aa5   :  { %2820 = vtanh.f32 %v2139_v38 }
0x2ab0   :  { %v2819_v39 = vpop.eup %2818 }
0x2ab1   :  { %2117 = vrot.lane.b32.xlu0 %v2819_v39, %s2899_s24 }
0x2ab2   :  { %v2821_v42 = vpop.eup %2820 }
0x2ab3   :  { %2142 = vrot.lane.b32.xlu1 %v2821_v42, %s2899_s24  ;;  %v2374_v42 = vrot.slane %v2345_v40, %v2373_v47 }
0x2b23   :  { %v2118_v8 = vpop.permute.xlu0 %2117 }
0x2b24   :  { %v2120_v11 = vmul.f32 %v2815_v63, %v2118_v8 }
0x2b25   :  { %v2143_v46 = vpop.permute.xlu1 %2142 }
0x2b26   :  { %v2145_v7 = vmul.f32 %v2817_v58, %v2143_v46  ;;  %2147 = vrot.lane.b32.xlu0 %v2120_v11, %s2907_s4 }
0x2b28   :  { %2151 = vrot.lane.b32.xlu1 %v2145_v7, %s2899_s24 }
0x2b98   :  { %v2148_v49 = vpop.permute.xlu0 %2147 }
0x2b9a   :  { %v2152_v3 = vpop.permute.xlu1 %2151 }
0x2b9b   :  { %v2154_v57 = vsel %vm320_vm10, %v2148_v49, %v2152_v3 }
0x2b9c   :  { %v2155_v14 = vpack.c.bf16 %v2154_v57, %v2154_v57 }
0x2b9e   :  { %2510 = vmatmul.mubr.msk.bf16.vlgmr.msra.gmra.mxu1 %vm514_vm11, %v2155_v14 }
0x2c5e   :  { %v2193_v15 = vpop.f32.mrf.mxu1 }
0x2c5f   :  { %v2200_v17 = vadd.f32 %v2193_v15, %v3431_v31 }
0x2c60   :  { %v2195_v9 = vpop.f32.mrf.mxu1 }
0x2c61   :  { %v2511_v44 = vmul.f32 -1.442695, %v2200_v17  ;;  %v2201_v21 = vadd.f32 %v2195_v9, %v3405_v62 }
0x2c62   :  { %v2197_v13 = vpop.f32.mrf.mxu1 }
0x2c63   :  { %2822 = vpow2.f32 %v2511_v44  ;;  %v2513_v43 = vmul.f32 -1.442695, %v2201_v21 }
0x2c64   :  { %v2198_v24 = vpop.f32.mrf.mxu1 }
0x2c65   :  { %2824 = vpow2.f32 %v2513_v43 }
0x2c70   :  { %v2823_v26 = vpop.eup %2822 }
0x2c71   :  { %v2205_v55 = vadd.f32 1.0, %v2823_v26 }
0x2c72   :  { %v2825_v28 = vpop.eup %2824 }
0x2c73   :  { %2826 = vrcp.f32 %v2205_v55  ;;  %v2230_v29 = vadd.f32 1.0, %v2825_v28 }
0x2c75   :  { %2828 = vrcp.f32 %v2230_v29 }
0x2c80   :  { %v2827_v23 = vpop.eup %2826 }
0x2c81   :  { %v2208_v2 = vmul.f32 2.0, %v2827_v23  ;;  %v2210_v33 = vmul.f32 %v2827_v23, %v2114_v50 }
0x2c82   :  { %v2829_v59 = vpop.eup %2828 }
0x2c83   :  { %v2512_v1 = vadd.f32 -1.0, %v2208_v2  ;;  %v2233_v31 = vmul.f32 2.0, %v2829_v59  ;;  %v2235_v34 = vmul.f32 %v2829_v59, %v2139_v38  ;;  %v2515_v38 = vld [vmem:[#allocation6] ss:$0 sm:$0xff] }
0x2c85   :  { %2212 = vrot.lane.b32.xlu0 %v2512_v1, %s2899_s24  ;;  %v2514_v61 = vadd.f32 -1.0, %v2233_v31 }
0x2c87   :  { %2237 = vrot.lane.b32.xlu1 %v2514_v61, %s2899_s24 }
0x2cf7   :  { %v2213_v62 = vpop.permute.xlu0 %2212 }
0x2cf8   :  { %v2215_v32 = vmul.f32 %v2827_v23, %v2213_v62 }
0x2cf9   :  { %v2238_v27 = vpop.permute.xlu1 %2237 }
0x2cfa   :  { %v2240_v18 = vmul.f32 %v2829_v59, %v2238_v27  ;;  %2217 = vrot.lane.b32.xlu0 %v2215_v32, %s2907_s4 }
0x2cfc   :  { %2242 = vrot.lane.b32.xlu1 %v2240_v18, %s2907_s4 }
0x2d6c   :  { %v2218_v48 = vpop.permute.xlu0 %2217 }
0x2d6d   :  { %v2220_v6 = vadd.f32 %v2218_v48, %v2210_v33 }
0x2d6e   :  { %v2243_v19 = vpop.permute.xlu1 %2242 }
0x2d6f   :  { %2830 = vtanh.f32 %v2220_v6  ;;  %v2245_v35 = vadd.f32 %v2243_v19, %v2235_v34 }
0x2d71   :  { %2832 = vtanh.f32 %v2245_v35 }
0x2d7c   :  { %v2831_v53 = vpop.eup %2830 }
0x2d7d   :  { %2223 = vrot.lane.b32.xlu0 %v2831_v53, %s2899_s24 }
0x2d7e   :  { %v2833_v45 = vpop.eup %2832 }
0x2d7f   :  { %2248 = vrot.lane.b32.xlu1 %v2833_v45, %s2899_s24 }
0x2def   :  { %v2224_v63 = vpop.permute.xlu0 %2223 }
0x2df0   :  { %v2226_v10 = vmul.f32 %v2827_v23, %v2224_v63 }
0x2df1   :  { %v2249_v58 = vpop.permute.xlu1 %2248 }
0x2df2   :  { %v2251_v60 = vmul.f32 %v2829_v59, %v2249_v58  ;;  %2253 = vrot.lane.b32.xlu0 %v2226_v10, %s2907_s4 }
0x2df4   :  { %2257 = vrot.lane.b32.xlu1 %v2251_v60, %s2899_s24 }
0x2df6   :  { %2348 = vperm.xlu0 %2592, %v2344_v30  }
0x2df8   :  { %2358 = vperm.xlu1 %2594, %v2344_v30  }
0x2dfa   :  { %2595 = vset.pattern.permute.xlu0 %v2910_v5 }
0x2dfb   :  { %2368 = vperm.xlu0 %2595, %v2344_v30  }
0x2e64   :  { %v2254_v22 = vpop.permute.xlu0 %2253 }
0x2e66   :  { %v2258_v16 = vpop.permute.xlu1 %2257 }
0x2e67   :  { %v2260_v20 = vsel %vm320_vm10, %v2254_v22, %v2258_v16 }
0x2e68   :  { %v2261_v25 = vpack.c.bf16 %v2260_v20, %v2260_v20 }
0x2e6a   :  { %2576 = vmatmul.mubr.msk.bf16.vlgmr.msra.gmra.mxu0 %vm514_vm11, %v2261_v25 }
0x2e71   :  { %v2349_v50 = vpop.permute.xlu0 %2348 }
0x2e72   :  { %v2355_v46 = vmul.f32 %v2354_v0, %v2349_v50 }
0x2e73   :  { %v2359_v39 = vpop.permute.xlu1 %2358 }
0x2e74   :  { %v2365_v49 = vmul.f32 %v2364_v41, %v2359_v39 }
0x2e76   :  { %v2369_v11 = vpop.permute.xlu0 %2368 }
0x2e77   :  { %v2375_v14 = vmul.f32 %v2374_v42, %v2369_v11 }
0x2f2a   :  { %v2338_v8 = vpop.f32.mrf.mxu0 }
0x2f2b   :  { %v2339_v7 = vadd.f32 %v2515_v38, %v2338_v8 }
0x2f2c   :  { %v2577_v3 = vpop.f32.mrf.mxu0 }
0x2f2d   :  { %v2356_v57 = vadd.f32 %v2355_v46, %v2339_v7 }
0x2f2e   :  { %v2341_v15 = vpop.f32.mrf.mxu0 }
0x2f2f   :  { %v2366_v17 = vadd.f32 %v2365_v49, %v2356_v57 }
0x2f30   :  { %v2578_v9 = vpop.f32.mrf.mxu0 }
0x2f31   :  { %v2376_v51 = vadd.f32 %v2375_v14, %v2366_v17 }
0x2f33   :  { %2377 = vst [vmem:[%s3665_s12] sm:$0xff] %v2376_v51 }
0x2f34   :  { %2382 = vsyncpa [#allocation3], 1 }
0x2f35   :  { %2383 = vsyncpa [#allocation5], 1 }

</bundles_post_ra>
